<compile_context>
chip_gen: v7x
topology: tpu7x:2x2x1
jax: 0.10.0
libtpu: 0.0.40
codegen_flags: <defaults>
</compile_context>

<pallas_src>
import math
import jax
import jax.numpy as jnp
from jax.experimental import pallas as pl
from jax.experimental.pallas import tpu as pltpu

IMG = 784          # 28*28
LABEL = 10
LABEL_PAD = 16     # label columns zero-padded to 16 for aligned matmul
LATENT = 32

ENC_DIMS = [(794, 512), (512, 256), (256, 128), (128, 64)]
DEC_DIMS = [(32, 64), (64, 128), (128, 256), (256, 512), (512, 784)]


# ----------------------------- fused Pallas kernel -----------------------------

def _ae_fused_kernel(x_ref, lab_ref, eps_ref,
                     w1a_ref, w1b_ref, b1_ref,
                     w2_ref, b2_ref, w3_ref, b3_ref, w4_ref, b4_ref,
                     d1_ref, c1_ref, d2_ref, c2_ref, d3_ref, c3_ref,
                     d4_ref, c4_ref, d5_ref, c5_ref,
                     recon_ref, mean_ref, std_ref):
    f32 = jnp.float32

    def dense_relu(h, w_ref, b_ref):
        # y = relu(h @ W + b); bf16 operands on the MXU, f32 accumulation.
        y = jnp.dot(h.astype(w_ref.dtype), w_ref[...], preferred_element_type=f32)
        return jnp.maximum(y + b_ref[...], 0.0)

    # --- encoder layer 1: split matmul replaces the host-side concat ---
    x = x_ref[...]
    lab = lab_ref[...]
    h = (jnp.dot(x.astype(w1a_ref.dtype), w1a_ref[...], preferred_element_type=f32)
         + jnp.dot(lab.astype(w1b_ref.dtype), w1b_ref[...], preferred_element_type=f32)
         + b1_ref[...])
    h = jnp.maximum(h, 0.0)

    # --- remaining encoder layers ---
    h = dense_relu(h, w2_ref, b2_ref)
    h = dense_relu(h, w3_ref, b3_ref)
    h = dense_relu(h, w4_ref, b4_ref)          # (TB, 64)

    # --- chunk + reparameterize, entirely in VMEM / vregs ---
    mean = h[:, :LATENT]
    std = h[:, LATENT:]
    mean_ref[...] = mean
    std_ref[...] = std
    z = mean + eps_ref[...] * std              # z = mean + eps * std

    # --- decoder ---
    z = dense_relu(z, d1_ref, c1_ref)
    z = dense_relu(z, d2_ref, c2_ref)
    z = dense_relu(z, d3_ref, c3_ref)
    z = dense_relu(z, d4_ref, c4_ref)
    z = dense_relu(z, d5_ref, c5_ref)          # (TB, 784)
    recon_ref[...] = z


# ----------------------------- parameter setup -----------------------------

def _init_linear(key, in_f, out_f):
    # PyTorch nn.Linear default init: U(-1/sqrt(in), 1/sqrt(in)) for W and b.
    kw, kb = jax.random.split(key)
    bound = 1.0 / math.sqrt(in_f)
    w = jax.random.uniform(kw, (in_f, out_f), jnp.float32, -bound, bound)
    b = jax.random.uniform(kb, (out_f,), jnp.float32, -bound, bound)
    return w, b


def init_params(key, weight_dtype=jnp.bfloat16):
    keys = jax.random.split(key, len(ENC_DIMS) + len(DEC_DIMS))
    enc = [_init_linear(keys[i], *ENC_DIMS[i]) for i in range(len(ENC_DIMS))]
    dec = [_init_linear(keys[len(ENC_DIMS) + i], *DEC_DIMS[i])
           for i in range(len(DEC_DIMS))]

    # Split layer-1 weight into image part (784 rows) and label part (10 rows);
    # pad the label part to 16 rows with zeros (mathematically a no-op).
    w1, b1 = enc[0]
    w1a = w1[:IMG]
    w1b = jnp.zeros((LABEL_PAD, w1.shape[1]), jnp.float32).at[:LABEL].set(w1[IMG:])

    params = {
        "w1a": w1a.astype(weight_dtype),
        "w1b": w1b.astype(weight_dtype),
        "b1": b1.reshape(1, -1),
        "enc": [(w.astype(weight_dtype), b.reshape(1, -1)) for (w, b) in enc[1:]],
        "dec": [(w.astype(weight_dtype), b.reshape(1, -1)) for (w, b) in dec],
    }
    return params


# ----------------------------- forward pass -----------------------------

def ae_forward(params, x, x_label, eps):
    """Mirrors AE.forward: returns (input_val, x_decoded, mean, std)."""
    B = x.shape[0]
    x_flat = x.reshape(B, -1)                               # x.view(x.shape[0], -1)
    input_val = x_flat

    # zero-pad label columns 10 -> 16 (tiny, one-time per call, aligned matmul)
    lab_pad = jnp.zeros((B, LABEL_PAD), jnp.float32).at[:, :LABEL].set(x_label)

    # Batch tiling: one tile at B=4; TB=128 tiles (parallel axis) at serving sizes.
    TB = B if B <= 128 else 128
    n_tiles = pl.cdiv(B, TB)

    weight_args = [params["w1a"], params["w1b"], params["b1"]]
    for (w, b) in params["enc"]:
        weight_args += [w, b]
    for (w, b) in params["dec"]:
        weight_args += [w, b]

    def tile_spec(cols):
        return pl.BlockSpec((TB, cols), lambda i: (i, 0))

    def resident_spec(arr):
        # Constant block index: weights/biases stay resident across batch tiles.
        return pl.BlockSpec(arr.shape, lambda i: (0, 0))

    in_specs = [tile_spec(IMG), tile_spec(LABEL_PAD), tile_spec(LATENT)]
    in_specs += [resident_spec(a) for a in weight_args]

    out_shapes = (
        jax.ShapeDtypeStruct((B, IMG), jnp.float32),
        jax.ShapeDtypeStruct((B, LATENT), jnp.float32),
        jax.ShapeDtypeStruct((B, LATENT), jnp.float32),
    )
    out_specs = (tile_spec(IMG), tile_spec(LATENT), tile_spec(LATENT))

    recon, mean, std = pl.pallas_call(
        _ae_fused_kernel,
        out_shape=out_shapes,
        grid=(n_tiles,),
        in_specs=in_specs,
        out_specs=out_specs,
        compiler_params=pltpu.CompilerParams(
            dimension_semantics=("parallel",),
            vmem_limit_bytes=32 * 1024 * 1024,
        ),
    )(x_flat, lab_pad, eps, *weight_args)

    return input_val, recon, mean, std


# ----------------------------- pure-JAX reference -----------------------------

def ae_reference(params, x, x_label, eps):
    B = x.shape[0]
    x_flat = x.reshape(B, -1)
    f32 = jnp.float32

    def dense_relu(h, w, b):
        y = jnp.dot(h.astype(w.dtype), w, preferred_element_type=f32) + b
        return jnp.maximum(y, 0.0)

    lab_pad = jnp.zeros((B, LABEL_PAD), jnp.float32).at[:, :LABEL].set(x_label)
    h = (jnp.dot(x_flat.astype(params["w1a"].dtype), params["w1a"],
                 preferred_element_type=f32)
         + jnp.dot(lab_pad.astype(params["w1b"].dtype), params["w1b"],
                   preferred_element_type=f32)
         + params["b1"])
    h = jnp.maximum(h, 0.0)
    for (w, b) in params["enc"]:
        h = dense_relu(h, w, b)
    mean, std = h[:, :LATENT], h[:, LATENT:]
    z = mean + eps * std
    for (w, b) in params["dec"]:
        z = dense_relu(z, w, b)
    return x_flat, z, mean, std


# ----------------------------- main -----------------------------

if __name__ == "__main__":
    key = jax.random.PRNGKey(0)
    k_params, k_x, k_label, k_eps = jax.random.split(key, 4)

    B = 4
    params = init_params(k_params)

    # MNIST-like input (NCHW) and one-hot label vector.
    x = jax.random.uniform(k_x, (B, 1, 28, 28), jnp.float32)
    labels = jax.random.randint(k_label, (B,), 0, 10)
    x_label = jax.nn.one_hot(labels, LABEL, dtype=jnp.float32)
    eps = jax.random.normal(k_eps, (B, LATENT), jnp.float32)  # randn_like(std)

    fwd = jax.jit(ae_forward)
    input_val, recon, mean, std = fwd(params, x, x_label, eps)
    jax.block_until_ready((input_val, recon, mean, std))

    # shape / semantic checks
    assert input_val.shape == (B, IMG)
    assert recon.shape == (B, IMG)
    assert mean.shape == (B, LATENT)
    assert std.shape == (B, LATENT)
    assert bool(jnp.all(recon >= 0.0))          # final ReLU
    assert bool(jnp.all(jnp.isfinite(recon)))

    # numerical check vs. pure-JAX reference (same bf16 weights, f32 accumulation)
    ref_in, ref_recon, ref_mean, ref_std = jax.jit(ae_reference)(params, x, x_label, eps)
    assert bool(jnp.allclose(recon, ref_recon, rtol=1e-2, atol=1e-2))
    assert bool(jnp.allclose(mean, ref_mean, rtol=1e-2, atol=1e-2))
    assert bool(jnp.allclose(std, ref_std, rtol=1e-2, atol=1e-2))

    print("KERNEL_OK")
</pallas_src>

<mosaic_0001>
module attributes {stable_mosaic.version = 11 : i64} {
  func.func @_ae_fused_kernel(%arg0: i32, %arg1: memref<4x784xf32, #tpu.memory_space<vmem>>, %arg2: memref<4x16xf32, #tpu.memory_space<vmem>>, %arg3: memref<4x32xf32, #tpu.memory_space<vmem>>, %arg4: memref<784x512xbf16, #tpu.memory_space<vmem>>, %arg5: memref<16x512xbf16, #tpu.memory_space<vmem>>, %arg6: memref<1x512xf32, #tpu.memory_space<vmem>>, %arg7: memref<512x256xbf16, #tpu.memory_space<vmem>>, %arg8: memref<1x256xf32, #tpu.memory_space<vmem>>, %arg9: memref<256x128xbf16, #tpu.memory_space<vmem>>, %arg10: memref<1x128xf32, #tpu.memory_space<vmem>>, %arg11: memref<128x64xbf16, #tpu.memory_space<vmem>>, %arg12: memref<1x64xf32, #tpu.memory_space<vmem>>, %arg13: memref<32x64xbf16, #tpu.memory_space<vmem>>, %arg14: memref<1x64xf32, #tpu.memory_space<vmem>>, %arg15: memref<64x128xbf16, #tpu.memory_space<vmem>>, %arg16: memref<1x128xf32, #tpu.memory_space<vmem>>, %arg17: memref<128x256xbf16, #tpu.memory_space<vmem>>, %arg18: memref<1x256xf32, #tpu.memory_space<vmem>>, %arg19: memref<256x512xbf16, #tpu.memory_space<vmem>>, %arg20: memref<1x512xf32, #tpu.memory_space<vmem>>, %arg21: memref<512x784xbf16, #tpu.memory_space<vmem>>, %arg22: memref<1x784xf32, #tpu.memory_space<vmem>>, %arg23: memref<4x784xf32, #tpu.memory_space<vmem>>, %arg24: memref<4x32xf32, #tpu.memory_space<vmem>>, %arg25: memref<4x32xf32, #tpu.memory_space<vmem>>) attributes {dimension_semantics = [#tpu.dimension_semantics<parallel>], iteration_bounds = array<i64: 1>, scalar_prefetch = 0 : i64, scratch_operands = 0 : i64, tpu.core_type = #tpu.core_type<tc>, window_params = [{transform_indices = @transform_0, window_bounds = array<i64: 4, 784>}, {transform_indices = @transform_1, window_bounds = array<i64: 4, 16>}, {transform_indices = @transform_2, window_bounds = array<i64: 4, 32>}, {pipeline_mode = #tpu.pipeline_mode<synchronous>, transform_indices = @transform_3, window_bounds = array<i64: 784, 512>}, {pipeline_mode = #tpu.pipeline_mode<synchronous>, transform_indices = @transform_4, window_bounds = array<i64: 16, 512>}, {pipeline_mode = #tpu.pipeline_mode<synchronous>, transform_indices = @transform_5, window_bounds = array<i64: 1, 512>}, {pipeline_mode = #tpu.pipeline_mode<synchronous>, transform_indices = @transform_6, window_bounds = array<i64: 512, 256>}, {pipeline_mode = #tpu.pipeline_mode<synchronous>, transform_indices = @transform_7, window_bounds = array<i64: 1, 256>}, {pipeline_mode = #tpu.pipeline_mode<synchronous>, transform_indices = @transform_8, window_bounds = array<i64: 256, 128>}, {pipeline_mode = #tpu.pipeline_mode<synchronous>, transform_indices = @transform_9, window_bounds = array<i64: 1, 128>}, {pipeline_mode = #tpu.pipeline_mode<synchronous>, transform_indices = @transform_10, window_bounds = array<i64: 128, 64>}, {pipeline_mode = #tpu.pipeline_mode<synchronous>, transform_indices = @transform_11, window_bounds = array<i64: 1, 64>}, {pipeline_mode = #tpu.pipeline_mode<synchronous>, transform_indices = @transform_12, window_bounds = array<i64: 32, 64>}, {pipeline_mode = #tpu.pipeline_mode<synchronous>, transform_indices = @transform_13, window_bounds = array<i64: 1, 64>}, {pipeline_mode = #tpu.pipeline_mode<synchronous>, transform_indices = @transform_14, window_bounds = array<i64: 64, 128>}, {pipeline_mode = #tpu.pipeline_mode<synchronous>, transform_indices = @transform_15, window_bounds = array<i64: 1, 128>}, {pipeline_mode = #tpu.pipeline_mode<synchronous>, transform_indices = @transform_16, window_bounds = array<i64: 128, 256>}, {pipeline_mode = #tpu.pipeline_mode<synchronous>, transform_indices = @transform_17, window_bounds = array<i64: 1, 256>}, {pipeline_mode = #tpu.pipeline_mode<synchronous>, transform_indices = @transform_18, window_bounds = array<i64: 256, 512>}, {pipeline_mode = #tpu.pipeline_mode<synchronous>, transform_indices = @transform_19, window_bounds = array<i64: 1, 512>}, {pipeline_mode = #tpu.pipeline_mode<synchronous>, transform_indices = @transform_20, window_bounds = array<i64: 512, 784>}, {pipeline_mode = #tpu.pipeline_mode<synchronous>, transform_indices = @transform_21, window_bounds = array<i64: 1, 784>}, {transform_indices = @transform_22, window_bounds = array<i64: 4, 784>}, {transform_indices = @transform_23, window_bounds = array<i64: 4, 32>}, {transform_indices = @transform_24, window_bounds = array<i64: 4, 32>}]} {
    %c0 = arith.constant 0 : index
    %c0_0 = arith.constant 0 : index
    %0 = vector.load %arg1[%c0, %c0_0] : memref<4x784xf32, #tpu.memory_space<vmem>>, vector<4x784xf32>
    %c0_1 = arith.constant 0 : index
    %c0_2 = arith.constant 0 : index
    %1 = vector.load %arg2[%c0_1, %c0_2] : memref<4x16xf32, #tpu.memory_space<vmem>>, vector<4x16xf32>
    %2 = arith.truncf %0 : vector<4x784xf32> to vector<4x784xbf16>
    %c0_3 = arith.constant 0 : index
    %c0_4 = arith.constant 0 : index
    %3 = vector.load %arg4[%c0_3, %c0_4] : memref<784x512xbf16, #tpu.memory_space<vmem>>, vector<784x512xbf16>
    %cst = arith.constant dense<0.000000e+00> : vector<4x512xf32>
    %4 = tpu.matmul %2, %3, %cst {dimension_numbers = #tpu.dot_dimension_numbers<[1], [0], [0], [1], [0, 0, 1, 1], [], []>} : vector<4x784xbf16>, vector<784x512xbf16>, vector<4x512xf32> -> vector<4x512xf32>
    %5 = arith.truncf %1 : vector<4x16xf32> to vector<4x16xbf16>
    %c0_5 = arith.constant 0 : index
    %c0_6 = arith.constant 0 : index
    %6 = vector.load %arg5[%c0_5, %c0_6] : memref<16x512xbf16, #tpu.memory_space<vmem>>, vector<16x512xbf16>
    %cst_7 = arith.constant dense<0.000000e+00> : vector<4x512xf32>
    %7 = tpu.matmul %5, %6, %cst_7 {dimension_numbers = #tpu.dot_dimension_numbers<[1], [0], [0], [1], [0, 0, 1, 1], [], []>} : vector<4x16xbf16>, vector<16x512xbf16>, vector<4x512xf32> -> vector<4x512xf32>
    %8 = arith.addf %4, %7 : vector<4x512xf32>
    %c0_8 = arith.constant 0 : index
    %c0_9 = arith.constant 0 : index
    %9 = vector.load %arg6[%c0_8, %c0_9] : memref<1x512xf32, #tpu.memory_space<vmem>>, vector<1x512xf32>
    %10 = vector.broadcast %9 : vector<1x512xf32> to vector<4x512xf32>
    %11 = arith.addf %8, %10 : vector<4x512xf32>
    %cst_10 = arith.constant 0.000000e+00 : f32
    %12 = vector.broadcast %cst_10 : f32 to vector<4x512xf32>
    %13 = arith.maximumf %11, %12 : vector<4x512xf32>
    %14 = arith.truncf %13 : vector<4x512xf32> to vector<4x512xbf16>
    %c0_11 = arith.constant 0 : index
    %c0_12 = arith.constant 0 : index
    %15 = vector.load %arg7[%c0_11, %c0_12] : memref<512x256xbf16, #tpu.memory_space<vmem>>, vector<512x256xbf16>
    %cst_13 = arith.constant dense<0.000000e+00> : vector<4x256xf32>
    %16 = tpu.matmul %14, %15, %cst_13 {dimension_numbers = #tpu.dot_dimension_numbers<[1], [0], [0], [1], [0, 0, 1, 1], [], []>} : vector<4x512xbf16>, vector<512x256xbf16>, vector<4x256xf32> -> vector<4x256xf32>
    %c0_14 = arith.constant 0 : index
    %c0_15 = arith.constant 0 : index
    %17 = vector.load %arg8[%c0_14, %c0_15] : memref<1x256xf32, #tpu.memory_space<vmem>>, vector<1x256xf32>
    %18 = vector.broadcast %17 : vector<1x256xf32> to vector<4x256xf32>
    %19 = arith.addf %16, %18 : vector<4x256xf32>
    %cst_16 = arith.constant 0.000000e+00 : f32
    %20 = vector.broadcast %cst_16 : f32 to vector<4x256xf32>
    %21 = arith.maximumf %19, %20 : vector<4x256xf32>
    %22 = arith.truncf %21 : vector<4x256xf32> to vector<4x256xbf16>
    %c0_17 = arith.constant 0 : index
    %c0_18 = arith.constant 0 : index
    %23 = vector.load %arg9[%c0_17, %c0_18] : memref<256x128xbf16, #tpu.memory_space<vmem>>, vector<256x128xbf16>
    %cst_19 = arith.constant dense<0.000000e+00> : vector<4x128xf32>
    %24 = tpu.matmul %22, %23, %cst_19 {dimension_numbers = #tpu.dot_dimension_numbers<[1], [0], [0], [1], [0, 0, 1, 1], [], []>} : vector<4x256xbf16>, vector<256x128xbf16>, vector<4x128xf32> -> vector<4x128xf32>
    %c0_20 = arith.constant 0 : index
    %c0_21 = arith.constant 0 : index
    %25 = vector.load %arg10[%c0_20, %c0_21] : memref<1x128xf32, #tpu.memory_space<vmem>>, vector<1x128xf32>
    %26 = vector.broadcast %25 : vector<1x128xf32> to vector<4x128xf32>
    %27 = arith.addf %24, %26 : vector<4x128xf32>
    %cst_22 = arith.constant 0.000000e+00 : f32
    %28 = vector.broadcast %cst_22 : f32 to vector<4x128xf32>
    %29 = arith.maximumf %27, %28 : vector<4x128xf32>
    %30 = arith.truncf %29 : vector<4x128xf32> to vector<4x128xbf16>
    %c0_23 = arith.constant 0 : index
    %c0_24 = arith.constant 0 : index
    %31 = vector.load %arg11[%c0_23, %c0_24] : memref<128x64xbf16, #tpu.memory_space<vmem>>, vector<128x64xbf16>
    %cst_25 = arith.constant dense<0.000000e+00> : vector<4x64xf32>
    %32 = tpu.matmul %30, %31, %cst_25 {dimension_numbers = #tpu.dot_dimension_numbers<[1], [0], [0], [1], [0, 0, 1, 1], [], []>} : vector<4x128xbf16>, vector<128x64xbf16>, vector<4x64xf32> -> vector<4x64xf32>
    %c0_26 = arith.constant 0 : index
    %c0_27 = arith.constant 0 : index
    %33 = vector.load %arg12[%c0_26, %c0_27] : memref<1x64xf32, #tpu.memory_space<vmem>>, vector<1x64xf32>
    %34 = vector.broadcast %33 : vector<1x64xf32> to vector<4x64xf32>
    %35 = arith.addf %32, %34 : vector<4x64xf32>
    %cst_28 = arith.constant 0.000000e+00 : f32
    %36 = vector.broadcast %cst_28 : f32 to vector<4x64xf32>
    %37 = arith.maximumf %35, %36 : vector<4x64xf32>
    %38 = vector.extract_strided_slice %37 {offsets = [0, 0], sizes = [4, 32], strides = [1, 1]} : vector<4x64xf32> to vector<4x32xf32>
    %39 = vector.extract_strided_slice %37 {offsets = [0, 32], sizes = [4, 32], strides = [1, 1]} : vector<4x64xf32> to vector<4x32xf32>
    %c0_29 = arith.constant 0 : index
    %c0_30 = arith.constant 0 : index
    %40 = vector.load %arg24[%c0_29, %c0_30] : memref<4x32xf32, #tpu.memory_space<vmem>>, vector<4x32xf32>
    tpu.vector_store %arg24[%c0_29, %c0_30], %38 {strides = array<i32>} : memref<4x32xf32, #tpu.memory_space<vmem>>, vector<4x32xf32>,
    %c0_31 = arith.constant 0 : index
    %c0_32 = arith.constant 0 : index
    %41 = vector.load %arg25[%c0_31, %c0_32] : memref<4x32xf32, #tpu.memory_space<vmem>>, vector<4x32xf32>
    tpu.vector_store %arg25[%c0_31, %c0_32], %39 {strides = array<i32>} : memref<4x32xf32, #tpu.memory_space<vmem>>, vector<4x32xf32>,
    %c0_33 = arith.constant 0 : index
    %c0_34 = arith.constant 0 : index
    %42 = vector.load %arg3[%c0_33, %c0_34] : memref<4x32xf32, #tpu.memory_space<vmem>>, vector<4x32xf32>
    %43 = arith.mulf %42, %39 : vector<4x32xf32>
    %44 = arith.addf %38, %43 : vector<4x32xf32>
    %45 = arith.truncf %44 : vector<4x32xf32> to vector<4x32xbf16>
    %c0_35 = arith.constant 0 : index
    %c0_36 = arith.constant 0 : index
    %46 = vector.load %arg13[%c0_35, %c0_36] : memref<32x64xbf16, #tpu.memory_space<vmem>>, vector<32x64xbf16>
    %cst_37 = arith.constant dense<0.000000e+00> : vector<4x64xf32>
    %47 = tpu.matmul %45, %46, %cst_37 {dimension_numbers = #tpu.dot_dimension_numbers<[1], [0], [0], [1], [0, 0, 1, 1], [], []>} : vector<4x32xbf16>, vector<32x64xbf16>, vector<4x64xf32> -> vector<4x64xf32>
    %c0_38 = arith.constant 0 : index
    %c0_39 = arith.constant 0 : index
    %48 = vector.load %arg14[%c0_38, %c0_39] : memref<1x64xf32, #tpu.memory_space<vmem>>, vector<1x64xf32>
    %49 = vector.broadcast %48 : vector<1x64xf32> to vector<4x64xf32>
    %50 = arith.addf %47, %49 : vector<4x64xf32>
    %cst_40 = arith.constant 0.000000e+00 : f32
    %51 = vector.broadcast %cst_40 : f32 to vector<4x64xf32>
    %52 = arith.maximumf %50, %51 : vector<4x64xf32>
    %53 = arith.truncf %52 : vector<4x64xf32> to vector<4x64xbf16>
    %c0_41 = arith.constant 0 : index
    %c0_42 = arith.constant 0 : index
    %54 = vector.load %arg15[%c0_41, %c0_42] : memref<64x128xbf16, #tpu.memory_space<vmem>>, vector<64x128xbf16>
    %cst_43 = arith.constant dense<0.000000e+00> : vector<4x128xf32>
    %55 = tpu.matmul %53, %54, %cst_43 {dimension_numbers = #tpu.dot_dimension_numbers<[1], [0], [0], [1], [0, 0, 1, 1], [], []>} : vector<4x64xbf16>, vector<64x128xbf16>, vector<4x128xf32> -> vector<4x128xf32>
    %c0_44 = arith.constant 0 : index
    %c0_45 = arith.constant 0 : index
    %56 = vector.load %arg16[%c0_44, %c0_45] : memref<1x128xf32, #tpu.memory_space<vmem>>, vector<1x128xf32>
    %57 = vector.broadcast %56 : vector<1x128xf32> to vector<4x128xf32>
    %58 = arith.addf %55, %57 : vector<4x128xf32>
    %cst_46 = arith.constant 0.000000e+00 : f32
    %59 = vector.broadcast %cst_46 : f32 to vector<4x128xf32>
    %60 = arith.maximumf %58, %59 : vector<4x128xf32>
    %61 = arith.truncf %60 : vector<4x128xf32> to vector<4x128xbf16>
    %c0_47 = arith.constant 0 : index
    %c0_48 = arith.constant 0 : index
    %62 = vector.load %arg17[%c0_47, %c0_48] : memref<128x256xbf16, #tpu.memory_space<vmem>>, vector<128x256xbf16>
    %cst_49 = arith.constant dense<0.000000e+00> : vector<4x256xf32>
    %63 = tpu.matmul %61, %62, %cst_49 {dimension_numbers = #tpu.dot_dimension_numbers<[1], [0], [0], [1], [0, 0, 1, 1], [], []>} : vector<4x128xbf16>, vector<128x256xbf16>, vector<4x256xf32> -> vector<4x256xf32>
    %c0_50 = arith.constant 0 : index
    %c0_51 = arith.constant 0 : index
    %64 = vector.load %arg18[%c0_50, %c0_51] : memref<1x256xf32, #tpu.memory_space<vmem>>, vector<1x256xf32>
    %65 = vector.broadcast %64 : vector<1x256xf32> to vector<4x256xf32>
    %66 = arith.addf %63, %65 : vector<4x256xf32>
    %cst_52 = arith.constant 0.000000e+00 : f32
    %67 = vector.broadcast %cst_52 : f32 to vector<4x256xf32>
    %68 = arith.maximumf %66, %67 : vector<4x256xf32>
    %69 = arith.truncf %68 : vector<4x256xf32> to vector<4x256xbf16>
    %c0_53 = arith.constant 0 : index
    %c0_54 = arith.constant 0 : index
    %70 = vector.load %arg19[%c0_53, %c0_54] : memref<256x512xbf16, #tpu.memory_space<vmem>>, vector<256x512xbf16>
    %cst_55 = arith.constant dense<0.000000e+00> : vector<4x512xf32>
    %71 = tpu.matmul %69, %70, %cst_55 {dimension_numbers = #tpu.dot_dimension_numbers<[1], [0], [0], [1], [0, 0, 1, 1], [], []>} : vector<4x256xbf16>, vector<256x512xbf16>, vector<4x512xf32> -> vector<4x512xf32>
    %c0_56 = arith.constant 0 : index
    %c0_57 = arith.constant 0 : index
    %72 = vector.load %arg20[%c0_56, %c0_57] : memref<1x512xf32, #tpu.memory_space<vmem>>, vector<1x512xf32>
    %73 = vector.broadcast %72 : vector<1x512xf32> to vector<4x512xf32>
    %74 = arith.addf %71, %73 : vector<4x512xf32>
    %cst_58 = arith.constant 0.000000e+00 : f32
    %75 = vector.broadcast %cst_58 : f32 to vector<4x512xf32>
    %76 = arith.maximumf %74, %75 : vector<4x512xf32>
    %77 = arith.truncf %76 : vector<4x512xf32> to vector<4x512xbf16>
    %c0_59 = arith.constant 0 : index
    %c0_60 = arith.constant 0 : index
    %78 = vector.load %arg21[%c0_59, %c0_60] : memref<512x784xbf16, #tpu.memory_space<vmem>>, vector<512x784xbf16>
    %cst_61 = arith.constant dense<0.000000e+00> : vector<4x784xf32>
    %79 = tpu.matmul %77, %78, %cst_61 {dimension_numbers = #tpu.dot_dimension_numbers<[1], [0], [0], [1], [0, 0, 1, 1], [], []>} : vector<4x512xbf16>, vector<512x784xbf16>, vector<4x784xf32> -> vector<4x784xf32>
    %c0_62 = arith.constant 0 : index
    %c0_63 = arith.constant 0 : index
    %80 = vector.load %arg22[%c0_62, %c0_63] : memref<1x784xf32, #tpu.memory_space<vmem>>, vector<1x784xf32>
    %81 = vector.broadcast %80 : vector<1x784xf32> to vector<4x784xf32>
    %82 = arith.addf %79, %81 : vector<4x784xf32>
    %cst_64 = arith.constant 0.000000e+00 : f32
    %83 = vector.broadcast %cst_64 : f32 to vector<4x784xf32>
    %84 = arith.maximumf %82, %83 : vector<4x784xf32>
    %c0_65 = arith.constant 0 : index
    %c0_66 = arith.constant 0 : index
    %85 = vector.load %arg23[%c0_65, %c0_66] : memref<4x784xf32, #tpu.memory_space<vmem>>, vector<4x784xf32>
    tpu.vector_store %arg23[%c0_65, %c0_66], %84 {strides = array<i32>} : memref<4x784xf32, #tpu.memory_space<vmem>>, vector<4x784xf32>,
    return
  }
  func.func @transform_0(%arg0: i32) -> (i32, i32) {
    %c0_i32 = arith.constant 0 : i32
    %c0_i32_0 = arith.constant 0 : i32
    return %arg0, %c0_i32 : i32, i32
  }
  func.func @transform_1(%arg0: i32) -> (i32, i32) {
    %c0_i32 = arith.constant 0 : i32
    %c0_i32_0 = arith.constant 0 : i32
    return %arg0, %c0_i32 : i32, i32
  }
  func.func @transform_2(%arg0: i32) -> (i32, i32) {
    %c0_i32 = arith.constant 0 : i32
    %c0_i32_0 = arith.constant 0 : i32
    return %arg0, %c0_i32 : i32, i32
  }
  func.func @transform_3(%arg0: i32) -> (i32, i32) {
    %c0_i32 = arith.constant 0 : i32
    %c0_i32_0 = arith.constant 0 : i32
    %c0_i32_1 = arith.constant 0 : i32
    return %c0_i32, %c0_i32_0 : i32, i32
  }
  func.func @transform_4(%arg0: i32) -> (i32, i32) {
    %c0_i32 = arith.constant 0 : i32
    %c0_i32_0 = arith.constant 0 : i32
    %c0_i32_1 = arith.constant 0 : i32
    return %c0_i32, %c0_i32_0 : i32, i32
  }
  func.func @transform_5(%arg0: i32) -> (i32, i32) {
    %c0_i32 = arith.constant 0 : i32
    %c0_i32_0 = arith.constant 0 : i32
    %c0_i32_1 = arith.constant 0 : i32
    return %c0_i32, %c0_i32_0 : i32, i32
  }
  func.func @transform_6(%arg0: i32) -> (i32, i32) {
    %c0_i32 = arith.constant 0 : i32
    %c0_i32_0 = arith.constant 0 : i32
    %c0_i32_1 = arith.constant 0 : i32
    return %c0_i32, %c0_i32_0 : i32, i32
  }
  func.func @transform_7(%arg0: i32) -> (i32, i32) {
    %c0_i32 = arith.constant 0 : i32
    %c0_i32_0 = arith.constant 0 : i32
    %c0_i32_1 = arith.constant 0 : i32
    return %c0_i32, %c0_i32_0 : i32, i32
  }
  func.func @transform_8(%arg0: i32) -> (i32, i32) {
    %c0_i32 = arith.constant 0 : i32
    %c0_i32_0 = arith.constant 0 : i32
    %c0_i32_1 = arith.constant 0 : i32
    return %c0_i32, %c0_i32_0 : i32, i32
  }
  func.func @transform_9(%arg0: i32) -> (i32, i32) {
    %c0_i32 = arith.constant 0 : i32
    %c0_i32_0 = arith.constant 0 : i32
    %c0_i32_1 = arith.constant 0 : i32
    return %c0_i32, %c0_i32_0 : i32, i32
  }
  func.func @transform_10(%arg0: i32) -> (i32, i32) {
    %c0_i32 = arith.constant 0 : i32
    %c0_i32_0 = arith.constant 0 : i32
    %c0_i32_1 = arith.constant 0 : i32
    return %c0_i32, %c0_i32_0 : i32, i32
  }
  func.func @transform_11(%arg0: i32) -> (i32, i32) {
    %c0_i32 = arith.constant 0 : i32
    %c0_i32_0 = arith.constant 0 : i32
    %c0_i32_1 = arith.constant 0 : i32
    return %c0_i32, %c0_i32_0 : i32, i32
  }
  func.func @transform_12(%arg0: i32) -> (i32, i32) {
    %c0_i32 = arith.constant 0 : i32
    %c0_i32_0 = arith.constant 0 : i32
    %c0_i32_1 = arith.constant 0 : i32
    return %c0_i32, %c0_i32_0 : i32, i32
  }
  func.func @transform_13(%arg0: i32) -> (i32, i32) {
    %c0_i32 = arith.constant 0 : i32
    %c0_i32_0 = arith.constant 0 : i32
    %c0_i32_1 = arith.constant 0 : i32
    return %c0_i32, %c0_i32_0 : i32, i32
  }
  func.func @transform_14(%arg0: i32) -> (i32, i32) {
    %c0_i32 = arith.constant 0 : i32
    %c0_i32_0 = arith.constant 0 : i32
    %c0_i32_1 = arith.constant 0 : i32
    return %c0_i32, %c0_i32_0 : i32, i32
  }
  func.func @transform_15(%arg0: i32) -> (i32, i32) {
    %c0_i32 = arith.constant 0 : i32
    %c0_i32_0 = arith.constant 0 : i32
    %c0_i32_1 = arith.constant 0 : i32
    return %c0_i32, %c0_i32_0 : i32, i32
  }
  func.func @transform_16(%arg0: i32) -> (i32, i32) {
    %c0_i32 = arith.constant 0 : i32
    %c0_i32_0 = arith.constant 0 : i32
    %c0_i32_1 = arith.constant 0 : i32
    return %c0_i32, %c0_i32_0 : i32, i32
  }
  func.func @transform_17(%arg0: i32) -> (i32, i32) {
    %c0_i32 = arith.constant 0 : i32
    %c0_i32_0 = arith.constant 0 : i32
    %c0_i32_1 = arith.constant 0 : i32
    return %c0_i32, %c0_i32_0 : i32, i32
  }
  func.func @transform_18(%arg0: i32) -> (i32, i32) {
    %c0_i32 = arith.constant 0 : i32
    %c0_i32_0 = arith.constant 0 : i32
    %c0_i32_1 = arith.constant 0 : i32
    return %c0_i32, %c0_i32_0 : i32, i32
  }
  func.func @transform_19(%arg0: i32) -> (i32, i32) {
    %c0_i32 = arith.constant 0 : i32
    %c0_i32_0 = arith.constant 0 : i32
    %c0_i32_1 = arith.constant 0 : i32
    return %c0_i32, %c0_i32_0 : i32, i32
  }
  func.func @transform_20(%arg0: i32) -> (i32, i32) {
    %c0_i32 = arith.constant 0 : i32
    %c0_i32_0 = arith.constant 0 : i32
    %c0_i32_1 = arith.constant 0 : i32
    return %c0_i32, %c0_i32_0 : i32, i32
  }
  func.func @transform_21(%arg0: i32) -> (i32, i32) {
    %c0_i32 = arith.constant 0 : i32
    %c0_i32_0 = arith.constant 0 : i32
    %c0_i32_1 = arith.constant 0 : i32
    return %c0_i32, %c0_i32_0 : i32, i32
  }
  func.func @transform_22(%arg0: i32) -> (i32, i32) {
    %c0_i32 = arith.constant 0 : i32
    %c0_i32_0 = arith.constant 0 : i32
    return %arg0, %c0_i32 : i32, i32
  }
  func.func @transform_23(%arg0: i32) -> (i32, i32) {
    %c0_i32 = arith.constant 0 : i32
    %c0_i32_0 = arith.constant 0 : i32
    return %arg0, %c0_i32 : i32, i32
  }
  func.func @transform_24(%arg0: i32) -> (i32, i32) {
    %c0_i32 = arith.constant 0 : i32
    %c0_i32_0 = arith.constant 0 : i32
    return %arg0, %c0_i32 : i32, i32
  }
}

</mosaic_0001>

<bundles_post_ra>
// kernel: ae_forward.1
= control target key start
LH: loop header
LB: loop body
LE: loop exit
PB: predicated region body
PF: predicated region fallthrough
CT: control target
= control target key end

     0   :  { %s9032_s0 = inlined_call_operand.vmem [shape: f32[4,784], index: 0, kind: input, shape index: {}]   ;;  %s9033_s1 = inlined_call_operand.vmem [shape: f32[4,16], index: 1, kind: input, shape index: {}]   ;;  %s9034_s2 = inlined_call_operand.vmem [shape: f32[4,32], index: 2, kind: input, shape index: {}]   ;;  %s9035_s3 = inlined_call_operand.vmem [shape: bf16[784,512], index: 3, kind: input, shape index: {}]   ;;  %s9036_s4 = inlined_call_operand.vmem [shape: bf16[16,512], index: 4, kind: input, shape index: {}]   ;;  %s9037_s5 = inlined_call_operand.vmem [shape: f32[1,512], index: 5, kind: input, shape index: {}]   ;;  %s9038_s6 = inlined_call_operand.vmem [shape: bf16[512,256], index: 6, kind: input, shape index: {}]   ;;  %s9039_s7 = inlined_call_operand.vmem [shape: f32[1,256], index: 7, kind: input, shape index: {}]   ;;  %s9040_s8 = inlined_call_operand.vmem [shape: bf16[256,128], index: 8, kind: input, shape index: {}]   ;;  %s9041_s9 = inlined_call_operand.vmem [shape: f32[1,128], index: 9, kind: input, shape index: {}]   ;;  %s9042_s10 = inlined_call_operand.vmem [shape: bf16[128,64], index: 10, kind: input, shape index: {}]   ;;  %s9043_s11 = inlined_call_operand.vmem [shape: f32[1,64], index: 11, kind: input, shape index: {}]   ;;  %s9044_s12 = inlined_call_operand.vmem [shape: bf16[32,64], index: 12, kind: input, shape index: {}]   ;;  %s9045_s13 = inlined_call_operand.vmem [shape: f32[1,64], index: 13, kind: input, shape index: {}]   ;;  %s9046_s14 = inlined_call_operand.vmem [shape: bf16[64,128], index: 14, kind: input, shape index: {}]   ;;  %s9047_s15 = inlined_call_operand.vmem [shape: f32[1,128], index: 15, kind: input, shape index: {}]   ;;  %s9048_s16 = inlined_call_operand.vmem [shape: bf16[128,256], index: 16, kind: input, shape index: {}]   ;;  %s9049_s17 = inlined_call_operand.vmem [shape: f32[1,256], index: 17, kind: input, shape index: {}]   ;;  %s9050_s18 = inlined_call_operand.vmem [shape: bf16[256,512], index: 18, kind: input, shape index: {}]   ;;  %s9051_s19 = inlined_call_operand.vmem [shape: f32[1,512], index: 19, kind: input, shape index: {}]   ;;  %s9052_s20 = inlined_call_operand.vmem [shape: bf16[512,784], index: 20, kind: input, shape index: {}]   ;;  %s9053_s21 = inlined_call_operand.vmem [shape: f32[1,784], index: 21, kind: input, shape index: {}]   ;;  %s9054_s22 = inlined_call_operand.hbm [shape: f32[4,784], index: 22, kind: output, shape index: {0}]   ;;  %s9055_s23 = inlined_call_operand.hbm [shape: f32[4,32], index: 23, kind: output, shape index: {1}]   ;;  %s9056_s24 = inlined_call_operand.hbm [shape: f32[4,32], index: 24, kind: output, shape index: {2}]  }
   0x1   :  { %9062 = sst [smem:[#allocation9_spill]] %s9032_s0 }
   0x2   :  { %9063 = sst [smem:[#allocation10_spill]] %s9033_s1 }
   0x3   :  { %9064 = sst [smem:[#allocation11_spill]] %s9034_s2 }
   0x4   :  { %9065 = sst [smem:[#allocation12_spill]] %s9035_s3 }
   0x5   :  { %9066 = sst [smem:[#allocation13_spill]] %s9036_s4 }
   0x6   :  { %9067 = sst [smem:[#allocation14_spill]] %s9037_s5 }
   0x7   :  { %9068 = sst [smem:[#allocation15_spill]] %s9038_s6 }
   0x8   :  { %9069 = sst [smem:[#allocation16_spill]] %s9039_s7 }
   0x9   :  { %9070 = sst [smem:[#allocation17_spill]] %s9040_s8 }
   0xa   :  { %30 = vsyncpa [#allocation3], 0  ;;  %s9071_s27 = sld [smem:[#allocation13_spill]]  ;;  %v6872_v2 = vmov 0   ;;  %s9072_s25 = sld [smem:[#allocation10_spill]]  ;;  %vm319_vm0 = vcmask 130048  }
   0xb   :  { %355 = vmatprep.mubr.bf16.mxu0 %v6872_v2  ;;  %396 = vmatprep.mubr.bf16.mxu1 %v6872_v2  ;;  %s9073_s1 = sld [smem:[#allocation12_spill]]  ;;  %s9074_s7 = sld [smem:[#allocation9_spill]] }
  0x10   :  { %v5933_v0 = vld [vmem:[%s9071_s27 + $0x4] ss:$16 sps:$4 sm:$0xff]   ;;  %v5935_v1 = vld [vmem:[%s9071_s27 + $0xc] ss:$16 sps:$4 sm:$0xff]   ;;  %v5937_v3 = vld [vmem:[%s9071_s27] ss:$16 sps:$4 sm:$0xff]  }
  0x11   :  { %323 = vmatprep.subr.bf16.mxu0 %v5933_v0  ;;  %v5938_v4 = vld [vmem:[%s9071_s27 + $0x8] ss:$16 sps:$4 sm:$0xff]   ;;  %v81_v5 = vld [vmem:[%s9072_s25] sm:$0xf]  ;;  %364 = vmatprep.subr.bf16.mxu1 %v5935_v1  ;;  %v5941_v8 = vld [vmem:[%s9073_s1 + $0x4] ss:$16 sps:$4 sm:$0xff]  }
  0x12   :  { %v294_v6 = vpack.c.bf16 %v81_v5, %v81_v5  ;;  %v5939_v7 = vld [vmem:[%s9073_s1] ss:$16 sps:$4 sm:$0xff]   ;;  %324 = vmatpush1.bf16.msra.mxu0 %v5937_v3  ;;  %365 = vmatpush1.bf16.msra.mxu1 %v5938_v4  ;;  %v5944_v10 = vld [vmem:[%s9073_s1 + $0x204] ss:$16 sps:$4 sm:$0xff]   ;;  %v78_v55 = vld [vmem:[%s9074_s7 + $0x8] sm:$0xff]  ;;  %s9075_s25 = sld [smem:[#allocation15_spill]] }
  0x13   :  { %v5942_v9 = vld [vmem:[%s9073_s1 + $0x200] ss:$16 sps:$4 sm:$0xff]   ;;  %1388 = vmatprep.subr.bf16.mxu0 %v5941_v8  ;;  %v5947_v11 = vld [vmem:[%s9073_s1 + $0x24] ss:$16 sps:$4 sm:$0xff]   ;;  %1429 = vmatprep.subr.bf16.mxu1 %v5944_v10  ;;  %v86_v56 = vcombine.high %v78_v55, %v78_v55 }
  0x14   :  { %v5945_v12 = vld [vmem:[%s9073_s1 + $0x20] ss:$16 sps:$4 sm:$0xff]   ;;  %v5950_v13 = vld [vmem:[%s9073_s1 + $0x224] ss:$16 sps:$4 sm:$0xff]  }
  0x15   :  { %5175 = vmatmul.mubr.msk.bf16.vlgmr.msra.gmra.mrb[0].mxu0 %vm319_vm0, %v294_v6  ;;  %5176 = vmatmul.mubr.msk.bf16.vlgmr.msra.gmra.mrb[0].mxu1 %vm319_vm0, %v294_v6  ;;  %v5948_v14 = vld [vmem:[%s9073_s1 + $0x220] ss:$16 sps:$4 sm:$0xff]   ;;  %v5953_v15 = vld [vmem:[%s9073_s1 + $0x44] ss:$16 sps:$4 sm:$0xff]   ;;  %v7178_v61 = vpack.c.bf16 %v86_v56, %v86_v56  ;;  %v6090_v56 = vld [vmem:[%s9073_s1 + $0xec] ss:$16 sps:$4 sm:$0xff]  }
  0x16   :  { %1389 = vmatpush1.bf16.msra.mxu0 %v5939_v7  ;;  %1430 = vmatpush1.bf16.msra.mxu1 %v5942_v9  ;;  %v5956_v16 = vld [vmem:[%s9073_s1 + $0x244] ss:$16 sps:$4 sm:$0xff]   ;;  %v5951_v17 = vld [vmem:[%s9073_s1 + $0x40] ss:$16 sps:$4 sm:$0xff]  }
  0x17   :  { %1390 = vmatprep.subr.bf16.mxu0 %v5947_v11  ;;  %1431 = vmatprep.subr.bf16.mxu1 %v5950_v13  ;;  %v5954_v18 = vld [vmem:[%s9073_s1 + $0x240] ss:$16 sps:$4 sm:$0xff]   ;;  %v5959_v19 = vld [vmem:[%s9073_s1 + $0x64] ss:$16 sps:$4 sm:$0xff]  }
  0x18   :  { %v5962_v20 = vld [vmem:[%s9073_s1 + $0x264] ss:$16 sps:$4 sm:$0xff]   ;;  %v5957_v21 = vld [vmem:[%s9073_s1 + $0x60] ss:$16 sps:$4 sm:$0xff]   ;;  %1461 = vmatprep.mubr.bf16.mxu1 %v7178_v61 }
  0x19   :  { %v5960_v22 = vld [vmem:[%s9073_s1 + $0x260] ss:$16 sps:$4 sm:$0xff]   ;;  %v5965_v23 = vld [vmem:[%s9073_s1 + $0x84] ss:$16 sps:$4 sm:$0xff]  }
  0x1a   :  { %1391 = vmatpush1.bf16.msra.mxu0 %v5945_v12  ;;  %1432 = vmatpush1.bf16.msra.mxu1 %v5948_v14  ;;  %v5968_v24 = vld [vmem:[%s9073_s1 + $0x284] ss:$16 sps:$4 sm:$0xff]   ;;  %v5963_v25 = vld [vmem:[%s9073_s1 + $0x80] ss:$16 sps:$4 sm:$0xff]  }
  0x1b   :  { %1392 = vmatprep.subr.bf16.mxu0 %v5953_v15  ;;  %1433 = vmatprep.subr.bf16.mxu1 %v5956_v16  ;;  %v5966_v26 = vld [vmem:[%s9073_s1 + $0x280] ss:$16 sps:$4 sm:$0xff]   ;;  %v5971_v27 = vld [vmem:[%s9073_s1 + $0xa4] ss:$16 sps:$4 sm:$0xff]  }
  0x1c   :  { %v5974_v28 = vld [vmem:[%s9073_s1 + $0x2a4] ss:$16 sps:$4 sm:$0xff]   ;;  %v5969_v29 = vld [vmem:[%s9073_s1 + $0xa0] ss:$16 sps:$4 sm:$0xff]  }
  0x1d   :  { %v5972_v30 = vld [vmem:[%s9073_s1 + $0x2a0] ss:$16 sps:$4 sm:$0xff]   ;;  %v5977_v31 = vld [vmem:[%s9073_s1 + $0xc4] ss:$16 sps:$4 sm:$0xff]  }
  0x1e   :  { %1393 = vmatpush1.bf16.msra.mxu0 %v5951_v17  ;;  %1434 = vmatpush1.bf16.msra.mxu1 %v5954_v18  ;;  %v5980_v32 = vld [vmem:[%s9073_s1 + $0x2c4] ss:$16 sps:$4 sm:$0xff]   ;;  %v5975_v33 = vld [vmem:[%s9073_s1 + $0xc0] ss:$16 sps:$4 sm:$0xff]   ;;  %v7238_v18 = vpack.c.bf16 %v78_v55, %v78_v55 }
  0x1f   :  { %1394 = vmatprep.subr.bf16.mxu0 %v5959_v19  ;;  %1435 = vmatprep.subr.bf16.mxu1 %v5962_v20  ;;  %v5978_v34 = vld [vmem:[%s9073_s1 + $0x2c0] ss:$16 sps:$4 sm:$0xff]   ;;  %v5983_v35 = vld [vmem:[%s9073_s1 + $0xe4] ss:$16 sps:$4 sm:$0xff]  }
  0x20   :  { %v5986_v36 = vld [vmem:[%s9073_s1 + $0x2e4] ss:$16 sps:$4 sm:$0xff]   ;;  %v5981_v37 = vld [vmem:[%s9073_s1 + $0xe0] ss:$16 sps:$4 sm:$0xff]  }
  0x21   :  { %v5984_v38 = vld [vmem:[%s9073_s1 + $0x2e0] ss:$16 sps:$4 sm:$0xff]   ;;  %v5989_v39 = vld [vmem:[%s9073_s1 + $0x104] ss:$16 sps:$4 sm:$0xff]  }
  0x22   :  { %1395 = vmatpush1.bf16.msra.mxu0 %v5957_v21  ;;  %1436 = vmatpush1.bf16.msra.mxu1 %v5960_v22  ;;  %v5992_v40 = vld [vmem:[%s9073_s1 + $0x304] ss:$16 sps:$4 sm:$0xff]   ;;  %v5987_v41 = vld [vmem:[%s9073_s1 + $0x100] ss:$16 sps:$4 sm:$0xff]   ;;  %v6048_v21 = vld [vmem:[%s9073_s1 + $0xc] ss:$16 sps:$4 sm:$0xff]  }
  0x23   :  { %1396 = vmatprep.subr.bf16.mxu0 %v5965_v23  ;;  %1437 = vmatprep.subr.bf16.mxu1 %v5968_v24  ;;  %v5990_v42 = vld [vmem:[%s9073_s1 + $0x300] ss:$16 sps:$4 sm:$0xff]   ;;  %v5995_v43 = vld [vmem:[%s9073_s1 + $0x124] ss:$16 sps:$4 sm:$0xff]   ;;  %v80_v24 = vld [vmem:[%s9074_s7 + $0x18] sm:$0xf] }
  0x24   :  { %v5998_v44 = vld [vmem:[%s9073_s1 + $0x324] ss:$16 sps:$4 sm:$0xff]   ;;  %v5993_v45 = vld [vmem:[%s9073_s1 + $0x120] ss:$16 sps:$4 sm:$0xff]  }
  0x25   :  { %v5996_v46 = vld [vmem:[%s9073_s1 + $0x320] ss:$16 sps:$4 sm:$0xff]   ;;  %v6001_v47 = vld [vmem:[%s9073_s1 + $0x144] ss:$16 sps:$4 sm:$0xff]  }
  0x26   :  { %1397 = vmatpush1.bf16.msra.mxu0 %v5963_v25  ;;  %1438 = vmatpush1.bf16.msra.mxu1 %v5966_v26  ;;  %v6004_v48 = vld [vmem:[%s9073_s1 + $0x344] ss:$16 sps:$4 sm:$0xff]   ;;  %v5999_v49 = vld [vmem:[%s9073_s1 + $0x140] ss:$16 sps:$4 sm:$0xff]   ;;  %v6046_v25 = vld [vmem:[%s9073_s1 + $0x8] ss:$16 sps:$4 sm:$0xff]  }
  0x27   :  { %1398 = vmatprep.subr.bf16.mxu0 %v5971_v27  ;;  %1439 = vmatprep.subr.bf16.mxu1 %v5974_v28  ;;  %v6002_v50 = vld [vmem:[%s9073_s1 + $0x340] ss:$16 sps:$4 sm:$0xff]   ;;  %v6007_v51 = vld [vmem:[%s9073_s1 + $0x164] ss:$16 sps:$4 sm:$0xff]   ;;  %v7267_v27 = vpack.c.bf16 %v80_v24, %v80_v24  ;;  %v6133_v24 = vld [vmem:[%s9073_s1 + $0x1cc] ss:$16 sps:$4 sm:$0xff]  }
  0x28   :  { %v6010_v52 = vld [vmem:[%s9073_s1 + $0x364] ss:$16 sps:$4 sm:$0xff]   ;;  %v6005_v57 = vld [vmem:[%s9073_s1 + $0x160] ss:$16 sps:$4 sm:$0xff]  }
  0x29   :  { %v77_v53 = vld [vmem:[%s9074_s7] sm:$0xff] }
  0x2a   :  { %1399 = vmatpush1.bf16.msra.mxu0 %v5969_v29  ;;  %1440 = vmatpush1.bf16.msra.mxu1 %v5972_v30  ;;  %v85_v54 = vcombine.high %v77_v53, %v77_v53  ;;  %v6008_v58 = vld [vmem:[%s9073_s1 + $0x360] ss:$16 sps:$4 sm:$0xff]   ;;  %v6013_v60 = vld [vmem:[%s9073_s1 + $0x184] ss:$16 sps:$4 sm:$0xff]   ;;  %v7233_v16 = vpack.c.bf16 %v77_v53, %v77_v53  ;;  %v6054_v29 = vld [vmem:[%s9073_s1 + $0x2c] ss:$16 sps:$4 sm:$0xff]  }
  0x2b   :  { %1400 = vmatprep.subr.bf16.mxu0 %v5977_v31  ;;  %1441 = vmatprep.subr.bf16.mxu1 %v5980_v32  ;;  %v6016_v62 = vld [vmem:[%s9073_s1 + $0x384] ss:$16 sps:$4 sm:$0xff]   ;;  %v6011_v63 = vld [vmem:[%s9073_s1 + $0x180] ss:$16 sps:$4 sm:$0xff]   ;;  %v6052_v30 = vld [vmem:[%s9073_s1 + $0x28] ss:$16 sps:$4 sm:$0xff]  }
  0x2c   :  { %v7173_v59 = vpack.c.bf16 %v85_v54, %v85_v54  ;;  %v6014_v0 = vld [vmem:[%s9073_s1 + $0x380] ss:$16 sps:$4 sm:$0xff]   ;;  %v6019_v1 = vld [vmem:[%s9073_s1 + $0x1a4] ss:$16 sps:$4 sm:$0xff]   ;;  %v6082_v54 = vld [vmem:[%s9073_s1 + $0xc8] ss:$16 sps:$4 sm:$0xff]  }
  0x2d   :  { %v6022_v3 = vld [vmem:[%s9073_s1 + $0x3a4] ss:$16 sps:$4 sm:$0xff]   ;;  %v6017_v4 = vld [vmem:[%s9073_s1 + $0x1a0] ss:$16 sps:$4 sm:$0xff]  }
  0x2e   :  { %1401 = vmatpush1.bf16.msra.mxu0 %v5975_v33  ;;  %1442 = vmatpush1.bf16.msra.mxu1 %v5978_v34  ;;  %v6020_v5 = vld [vmem:[%s9073_s1 + $0x3a0] ss:$16 sps:$4 sm:$0xff]   ;;  %v6025_v6 = vld [vmem:[%s9073_s1 + $0x1c4] ss:$16 sps:$4 sm:$0xff]   ;;  %v6060_v33 = vld [vmem:[%s9073_s1 + $0x4c] ss:$16 sps:$4 sm:$0xff]  }
  0x2f   :  { %1402 = vmatprep.subr.bf16.mxu0 %v5983_v35  ;;  %1443 = vmatprep.subr.bf16.mxu1 %v5986_v36  ;;  %v6028_v7 = vld [vmem:[%s9073_s1 + $0x3c4] ss:$16 sps:$4 sm:$0xff]   ;;  %v6023_v8 = vld [vmem:[%s9073_s1 + $0x1c0] ss:$16 sps:$4 sm:$0xff]   ;;  %v6058_v34 = vld [vmem:[%s9073_s1 + $0x48] ss:$16 sps:$4 sm:$0xff]  }
  0x30   :  { %1420 = vmatprep.mubr.bf16.mxu0 %v7173_v59  ;;  %v6026_v9 = vld [vmem:[%s9073_s1 + $0x3c0] ss:$16 sps:$4 sm:$0xff]   ;;  %v6031_v10 = vld [vmem:[%s9073_s1 + $0x1e4] ss:$16 sps:$4 sm:$0xff]  }
  0x31   :  { %v6034_v11 = vld [vmem:[%s9073_s1 + $0x3e4] ss:$16 sps:$4 sm:$0xff]   ;;  %v6029_v12 = vld [vmem:[%s9073_s1 + $0x1e0] ss:$16 sps:$4 sm:$0xff]  }
  0x32   :  { %1403 = vmatpush1.bf16.msra.mxu0 %v5981_v37  ;;  %1444 = vmatpush1.bf16.msra.mxu1 %v5984_v38  ;;  %v6032_v13 = vld [vmem:[%s9073_s1 + $0x3e0] ss:$16 sps:$4 sm:$0xff]   ;;  %v6039_v14 = vld [vmem:[%s9073_s1 + $0x404] ss:$16 sps:$4 sm:$0xff]   ;;  %v6066_v37 = vld [vmem:[%s9073_s1 + $0x6c] ss:$16 sps:$4 sm:$0xff]  }
  0x33   :  { %1404 = vmatprep.subr.bf16.mxu0 %v5989_v39  ;;  %1445 = vmatprep.subr.bf16.mxu1 %v5992_v40  ;;  %v6042_v15 = vld [vmem:[%s9073_s1 + $0x604] ss:$16 sps:$4 sm:$0xff]   ;;  %v6037_v17 = vld [vmem:[%s9073_s1 + $0x400] ss:$16 sps:$4 sm:$0xff]   ;;  %v6064_v40 = vld [vmem:[%s9073_s1 + $0x68] ss:$16 sps:$4 sm:$0xff]  }
  0x34   :  { %v6040_v19 = vld [vmem:[%s9073_s1 + $0x600] ss:$16 sps:$4 sm:$0xff]   ;;  %v6045_v20 = vld [vmem:[%s9073_s1 + $0x424] ss:$16 sps:$4 sm:$0xff]  }
  0x35   :  { %v6043_v22 = vld [vmem:[%s9073_s1 + $0x420] ss:$16 sps:$4 sm:$0xff]   ;;  %v6051_v23 = vld [vmem:[%s9073_s1 + $0x444] ss:$16 sps:$4 sm:$0xff]  }
  0x36   :  { %1405 = vmatpush1.bf16.msra.mxu0 %v5987_v41  ;;  %1446 = vmatpush1.bf16.msra.mxu1 %v5990_v42  ;;  %v6049_v26 = vld [vmem:[%s9073_s1 + $0x440] ss:$16 sps:$4 sm:$0xff]   ;;  %v6057_v28 = vld [vmem:[%s9073_s1 + $0x464] ss:$16 sps:$4 sm:$0xff]  }
  0x37   :  { %1406 = vmatprep.subr.bf16.mxu0 %v5995_v43  ;;  %1447 = vmatprep.subr.bf16.mxu1 %v5998_v44  ;;  %v6055_v31 = vld [vmem:[%s9073_s1 + $0x460] ss:$16 sps:$4 sm:$0xff]   ;;  %v6063_v32 = vld [vmem:[%s9073_s1 + $0x484] ss:$16 sps:$4 sm:$0xff]   ;;  %v6072_v43 = vld [vmem:[%s9073_s1 + $0x8c] ss:$16 sps:$4 sm:$0xff]  }
  0x38   :  { %v6061_v35 = vld [vmem:[%s9073_s1 + $0x480] ss:$16 sps:$4 sm:$0xff]   ;;  %v6069_v36 = vld [vmem:[%s9073_s1 + $0x4a4] ss:$16 sps:$4 sm:$0xff]  }
  0x39   :  { %v6067_v38 = vld [vmem:[%s9073_s1 + $0x4a0] ss:$16 sps:$4 sm:$0xff]   ;;  %v6075_v41 = vld [vmem:[%s9073_s1 + $0x4c4] ss:$16 sps:$4 sm:$0xff]  }
  0x3a   :  { %1407 = vmatpush1.bf16.msra.mxu0 %v5993_v45  ;;  %1448 = vmatpush1.bf16.msra.mxu1 %v5996_v46  ;;  %v7308_v39 = vld [vmem:[%s9074_s7 + $0x10] sm:$0xff]  ;;  %v6070_v46 = vld [vmem:[%s9073_s1 + $0x88] ss:$16 sps:$4 sm:$0xff]  }
  0x3b   :  { %1408 = vmatprep.subr.bf16.mxu0 %v6001_v47  ;;  %1449 = vmatprep.subr.bf16.mxu1 %v6004_v48  ;;  %v87_v42 = vcombine.high %v7308_v39, %v7308_v39  ;;  %v6073_v45 = vld [vmem:[%s9073_s1 + $0x4c0] ss:$16 sps:$4 sm:$0xff]   ;;  %v6081_v47 = vld [vmem:[%s9073_s1 + $0x4e4] ss:$16 sps:$4 sm:$0xff]   ;;  %v6078_v48 = vld [vmem:[%s9073_s1 + $0xac] ss:$16 sps:$4 sm:$0xff]  }
  0x3c   :  { %v6085_v53 = vld [vmem:[%s9073_s1 + $0x500] ss:$16 sps:$4 sm:$0xff]   ;;  %v6093_v55 = vld [vmem:[%s9073_s1 + $0x524] ss:$16 sps:$4 sm:$0xff]  }
  0x3d   :  { %v7321_v44 = vpack.c.bf16 %v87_v42, %v87_v42  ;;  %v6158_v42 = vld [vmem:[%s9073_s1 + $0x288] ss:$16 sps:$4 sm:$0xff]  }
  0x3e   :  { %1409 = vmatpush1.bf16.msra.mxu0 %v5999_v49  ;;  %1450 = vmatpush1.bf16.msra.mxu1 %v6002_v50  ;;  %v6079_v49 = vld [vmem:[%s9073_s1 + $0x4e0] ss:$16 sps:$4 sm:$0xff]   ;;  %v6076_v50 = vld [vmem:[%s9073_s1 + $0xa8] ss:$16 sps:$4 sm:$0xff]  }
  0x3f   :  { %1410 = vmatprep.subr.bf16.mxu0 %v6007_v51  ;;  %1451 = vmatprep.subr.bf16.mxu1 %v6010_v52  ;;  %v6087_v51 = vld [vmem:[%s9073_s1 + $0x504] ss:$16 sps:$4 sm:$0xff]   ;;  %v6084_v52 = vld [vmem:[%s9073_s1 + $0xcc] ss:$16 sps:$4 sm:$0xff]  }
  0x42   :  { %1411 = vmatpush1.bf16.msra.mxu0 %v6005_v57  ;;  %1452 = vmatpush1.bf16.msra.mxu1 %v6008_v58  ;;  %v6091_v57 = vld [vmem:[%s9073_s1 + $0x520] ss:$16 sps:$4 sm:$0xff]   ;;  %v6088_v58 = vld [vmem:[%s9073_s1 + $0xe8] ss:$16 sps:$4 sm:$0xff]  }
  0x43   :  { %1412 = vmatprep.subr.bf16.mxu0 %v6013_v60  ;;  %1453 = vmatprep.subr.bf16.mxu1 %v6016_v62  ;;  %v6096_v60 = vld [vmem:[%s9073_s1 + $0x10c] ss:$16 sps:$4 sm:$0xff]   ;;  %v6097_v62 = vld [vmem:[%s9073_s1 + $0x540] ss:$16 sps:$4 sm:$0xff]  }
  0x46   :  { %1413 = vmatpush1.bf16.msra.mxu0 %v6011_v63  ;;  %1454 = vmatpush1.bf16.msra.mxu1 %v6014_v0  ;;  %v6094_v63 = vld [vmem:[%s9073_s1 + $0x108] ss:$16 sps:$4 sm:$0xff]   ;;  %v6105_v0 = vld [vmem:[%s9073_s1 + $0x564] ss:$16 sps:$4 sm:$0xff]  }
  0x47   :  { %1414 = vmatprep.subr.bf16.mxu0 %v6019_v1  ;;  %1455 = vmatprep.subr.bf16.mxu1 %v6022_v3  ;;  %v6102_v1 = vld [vmem:[%s9073_s1 + $0x12c] ss:$16 sps:$4 sm:$0xff]   ;;  %v6103_v3 = vld [vmem:[%s9073_s1 + $0x560] ss:$16 sps:$4 sm:$0xff]  }
  0x4a   :  { %1415 = vmatpush1.bf16.msra.mxu0 %v6017_v4  ;;  %1456 = vmatpush1.bf16.msra.mxu1 %v6020_v5  ;;  %v6100_v4 = vld [vmem:[%s9073_s1 + $0x128] ss:$16 sps:$4 sm:$0xff]   ;;  %v6111_v5 = vld [vmem:[%s9073_s1 + $0x584] ss:$16 sps:$4 sm:$0xff]  }
  0x4b   :  { %1416 = vmatprep.subr.bf16.mxu0 %v6025_v6  ;;  %1457 = vmatprep.subr.bf16.mxu1 %v6028_v7  ;;  %v6108_v6 = vld [vmem:[%s9073_s1 + $0x14c] ss:$16 sps:$4 sm:$0xff]   ;;  %v6109_v7 = vld [vmem:[%s9073_s1 + $0x580] ss:$16 sps:$4 sm:$0xff]  }
  0x4e   :  { %1417 = vmatpush1.bf16.msra.mxu0 %v6023_v8  ;;  %1458 = vmatpush1.bf16.msra.mxu1 %v6026_v9  ;;  %v6106_v8 = vld [vmem:[%s9073_s1 + $0x148] ss:$16 sps:$4 sm:$0xff]   ;;  %v6117_v9 = vld [vmem:[%s9073_s1 + $0x5a4] ss:$16 sps:$4 sm:$0xff]  }
  0x4f   :  { %1418 = vmatprep.subr.bf16.mxu0 %v6031_v10  ;;  %1459 = vmatprep.subr.bf16.mxu1 %v6034_v11  ;;  %v6114_v10 = vld [vmem:[%s9073_s1 + $0x16c] ss:$16 sps:$4 sm:$0xff]   ;;  %v6115_v11 = vld [vmem:[%s9073_s1 + $0x5a0] ss:$16 sps:$4 sm:$0xff]  }
  0x52   :  { %1419 = vmatpush1.bf16.msra.mxu0 %v6029_v12  ;;  %1460 = vmatpush1.bf16.msra.mxu1 %v6032_v13  ;;  %v6112_v12 = vld [vmem:[%s9073_s1 + $0x168] ss:$16 sps:$4 sm:$0xff]   ;;  %v6123_v13 = vld [vmem:[%s9073_s1 + $0x5c4] ss:$16 sps:$4 sm:$0xff]  }
  0x53   :  { %1470 = vmatprep.subr.bf16.mxu0 %v6039_v14  ;;  %1511 = vmatprep.subr.bf16.mxu1 %v6042_v15  ;;  %v6120_v14 = vld [vmem:[%s9073_s1 + $0x18c] ss:$16 sps:$4 sm:$0xff]   ;;  %v6121_v15 = vld [vmem:[%s9073_s1 + $0x5c0] ss:$16 sps:$4 sm:$0xff]  }
  0x55   :  { %1421 = vmatmul.mubr.bf16.vlgmr.msra.gmra.mrb[4].mxu0 %v7233_v16  ;;  %1462 = vmatmul.mubr.bf16.vlgmr.msra.gmra.mrb[4].mxu1 %v7238_v18 }
  0x56   :  { %1471 = vmatpush1.bf16.msra.mxu0 %v6037_v17  ;;  %1512 = vmatpush1.bf16.msra.mxu1 %v6040_v19  ;;  %v6118_v17 = vld [vmem:[%s9073_s1 + $0x188] ss:$16 sps:$4 sm:$0xff]   ;;  %v6129_v19 = vld [vmem:[%s9073_s1 + $0x5e4] ss:$16 sps:$4 sm:$0xff]  }
  0x57   :  { %1472 = vmatprep.subr.bf16.mxu0 %v6045_v20  ;;  %1543 = vmatprep.mubr.bf16.mxu1 %v6872_v2  ;;  %v6126_v20 = vld [vmem:[%s9073_s1 + $0x1ac] ss:$16 sps:$4 sm:$0xff]  }
  0x58   :  { %1552 = vmatprep.subr.bf16.mxu1 %v6048_v21  ;;  %1502 = vmatprep.mubr.bf16.mxu0 %v7321_v44  ;;  %v6127_v21 = vld [vmem:[%s9073_s1 + $0x5e0] ss:$16 sps:$4 sm:$0xff]  }
  0x5a   :  { %1473 = vmatpush1.bf16.msra.mxu0 %v6043_v22  ;;  %v6124_v22 = vld [vmem:[%s9073_s1 + $0x1a8] ss:$16 sps:$4 sm:$0xff]  }
  0x5b   :  { %1474 = vmatprep.subr.bf16.mxu0 %v6051_v23  ;;  %v6136_v23 = vld [vmem:[%s9073_s1 + $0x20c] ss:$16 sps:$4 sm:$0xff]  }
  0x5d   :  { %5373 = vmatmul.mubr.msk.bf16.vlgmr.msra.gmra.mrb[8].mxu1 %vm319_vm0, %v7267_v27 }
  0x5e   :  { %1475 = vmatpush1.bf16.msra.mxu0 %v6049_v26  ;;  %1553 = vmatpush1.bf16.msra.mxu1 %v6046_v25  ;;  %v7446_v25 = vpack.c.bf16 %v7308_v39, %v7308_v39  ;;  %v6134_v26 = vld [vmem:[%s9073_s1 + $0x208] ss:$16 sps:$4 sm:$0xff]  }
  0x5f   :  { %1476 = vmatprep.subr.bf16.mxu0 %v6057_v28  ;;  %1554 = vmatprep.subr.bf16.mxu1 %v6054_v29  ;;  %v6131_v28 = vld [vmem:[%s9073_s1 + $0x1c8] ss:$16 sps:$4 sm:$0xff]   ;;  %v6142_v29 = vld [vmem:[%s9073_s1 + $0x22c] ss:$16 sps:$4 sm:$0xff]  }
  0x60   :  { %1584 = vmatprep.mubr.bf16.mxu1 %v7173_v59  ;;  %v6099_v59 = vld [vmem:[%s9073_s1 + $0x544] ss:$16 sps:$4 sm:$0xff]   ;;  %v6149_v39 = vld [vmem:[%s9073_s1 + $0x428] ss:$16 sps:$4 sm:$0xff]  }
  0x62   :  { %1477 = vmatpush1.bf16.msra.mxu0 %v6055_v31  ;;  %1555 = vmatpush1.bf16.msra.mxu1 %v6052_v30  ;;  %v6139_v30 = vld [vmem:[%s9073_s1 + $0x1ec] ss:$16 sps:$4 sm:$0xff]   ;;  %v6140_v31 = vld [vmem:[%s9073_s1 + $0x228] ss:$16 sps:$4 sm:$0xff]  }
  0x63   :  { %1478 = vmatprep.subr.bf16.mxu0 %v6063_v32  ;;  %1556 = vmatprep.subr.bf16.mxu1 %v6060_v33  ;;  %v6137_v32 = vld [vmem:[%s9073_s1 + $0x1e8] ss:$16 sps:$4 sm:$0xff]   ;;  %v6148_v33 = vld [vmem:[%s9073_s1 + $0x24c] ss:$16 sps:$4 sm:$0xff]  }
  0x66   :  { %1479 = vmatpush1.bf16.msra.mxu0 %v6061_v35  ;;  %1557 = vmatpush1.bf16.msra.mxu1 %v6058_v34  ;;  %v6145_v34 = vld [vmem:[%s9073_s1 + $0x40c] ss:$16 sps:$4 sm:$0xff]   ;;  %v6146_v35 = vld [vmem:[%s9073_s1 + $0x248] ss:$16 sps:$4 sm:$0xff]  }
  0x67   :  { %1480 = vmatprep.subr.bf16.mxu0 %v6069_v36  ;;  %1558 = vmatprep.subr.bf16.mxu1 %v6066_v37  ;;  %v6143_v36 = vld [vmem:[%s9073_s1 + $0x408] ss:$16 sps:$4 sm:$0xff]   ;;  %v6154_v37 = vld [vmem:[%s9073_s1 + $0x26c] ss:$16 sps:$4 sm:$0xff]  }
  0x6a   :  { %1481 = vmatpush1.bf16.msra.mxu0 %v6067_v38  ;;  %1559 = vmatpush1.bf16.msra.mxu1 %v6064_v40  ;;  %v6152_v38 = vld [vmem:[%s9073_s1 + $0x268] ss:$16 sps:$4 sm:$0xff]   ;;  %v6160_v40 = vld [vmem:[%s9073_s1 + $0x28c] ss:$16 sps:$4 sm:$0xff]  }
  0x6b   :  { %1482 = vmatprep.subr.bf16.mxu0 %v6075_v41  ;;  %1560 = vmatprep.subr.bf16.mxu1 %v6072_v43  ;;  %v6157_v41 = vld [vmem:[%s9073_s1 + $0x44c] ss:$16 sps:$4 sm:$0xff]   ;;  %v6155_v43 = vld [vmem:[%s9073_s1 + $0x448] ss:$16 sps:$4 sm:$0xff]  }
  0x6e   :  { %1483 = vmatpush1.bf16.msra.mxu0 %v6073_v45  ;;  %1561 = vmatpush1.bf16.msra.mxu1 %v6070_v46  ;;  %v6163_v45 = vld [vmem:[%s9073_s1 + $0x46c] ss:$16 sps:$4 sm:$0xff]   ;;  %v6161_v46 = vld [vmem:[%s9073_s1 + $0x468] ss:$16 sps:$4 sm:$0xff]  }
  0x6f   :  { %1484 = vmatprep.subr.bf16.mxu0 %v6081_v47  ;;  %1562 = vmatprep.subr.bf16.mxu1 %v6078_v48  ;;  %v6172_v47 = vld [vmem:[%s9073_s1 + $0x2cc] ss:$16 sps:$4 sm:$0xff]  }
  0x70   :  { %v6169_v48 = vld [vmem:[%s9073_s1 + $0x48c] ss:$16 sps:$4 sm:$0xff]  }
  0x72   :  { %1485 = vmatpush1.bf16.msra.mxu0 %v6079_v49  ;;  %1563 = vmatpush1.bf16.msra.mxu1 %v6076_v50  ;;  %v6170_v49 = vld [vmem:[%s9073_s1 + $0x2c8] ss:$16 sps:$4 sm:$0xff]  }
  0x73   :  { %1486 = vmatprep.subr.bf16.mxu0 %v6087_v51  ;;  %1564 = vmatprep.subr.bf16.mxu1 %v6084_v52  ;;  %v6167_v50 = vld [vmem:[%s9073_s1 + $0x488] ss:$16 sps:$4 sm:$0xff]   ;;  %v6178_v51 = vld [vmem:[%s9073_s1 + $0x2ec] ss:$16 sps:$4 sm:$0xff]  }
  0x74   :  { %v6175_v52 = vld [vmem:[%s9073_s1 + $0x4ac] ss:$16 sps:$4 sm:$0xff]  }
  0x76   :  { %1487 = vmatpush1.bf16.msra.mxu0 %v6085_v53  ;;  %1565 = vmatpush1.bf16.msra.mxu1 %v6082_v54  ;;  %v6176_v53 = vld [vmem:[%s9073_s1 + $0x2e8] ss:$16 sps:$4 sm:$0xff]  }
  0x77   :  { %1488 = vmatprep.subr.bf16.mxu0 %v6093_v55  ;;  %1566 = vmatprep.subr.bf16.mxu1 %v6090_v56  ;;  %v6173_v54 = vld [vmem:[%s9073_s1 + $0x4a8] ss:$16 sps:$4 sm:$0xff]   ;;  %v6184_v55 = vld [vmem:[%s9073_s1 + $0x30c] ss:$16 sps:$4 sm:$0xff]  }
  0x78   :  { %v6181_v56 = vld [vmem:[%s9073_s1 + $0x4cc] ss:$16 sps:$4 sm:$0xff]  }
  0x7a   :  { %1489 = vmatpush1.bf16.msra.mxu0 %v6091_v57  ;;  %1567 = vmatpush1.bf16.msra.mxu1 %v6088_v58  ;;  %v6182_v57 = vld [vmem:[%s9073_s1 + $0x308] ss:$16 sps:$4 sm:$0xff]  }
  0x7b   :  { %1490 = vmatprep.subr.bf16.mxu0 %v6099_v59  ;;  %1568 = vmatprep.subr.bf16.mxu1 %v6096_v60  ;;  %v6179_v58 = vld [vmem:[%s9073_s1 + $0x4c8] ss:$16 sps:$4 sm:$0xff]   ;;  %v6190_v59 = vld [vmem:[%s9073_s1 + $0x32c] ss:$16 sps:$4 sm:$0xff]  }
  0x7c   :  { %v6187_v60 = vld [vmem:[%s9073_s1 + $0x4ec] ss:$16 sps:$4 sm:$0xff]  }
  0x7e   :  { %1491 = vmatpush1.bf16.msra.mxu0 %v6097_v62  ;;  %1569 = vmatpush1.bf16.msra.mxu1 %v6094_v63  ;;  %v6188_v62 = vld [vmem:[%s9073_s1 + $0x328] ss:$16 sps:$4 sm:$0xff]  }
  0x7f   :  { %1492 = vmatprep.subr.bf16.mxu0 %v6105_v0  ;;  %1570 = vmatprep.subr.bf16.mxu1 %v6102_v1  ;;  %v6185_v63 = vld [vmem:[%s9073_s1 + $0x4e8] ss:$16 sps:$4 sm:$0xff]   ;;  %v6196_v0 = vld [vmem:[%s9073_s1 + $0x34c] ss:$16 sps:$4 sm:$0xff]  }
  0x80   :  { %v6193_v1 = vld [vmem:[%s9073_s1 + $0x50c] ss:$16 sps:$4 sm:$0xff]  }
  0x82   :  { %1493 = vmatpush1.bf16.msra.mxu0 %v6103_v3  ;;  %1571 = vmatpush1.bf16.msra.mxu1 %v6100_v4  ;;  %v6194_v3 = vld [vmem:[%s9073_s1 + $0x348] ss:$16 sps:$4 sm:$0xff]  }
  0x83   :  { %1494 = vmatprep.subr.bf16.mxu0 %v6111_v5  ;;  %1572 = vmatprep.subr.bf16.mxu1 %v6108_v6  ;;  %v6191_v4 = vld [vmem:[%s9073_s1 + $0x508] ss:$16 sps:$4 sm:$0xff]   ;;  %v6202_v5 = vld [vmem:[%s9073_s1 + $0x36c] ss:$16 sps:$4 sm:$0xff]  }
  0x84   :  { %v6199_v6 = vld [vmem:[%s9073_s1 + $0x52c] ss:$16 sps:$4 sm:$0xff]  }
  0x86   :  { %1495 = vmatpush1.bf16.msra.mxu0 %v6109_v7  ;;  %1573 = vmatpush1.bf16.msra.mxu1 %v6106_v8  ;;  %v6200_v7 = vld [vmem:[%s9073_s1 + $0x368] ss:$16 sps:$4 sm:$0xff]  }
  0x87   :  { %1496 = vmatprep.subr.bf16.mxu0 %v6117_v9  ;;  %1574 = vmatprep.subr.bf16.mxu1 %v6114_v10  ;;  %v6197_v8 = vld [vmem:[%s9073_s1 + $0x528] ss:$16 sps:$4 sm:$0xff]   ;;  %v6208_v9 = vld [vmem:[%s9073_s1 + $0x38c] ss:$16 sps:$4 sm:$0xff]  }
  0x88   :  { %v6205_v10 = vld [vmem:[%s9073_s1 + $0x54c] ss:$16 sps:$4 sm:$0xff]  }
  0x8a   :  { %1497 = vmatpush1.bf16.msra.mxu0 %v6115_v11  ;;  %1575 = vmatpush1.bf16.msra.mxu1 %v6112_v12  ;;  %v6206_v11 = vld [vmem:[%s9073_s1 + $0x388] ss:$16 sps:$4 sm:$0xff]  }
  0x8b   :  { %1498 = vmatprep.subr.bf16.mxu0 %v6123_v13  ;;  %1576 = vmatprep.subr.bf16.mxu1 %v6120_v14  ;;  %v6203_v12 = vld [vmem:[%s9073_s1 + $0x548] ss:$16 sps:$4 sm:$0xff]   ;;  %v6214_v13 = vld [vmem:[%s9073_s1 + $0x3ac] ss:$16 sps:$4 sm:$0xff]  }
  0x8c   :  { %v6211_v14 = vld [vmem:[%s9073_s1 + $0x56c] ss:$16 sps:$4 sm:$0xff]  }
  0x8e   :  { %1499 = vmatpush1.bf16.msra.mxu0 %v6121_v15  ;;  %1577 = vmatpush1.bf16.msra.mxu1 %v6118_v17  ;;  %v6212_v15 = vld [vmem:[%s9073_s1 + $0x3a8] ss:$16 sps:$4 sm:$0xff]  }
  0x8f   :  { %1500 = vmatprep.subr.bf16.mxu0 %v6129_v19  ;;  %1578 = vmatprep.subr.bf16.mxu1 %v6126_v20  ;;  %v6209_v17 = vld [vmem:[%s9073_s1 + $0x568] ss:$16 sps:$4 sm:$0xff]   ;;  %v6220_v19 = vld [vmem:[%s9073_s1 + $0x3cc] ss:$16 sps:$4 sm:$0xff]  }
  0x90   :  { %v6217_v20 = vld [vmem:[%s9073_s1 + $0x58c] ss:$16 sps:$4 sm:$0xff]  }
  0x92   :  { %1501 = vmatpush1.bf16.msra.mxu0 %v6127_v21  ;;  %1579 = vmatpush1.bf16.msra.mxu1 %v6124_v22  ;;  %v6218_v21 = vld [vmem:[%s9073_s1 + $0x3c8] ss:$16 sps:$4 sm:$0xff]  }
  0x93   :  { %1593 = vmatprep.subr.bf16.mxu0 %v6136_v23  ;;  %1580 = vmatprep.subr.bf16.mxu1 %v6133_v24  ;;  %v6215_v22 = vld [vmem:[%s9073_s1 + $0x588] ss:$16 sps:$4 sm:$0xff]   ;;  %v6226_v23 = vld [vmem:[%s9073_s1 + $0x3ec] ss:$16 sps:$4 sm:$0xff]  }
  0x94   :  { %v6223_v24 = vld [vmem:[%s9073_s1 + $0x5ac] ss:$16 sps:$4 sm:$0xff]  }
  0x95   :  { %1503 = vmatmul.mubr.bf16.vlgmr.msra.gmra.mrb[8].mxu0 %v7446_v25 }
  0x96   :  { %1594 = vmatpush1.bf16.msra.mxu0 %v6134_v26  ;;  %1625 = vmatprep.mubr.bf16.mxu0 %v7178_v61  ;;  %v6151_v61 = vld [vmem:[%s9073_s1 + $0x42c] ss:$16 sps:$4 sm:$0xff]   ;;  %v6224_v26 = vld [vmem:[%s9073_s1 + $0x3e8] ss:$16 sps:$4 sm:$0xff]  }
  0x97   :  { %1581 = vmatpush1.bf16.msra.mxu1 %v6131_v28  ;;  %1595 = vmatprep.subr.bf16.mxu0 %v6142_v29  ;;  %v6221_v28 = vld [vmem:[%s9073_s1 + $0x5a8] ss:$16 sps:$4 sm:$0xff]   ;;  %v6232_v29 = vld [vmem:[%s9073_s1 + $0x60c] ss:$16 sps:$4 sm:$0xff]  }
  0x98   :  { %1582 = vmatprep.subr.bf16.mxu1 %v6139_v30  ;;  %v6229_v30 = vld [vmem:[%s9073_s1 + $0x5cc] ss:$16 sps:$4 sm:$0xff]  }
  0x9a   :  { %1596 = vmatpush1.bf16.msra.mxu0 %v6140_v31  ;;  %v6230_v31 = vld [vmem:[%s9073_s1 + $0x608] ss:$16 sps:$4 sm:$0xff]  }
  0x9b   :  { %1583 = vmatpush1.bf16.msra.mxu1 %v6137_v32  ;;  %1597 = vmatprep.subr.bf16.mxu0 %v6148_v33  ;;  %v6227_v32 = vld [vmem:[%s9073_s1 + $0x5c8] ss:$16 sps:$4 sm:$0xff]   ;;  %v6238_v33 = vld [vmem:[%s9075_s25 + $0x4] ss:$8 sps:$4 sm:$0xff]  }
  0x9c   :  { %1634 = vmatprep.subr.bf16.mxu1 %v6145_v34  ;;  %v6235_v34 = vld [vmem:[%s9073_s1 + $0x5ec] ss:$16 sps:$4 sm:$0xff]  }
  0x9e   :  { %1585 = vmatmul.mubr.bf16.vlgmr.msra.gmra.mrb[12].mxu1 %v7233_v16  ;;  %1598 = vmatpush1.bf16.msra.mxu0 %v6146_v35  ;;  %v6166_v16 = vld [vmem:[%s9073_s1 + $0x2ac] ss:$16 sps:$4 sm:$0xff]   ;;  %v6233_v35 = vld [vmem:[%s9073_s1 + $0x5e8] ss:$16 sps:$4 sm:$0xff]  }
  0x9f   :  { %1635 = vmatpush1.bf16.msra.mxu1 %v6143_v36  ;;  %1599 = vmatprep.subr.bf16.mxu0 %v6154_v37  ;;  %v6236_v36 = vld [vmem:[%s9075_s25] ss:$8 sps:$4 sm:$0xff]   ;;  %v6241_v37 = vld [vmem:[%s9075_s25 + $0x14] ss:$8 sps:$4 sm:$0xff]  }
  0xa0   :  { %1636 = vmatprep.subr.bf16.mxu1 %v6151_v61  ;;  %1666 = vmatprep.mubr.bf16.mxu1 %v7321_v44  ;;  %v6164_v44 = vld [vmem:[%s9073_s1 + $0x2a8] ss:$16 sps:$4 sm:$0xff]   ;;  %v6244_v61 = vld [vmem:[%s9075_s25 + $0x24] ss:$8 sps:$4 sm:$0xff]  }
  0xa2   :  { %1600 = vmatpush1.bf16.msra.mxu0 %v6152_v38  ;;  %v6242_v38 = vld [vmem:[%s9075_s25 + $0x20] ss:$8 sps:$4 sm:$0xff]  }
  0xa3   :  { %1637 = vmatpush1.bf16.msra.mxu1 %v6149_v39  ;;  %1601 = vmatprep.subr.bf16.mxu0 %v6160_v40  ;;  %v6247_v39 = vld [vmem:[%s9075_s25 + $0x34] ss:$8 sps:$4 sm:$0xff]  }
  0xa4   :  { %1638 = vmatprep.subr.bf16.mxu1 %v6157_v41 }
  0xa6   :  { %1602 = vmatpush1.bf16.msra.mxu0 %v6158_v42 }
  0xa7   :  { %1639 = vmatpush1.bf16.msra.mxu1 %v6155_v43  ;;  %1603 = vmatprep.subr.bf16.mxu0 %v6166_v16 }
  0xa8   :  { %1640 = vmatprep.subr.bf16.mxu1 %v6163_v45 }
  0xaa   :  { %1604 = vmatpush1.bf16.msra.mxu0 %v6164_v44  ;;  %v6248_v44 = vld [vmem:[%s9075_s25 + $0x40] ss:$8 sps:$4 sm:$0xff]  }
  0xab   :  { %1641 = vmatpush1.bf16.msra.mxu1 %v6161_v46  ;;  %1605 = vmatprep.subr.bf16.mxu0 %v6172_v47 }
  0xac   :  { %1642 = vmatprep.subr.bf16.mxu1 %v6169_v48  ;;  %v6253_v48 = vld [vmem:[%s9075_s25 + $0x54] ss:$8 sps:$4 sm:$0xff]  }
  0xae   :  { %1606 = vmatpush1.bf16.msra.mxu0 %v6170_v49  ;;  %v6251_v49 = vld [vmem:[%s9075_s25 + $0x50] ss:$8 sps:$4 sm:$0xff]  }
  0xaf   :  { %1643 = vmatpush1.bf16.msra.mxu1 %v6167_v50  ;;  %1607 = vmatprep.subr.bf16.mxu0 %v6178_v51  ;;  %v6256_v50 = vld [vmem:[%s9075_s25 + $0x64] ss:$8 sps:$4 sm:$0xff]   ;;  %v6254_v51 = vld [vmem:[%s9075_s25 + $0x60] ss:$8 sps:$4 sm:$0xff]  }
  0xb0   :  { %1644 = vmatprep.subr.bf16.mxu1 %v6175_v52  ;;  %v6259_v52 = vld [vmem:[%s9075_s25 + $0x74] ss:$8 sps:$4 sm:$0xff]  }
  0xb2   :  { %1608 = vmatpush1.bf16.msra.mxu0 %v6176_v53  ;;  %v6257_v53 = vld [vmem:[%s9075_s25 + $0x70] ss:$8 sps:$4 sm:$0xff]  }
  0xb3   :  { %1645 = vmatpush1.bf16.msra.mxu1 %v6173_v54  ;;  %1609 = vmatprep.subr.bf16.mxu0 %v6184_v55  ;;  %v6262_v54 = vld [vmem:[%s9075_s25 + $0x84] ss:$8 sps:$4 sm:$0xff]   ;;  %v6260_v55 = vld [vmem:[%s9075_s25 + $0x80] ss:$8 sps:$4 sm:$0xff]  }
  0xb4   :  { %1646 = vmatprep.subr.bf16.mxu1 %v6181_v56  ;;  %v6265_v56 = vld [vmem:[%s9075_s25 + $0x94] ss:$8 sps:$4 sm:$0xff]  }
  0xb6   :  { %1610 = vmatpush1.bf16.msra.mxu0 %v6182_v57  ;;  %v6263_v57 = vld [vmem:[%s9075_s25 + $0x90] ss:$8 sps:$4 sm:$0xff]  }
  0xb7   :  { %1647 = vmatpush1.bf16.msra.mxu1 %v6179_v58  ;;  %1611 = vmatprep.subr.bf16.mxu0 %v6190_v59  ;;  %v6268_v58 = vld [vmem:[%s9075_s25 + $0xa4] ss:$8 sps:$4 sm:$0xff]   ;;  %v6266_v59 = vld [vmem:[%s9075_s25 + $0xa0] ss:$8 sps:$4 sm:$0xff]  }
  0xb8   :  { %1648 = vmatprep.subr.bf16.mxu1 %v6187_v60  ;;  %v6271_v60 = vld [vmem:[%s9075_s25 + $0xb4] ss:$8 sps:$4 sm:$0xff]  }
  0xba   :  { %1612 = vmatpush1.bf16.msra.mxu0 %v6188_v62  ;;  %v6269_v62 = vld [vmem:[%s9075_s25 + $0xb0] ss:$8 sps:$4 sm:$0xff]  }
  0xbb   :  { %1649 = vmatpush1.bf16.msra.mxu1 %v6185_v63  ;;  %1613 = vmatprep.subr.bf16.mxu0 %v6196_v0  ;;  %v6274_v63 = vld [vmem:[%s9075_s25 + $0xc4] ss:$8 sps:$4 sm:$0xff]   ;;  %v6272_v0 = vld [vmem:[%s9075_s25 + $0xc0] ss:$8 sps:$4 sm:$0xff]  }
  0xbc   :  { %1650 = vmatprep.subr.bf16.mxu1 %v6193_v1  ;;  %v6277_v1 = vld [vmem:[%s9075_s25 + $0xd4] ss:$8 sps:$4 sm:$0xff]  }
  0xbe   :  { %1614 = vmatpush1.bf16.msra.mxu0 %v6194_v3  ;;  %v6275_v3 = vld [vmem:[%s9075_s25 + $0xd0] ss:$8 sps:$4 sm:$0xff]  }
  0xbf   :  { %1651 = vmatpush1.bf16.msra.mxu1 %v6191_v4  ;;  %1615 = vmatprep.subr.bf16.mxu0 %v6202_v5  ;;  %v6280_v4 = vld [vmem:[%s9075_s25 + $0xe4] ss:$8 sps:$4 sm:$0xff]   ;;  %v6278_v5 = vld [vmem:[%s9075_s25 + $0xe0] ss:$8 sps:$4 sm:$0xff]  }
  0xc0   :  { %1652 = vmatprep.subr.bf16.mxu1 %v6199_v6  ;;  %v6283_v6 = vld [vmem:[%s9075_s25 + $0xf4] ss:$8 sps:$4 sm:$0xff]  }
  0xc2   :  { %1616 = vmatpush1.bf16.msra.mxu0 %v6200_v7  ;;  %v6281_v7 = vld [vmem:[%s9075_s25 + $0xf0] ss:$8 sps:$4 sm:$0xff]  }
  0xc3   :  { %1653 = vmatpush1.bf16.msra.mxu1 %v6197_v8  ;;  %1617 = vmatprep.subr.bf16.mxu0 %v6208_v9  ;;  %v6286_v8 = vld [vmem:[%s9075_s25 + $0x104] ss:$8 sps:$4 sm:$0xff]  }
  0xc4   :  { %1654 = vmatprep.subr.bf16.mxu1 %v6205_v10 }
  0xc6   :  { %1618 = vmatpush1.bf16.msra.mxu0 %v6206_v11 }
  0xc7   :  { %1655 = vmatpush1.bf16.msra.mxu1 %v6203_v12  ;;  %1619 = vmatprep.subr.bf16.mxu0 %v6214_v13 }
  0xc8   :  { %1656 = vmatprep.subr.bf16.mxu1 %v6211_v14 }
  0xca   :  { %1620 = vmatpush1.bf16.msra.mxu0 %v6212_v15 }
  0xcb   :  { %1657 = vmatpush1.bf16.msra.mxu1 %v6209_v17  ;;  %1621 = vmatprep.subr.bf16.mxu0 %v6220_v19 }
  0xcc   :  { %1658 = vmatprep.subr.bf16.mxu1 %v6217_v20 }
  0xce   :  { %1622 = vmatpush1.bf16.msra.mxu0 %v6218_v21 }
  0xcf   :  { %1659 = vmatpush1.bf16.msra.mxu1 %v6215_v22  ;;  %1623 = vmatprep.subr.bf16.mxu0 %v6226_v23 }
  0xd0   :  { %1660 = vmatprep.subr.bf16.mxu1 %v6223_v24 }
  0xd2   :  { %1624 = vmatpush1.bf16.msra.mxu0 %v6224_v26 }
  0xd3   :  { %1661 = vmatpush1.bf16.msra.mxu1 %v6221_v28  ;;  %1675 = vmatprep.subr.bf16.mxu0 %v6232_v29 }
  0xd4   :  { %1662 = vmatprep.subr.bf16.mxu1 %v6229_v30 }
  0xd5   :  { %1626 = vmatmul.mubr.bf16.vlgmr.msra.gmra.mrb[12].mxu0 %v7238_v18  ;;  %v6239_v18 = vld [vmem:[%s9075_s25 + $0x10] ss:$8 sps:$4 sm:$0xff]  }
  0xd6   :  { %1676 = vmatpush1.bf16.msra.mxu0 %v6230_v31  ;;  %1707 = vmatprep.mubr.bf16.mxu0 %v6872_v2 }
  0xd7   :  { %1663 = vmatpush1.bf16.msra.mxu1 %v6227_v32  ;;  %2146 = vmatprep.subr.bf16.mxu0 %v6238_v33 }
  0xd8   :  { %1664 = vmatprep.subr.bf16.mxu1 %v6235_v34 }
  0xdb   :  { %1665 = vmatpush1.bf16.msra.mxu1 %v6233_v35 }
  0xdd   :  { %5374 = vmatmul.mubr.msk.bf16.vlgmr.msra.gmra.mrb[16].mxu0 %vm319_vm0, %v7267_v27  ;;  %v6245_v27 = vld [vmem:[%s9075_s25 + $0x30] ss:$8 sps:$4 sm:$0xff]  }
  0xde   :  { %1667 = vmatmul.mubr.bf16.vlgmr.msra.gmra.mrb[16].mxu1 %v7446_v25  ;;  %2147 = vmatpush1.bf16.msra.mxu0 %v6236_v36  ;;  %v6250_v25 = vld [vmem:[%s9075_s25 + $0x44] ss:$8 sps:$4 sm:$0xff]  }
  0xdf   :  { %2148 = vmatprep.subr.bf16.mxu0 %v6241_v37 }
  0xe2   :  { %2149 = vmatpush1.bf16.msra.mxu0 %v6239_v18 }
  0xe3   :  { %2150 = vmatprep.subr.bf16.mxu0 %v6244_v61 }
  0xe6   :  { %2151 = vmatpush1.bf16.msra.mxu0 %v6242_v38 }
  0xe7   :  { %2152 = vmatprep.subr.bf16.mxu0 %v6247_v39 }
  0xe8   :  { %v357_v40 = vpop.f32.mrb[0].mxu0  ;;  %v7688_v41 = vpop.f32.mrb[0].mxu1 }
  0xe9   :  { %v359_v42 = vpop.f32.mrb[1].mxu0  ;;  %v7690_v43 = vpop.f32.mrb[1].mxu1 }
  0xea   :  { %v361_v16 = vpop.f32.mrb[2].mxu0  ;;  %v402_v45 = vpop.f32.mrb[2].mxu1  ;;  %2153 = vmatpush1.bf16.msra.mxu0 %v6245_v27 }
  0xeb   :  { %v362_v46 = vpop.f32.mrb[3].mxu0  ;;  %v403_v47 = vpop.f32.mrb[3].mxu1  ;;  %2154 = vmatprep.subr.bf16.mxu0 %v6250_v25 }
  0xee   :  { %2155 = vmatpush1.bf16.msra.mxu0 %v6248_v44 }
  0xef   :  { %2156 = vmatprep.subr.bf16.mxu0 %v6253_v48 }
  0xf2   :  { %2157 = vmatpush1.bf16.msra.mxu0 %v6251_v49 }
  0xf3   :  { %2158 = vmatprep.subr.bf16.mxu0 %v6256_v50 }
  0xf6   :  { %2159 = vmatpush1.bf16.msra.mxu0 %v6254_v51 }
  0xf7   :  { %2160 = vmatprep.subr.bf16.mxu0 %v6259_v52 }
  0xfa   :  { %2161 = vmatpush1.bf16.msra.mxu0 %v6257_v53 }
  0xfb   :  { %2162 = vmatprep.subr.bf16.mxu0 %v6262_v54 }
  0xfe   :  { %2163 = vmatpush1.bf16.msra.mxu0 %v6260_v55 }
  0xff   :  { %2164 = vmatprep.subr.bf16.mxu0 %v6265_v56 }
 0x102   :  { %2165 = vmatpush1.bf16.msra.mxu0 %v6263_v57 }
 0x103   :  { %2166 = vmatprep.subr.bf16.mxu0 %v6268_v58 }
 0x106   :  { %2167 = vmatpush1.bf16.msra.mxu0 %v6266_v59 }
 0x107   :  { %2168 = vmatprep.subr.bf16.mxu0 %v6271_v60 }
 0x10a   :  { %2169 = vmatpush1.bf16.msra.mxu0 %v6269_v62 }
 0x10b   :  { %2170 = vmatprep.subr.bf16.mxu0 %v6274_v63 }
 0x10e   :  { %2171 = vmatpush1.bf16.msra.mxu0 %v6272_v0 }
 0x10f   :  { %2172 = vmatprep.subr.bf16.mxu0 %v6277_v1 }
 0x112   :  { %2173 = vmatpush1.bf16.msra.mxu0 %v6275_v3 }
 0x113   :  { %2174 = vmatprep.subr.bf16.mxu0 %v6280_v4 }
 0x116   :  { %2175 = vmatpush1.bf16.msra.mxu0 %v6278_v5 }
 0x117   :  { %2176 = vmatprep.subr.bf16.mxu0 %v6283_v6 }
 0x11a   :  { %2177 = vmatpush1.bf16.msra.mxu0 %v6281_v7 }
 0x11b   :  { %2187 = vmatprep.subr.bf16.mxu0 %v6286_v8 }
 0x128   :  { %v1422_v9 = vpop.f32.mrb[4].mxu0  ;;  %v1463_v11 = vpop.f32.mrb[4].mxu1 }
 0x129   :  { %v1423_v10 = vadd.f32 %v1422_v9, %v357_v40  ;;  %v1424_v12 = vpop.f32.mrb[5].mxu0  ;;  %v1465_v14 = vpop.f32.mrb[5].mxu1 }
 0x12a   :  { %v1425_v13 = vadd.f32 %v1424_v12, %v359_v42  ;;  %v1426_v15 = vpop.f32.mrb[6].mxu0  ;;  %v1467_v19 = vpop.f32.mrb[6].mxu1 }
 0x12b   :  { %v1464_v17 = vadd.f32 %v1463_v11, %v1423_v10  ;;  %v1427_v20 = vpop.f32.mrb[7].mxu0  ;;  %v1468_v22 = vpop.f32.mrb[7].mxu1 }
 0x12c   :  { %v1466_v21 = vadd.f32 %v1465_v14, %v1425_v13 }
 0x130   :  { %v1545_v23 = vpop.f32.mrb[8].mxu1 }
 0x131   :  { %v1547_v24 = vpop.f32.mrb[9].mxu1 }
 0x132   :  { %v1549_v26 = vpop.f32.mrb[10].mxu1 }
 0x133   :  { %v1550_v28 = vpop.f32.mrb[11].mxu1 }
 0x134   :  { %31 = vsyncpa [#allocation5], 0  ;;  %v1718_v29 = vlaneseq  ;;  %s9076_s8 = sld [smem:[#allocation14_spill]]  ;;  %v6284_v49 = vld [vmem:[%s9075_s25 + $0x100] ss:$8 sps:$4 sm:$0xff]   ;;  %s9077_s7 = sld [smem:[#allocation17_spill]] }
 0x135   :  { %v6289_v53 = vld [vmem:[%s9075_s25 + $0x114] ss:$8 sps:$4 sm:$0xff]   ;;  %v6292_v55 = vld [vmem:[%s9075_s25 + $0x124] ss:$8 sps:$4 sm:$0xff]   ;;  %v6293_v57 = vld [vmem:[%s9075_s25 + $0x130] ss:$8 sps:$4 sm:$0xff]  }
 0x136   :  { %v7764_v30 = vshrl.u32 %v1718_v29, 7  ;;  %v6295_v56 = vld [vmem:[%s9075_s25 + $0x134] ss:$8 sps:$4 sm:$0xff]   ;;  %v6298_v58 = vld [vmem:[%s9075_s25 + $0x144] ss:$8 sps:$4 sm:$0xff]   ;;  %s9078_s1 = sld [smem:[#allocation16_spill]] }
 0x137   :  { %v6296_v59 = vld [vmem:[%s9075_s25 + $0x140] ss:$8 sps:$4 sm:$0xff]   ;;  %v6301_v60 = vld [vmem:[%s9075_s25 + $0x154] ss:$8 sps:$4 sm:$0xff]   ;;  %v6299_v62 = vld [vmem:[%s9075_s25 + $0x150] ss:$8 sps:$4 sm:$0xff]  }
 0x138   :  { %v7767_v31 = vsub.s32 0, %v7764_v30  ;;  %v7775_v33 = vsub.s32 1, %v7764_v30  ;;  %v6304_v63 = vld [vmem:[%s9075_s25 + $0x164] ss:$8 sps:$4 sm:$0xff]   ;;  %v6302_v0 = vld [vmem:[%s9075_s25 + $0x160] ss:$8 sps:$4 sm:$0xff]  }
 0x139   :  { %v6307_v1 = vld [vmem:[%s9075_s25 + $0x174] ss:$8 sps:$4 sm:$0xff]   ;;  %v6305_v3 = vld [vmem:[%s9075_s25 + $0x170] ss:$8 sps:$4 sm:$0xff]   ;;  %v6310_v4 = vld [vmem:[%s9075_s25 + $0x184] ss:$8 sps:$4 sm:$0xff]  }
 0x13a   :  { %v7772_v32 = vld [vmem:[%s9076_s8] sm:$0xf]  ;;  %v6313_v6 = vld [vmem:[%s9075_s25 + $0x194] ss:$8 sps:$4 sm:$0xff]   ;;  %v6311_v7 = vld [vmem:[%s9075_s25 + $0x190] ss:$8 sps:$4 sm:$0xff]  }
 0x13b   :  { %v1721_v36 = vrot.slane %v7772_v32, %v7767_v31  ;;  %v1725_v61 = vrot.slane %v7772_v32, %v7775_v33  ;;  %v6308_v5 = vld [vmem:[%s9075_s25 + $0x180] ss:$8 sps:$4 sm:$0xff]   ;;  %v6316_v8 = vld [vmem:[%s9075_s25 + $0x1a4] ss:$8 sps:$4 sm:$0xff]   ;;  %v6319_v10 = vld [vmem:[%s9075_s25 + $0x1b4] ss:$8 sps:$4 sm:$0xff]  }
 0x13c   :  { %v6314_v9 = vld [vmem:[%s9075_s25 + $0x1a0] ss:$8 sps:$4 sm:$0xff]   ;;  %v6317_v11 = vld [vmem:[%s9075_s25 + $0x1b0] ss:$8 sps:$4 sm:$0xff]   ;;  %v6322_v12 = vld [vmem:[%s9075_s25 + $0x1c4] ss:$8 sps:$4 sm:$0xff]  }
 0x13d   :  { %v6320_v13 = vld [vmem:[%s9075_s25 + $0x1c0] ss:$8 sps:$4 sm:$0xff]   ;;  %v6325_v14 = vld [vmem:[%s9075_s25 + $0x1d4] ss:$8 sps:$4 sm:$0xff]   ;;  %v6323_v15 = vld [vmem:[%s9075_s25 + $0x1d0] ss:$8 sps:$4 sm:$0xff]  }
 0x13e   :  { %v6331_v28 = vld [vmem:[%s9075_s25 + $0x1f4] ss:$8 sps:$4 sm:$0xff]   ;;  %v7877_v29 = vsub.s32 2, %v7764_v30  ;;  %vm6874_vm1 = vmmov 0   ;;  %vm2521_vm2 = vcmask 257024   ;;  %s6875_s27 = smov 96  }
 0x13f   :  { %vm2555_vm3 = vcmask 261120   ;;  %vm2640_vm4 = vcmask 523264  }
 0x168   :  { %v1504_v34 = vpop.f32.mrb[8].mxu0 }
 0x169   :  { %v1505_v35 = vadd.f32 %v1504_v34, %v1464_v17  ;;  %v1506_v37 = vpop.f32.mrb[9].mxu0  ;;  %v6328_v17 = vld [vmem:[%s9075_s25 + $0x1e4] ss:$8 sps:$4 sm:$0xff]   ;;  %v6329_v34 = vld [vmem:[%s9075_s25 + $0x1f0] ss:$8 sps:$4 sm:$0xff]  }
 0x16a   :  { %v1507_v18 = vadd.f32 %v1506_v37, %v1466_v21  ;;  %v1508_v38 = vpop.f32.mrb[10].mxu0 }
 0x16b   :  { %v1546_v39 = vadd.f32 %v1545_v23, %v1505_v35  ;;  %v1509_v27 = vpop.f32.mrb[11].mxu0  ;;  %v7883_v35 = vsub.s32 3, %v7764_v30 }
 0x16c   :  { %v1548_v25 = vadd.f32 %v1547_v24, %v1507_v18  ;;  %v6326_v24 = vld [vmem:[%s9075_s25 + $0x1e0] ss:$8 sps:$4 sm:$0xff]   ;;  %v1729_v27 = vrot.slane %v7772_v32, %v7877_v29 }
 0x16d   :  { %v1738_v40 = vadd.f32 %v1721_v36, %v1546_v39  ;;  %v6332_v36 = vld [vmem:[%s9077_s7 + $0x40] sm:$0xff]  }
 0x16e   :  { %v1739_v42 = vadd.f32 %v1725_v61, %v1548_v25 }
 0x16f   :  { %v1742_v16 = vmax.f32 %v1738_v40, 0.0 }
 0x170   :  { %v1743_v45 = vmax.f32 %v1739_v42, 0.0 }
 0x171   :  { %v1586_v44 = vpop.f32.mrb[12].mxu1  ;;  %v1746_v50 = vpack.c.bf16 %v1742_v16, %v1742_v16  ;;  %v1733_v16 = vrot.slane %v7772_v32, %v7883_v35  ;;  %v6335_v32 = vld [vmem:[%s9077_s7 + $0x8] sm:$0xff]  }
 0x172   :  { %v7782_v46 = vadd.f32 %v1586_v44, %v7688_v41  ;;  %v1588_v47 = vpop.f32.mrb[13].mxu1  ;;  %v1747_v48 = vpack.c.bf16 %v1743_v45, %v1743_v45  ;;  %v6287_v41 = vld [vmem:[%s9075_s25 + $0x110] ss:$8 sps:$4 sm:$0xff]  }
 0x173   :  { %v1589_v51 = vadd.f32 %v1588_v47, %v7690_v43  ;;  %v1590_v52 = vpop.f32.mrb[14].mxu1  ;;  %v6290_v43 = vld [vmem:[%s9075_s25 + $0x120] ss:$8 sps:$4 sm:$0xff]  }
 0x174   :  { %v1591_v54 = vpop.f32.mrb[15].mxu1  ;;  %2178 = vmatprep.mubr.bf16.mxu0 %v1747_v48 }
 0x175   :  { %2179 = vmatmul.mubr.bf16.vlgmr.msra.gmra.mrb[20].mxu0 %v1746_v50 }
 0x176   :  { %2188 = vmatpush1.bf16.msra.mxu0 %v6284_v49 }
 0x177   :  { %2189 = vmatprep.subr.bf16.mxu0 %v6289_v53  ;;  %v6333_v53 = vld [vmem:[%s9077_s7] sm:$0xff]  }
 0x17a   :  { %2190 = vmatpush1.bf16.msra.mxu0 %v6287_v41  ;;  %v6334_v41 = vld [vmem:[%s9077_s7 + $0x48] sm:$0xff]  }
 0x17b   :  { %2191 = vmatprep.subr.bf16.mxu0 %v6292_v55  ;;  %v6336_v55 = vld [vmem:[%s9077_s7 + $0x50] sm:$0xff]  }
 0x17e   :  { %2192 = vmatpush1.bf16.msra.mxu0 %v6290_v43  ;;  %v6337_v43 = vld [vmem:[%s9077_s7 + $0x10] sm:$0xff]  }
 0x17f   :  { %2193 = vmatprep.subr.bf16.mxu0 %v6295_v56  ;;  %v6338_v56 = vld [vmem:[%s9077_s7 + $0x58] sm:$0xff]  }
 0x182   :  { %2194 = vmatpush1.bf16.msra.mxu0 %v6293_v57  ;;  %v6339_v57 = vld [vmem:[%s9077_s7 + $0x18] sm:$0xff]  }
 0x183   :  { %2195 = vmatprep.subr.bf16.mxu0 %v6298_v58  ;;  %v6340_v58 = vld [vmem:[%s9077_s7 + $0x60] sm:$0xff]  }
 0x186   :  { %2196 = vmatpush1.bf16.msra.mxu0 %v6296_v59  ;;  %v6341_v59 = vld [vmem:[%s9077_s7 + $0x20] sm:$0xff]  }
 0x187   :  { %2197 = vmatprep.subr.bf16.mxu0 %v6301_v60  ;;  %v6342_v60 = vld [vmem:[%s9077_s7 + $0x68] sm:$0xff]  }
 0x18a   :  { %2198 = vmatpush1.bf16.msra.mxu0 %v6299_v62  ;;  %v6343_v62 = vld [vmem:[%s9077_s7 + $0x28] sm:$0xff]  }
 0x18b   :  { %2199 = vmatprep.subr.bf16.mxu0 %v6304_v63  ;;  %v6344_v63 = vld [vmem:[%s9077_s7 + $0x70] sm:$0xff]  }
 0x18e   :  { %2200 = vmatpush1.bf16.msra.mxu0 %v6302_v0  ;;  %v6345_v0 = vld [vmem:[%s9077_s7 + $0x30] sm:$0xff]  }
 0x18f   :  { %2201 = vmatprep.subr.bf16.mxu0 %v6307_v1  ;;  %v6346_v1 = vld [vmem:[%s9077_s7 + $0x78] sm:$0xff]  }
 0x192   :  { %2202 = vmatpush1.bf16.msra.mxu0 %v6305_v3  ;;  %v6347_v3 = vld [vmem:[%s9077_s7 + $0x38] sm:$0xff]  }
 0x193   :  { %2203 = vmatprep.subr.bf16.mxu0 %v6310_v4  ;;  %v6348_v4 = vld [vmem:[%s9042_s10] sm:$0xff]  }
 0x196   :  { %2204 = vmatpush1.bf16.msra.mxu0 %v6308_v5  ;;  %v6873_v5 = vmov 0.0  }
 0x197   :  { %2205 = vmatprep.subr.bf16.mxu0 %v6313_v6  ;;  %5862 = vmatprep.subr.bf16.mxu1 %v6873_v5  ;;  %v6349_v6 = vld [vmem:[%s9042_s10 + $0x8] sm:$0xff]  }
 0x198   :  { %5863 = vmatpush3.bf16.msra.mxu1 %v6348_v4  ;;  %5878 = vmatprep.mubr.msk.bf16.mxu1 %vm6874_vm1, %v6873_v5 }
 0x199   :  { %5864 = vmatprep.subr.bf16.mxu1 %v6873_v5 }
 0x19a   :  { %2206 = vmatpush1.bf16.msra.mxu0 %v6311_v7  ;;  %v6350_v7 = vld [vmem:[%s9042_s10 + $0x10] sm:$0xff]  }
 0x19b   :  { %2207 = vmatprep.subr.bf16.mxu0 %v6316_v8  ;;  %v6351_v8 = vld [vmem:[%s9042_s10 + $0x18] sm:$0xff]  }
 0x19c   :  { %5865 = vmatpush3.bf16.msra.mxu1 %v6349_v6  ;;  %v6365_v6 = vld [vmem:[%s9048_s16 + $0x10] ss:$8 sps:$4 sm:$0xff]  }
 0x19d   :  { %5866 = vmatprep.subr.bf16.mxu1 %v6873_v5 }
 0x19e   :  { %2208 = vmatpush1.bf16.msra.mxu0 %v6314_v9  ;;  %v6352_v9 = vld [vmem:[%s9042_s10 + $0x20] sm:$0xff]  }
 0x19f   :  { %2209 = vmatprep.subr.bf16.mxu0 %v6319_v10  ;;  %v6353_v10 = vld [vmem:[%s9042_s10 + $0x28] sm:$0xff]  }
 0x1a0   :  { %5867 = vmatpush3.bf16.msra.mxu1 %v6350_v7  ;;  %v6370_v7 = vld [vmem:[%s9048_s16 + $0x24] ss:$8 sps:$4 sm:$0xff]  }
 0x1a1   :  { %5868 = vmatprep.subr.bf16.mxu1 %v6873_v5 }
 0x1a2   :  { %2210 = vmatpush1.bf16.msra.mxu0 %v6317_v11  ;;  %v1814_v11 = vld [vmem:[%s9078_s1] sm:$0x3] }
 0x1a3   :  { %2211 = vmatprep.subr.bf16.mxu0 %v6322_v12  ;;  %v1819_v12 = vrot.slane %v1814_v11, %v7767_v31 }
 0x1a4   :  { %5869 = vmatpush3.bf16.msra.mxu1 %v6351_v8  ;;  %v6368_v8 = vld [vmem:[%s9048_s16 + $0x20] ss:$8 sps:$4 sm:$0xff]  }
 0x1a5   :  { %5870 = vmatprep.subr.bf16.mxu1 %v6873_v5 }
 0x1a6   :  { %2212 = vmatpush1.bf16.msra.mxu0 %v6320_v13  ;;  %v1823_v13 = vrot.slane %v1814_v11, %v7775_v33  ;;  %v6374_v11 = vld [vmem:[%s9048_s16 + $0x40] ss:$8 sps:$4 sm:$0xff]  }
 0x1a7   :  { %2213 = vmatprep.subr.bf16.mxu0 %v6325_v14 }
 0x1a8   :  { %v1627_v19 = vpop.f32.mrb[12].mxu0  ;;  %5871 = vmatpush3.bf16.msra.mxu1 %v6352_v9  ;;  %v6373_v9 = vld [vmem:[%s9048_s16 + $0x34] ss:$8 sps:$4 sm:$0xff]  }
 0x1a9   :  { %v1628_v20 = vadd.f32 %v1627_v19, %v7782_v46  ;;  %v1629_v21 = vpop.f32.mrb[13].mxu0  ;;  %5872 = vmatprep.subr.bf16.mxu1 %v6873_v5 }
 0x1aa   :  { %v1630_v22 = vadd.f32 %v1629_v21, %v1589_v51  ;;  %v1631_v23 = vpop.f32.mrb[14].mxu0  ;;  %2214 = vmatpush1.bf16.msra.mxu0 %v6323_v15 }
 0x1ab   :  { %v1632_v26 = vpop.f32.mrb[15].mxu0  ;;  %2215 = vmatprep.subr.bf16.mxu0 %v6328_v17 }
 0x1ac   :  { %5873 = vmatpush3.bf16.msra.mxu1 %v6353_v10  ;;  %v6376_v10 = vld [vmem:[%s9048_s16 + $0x44] ss:$8 sps:$4 sm:$0xff]  }
 0x1ad   :  { %5874 = vmatprep.subr.bf16.mxu1 %v6873_v5 }
 0x1ae   :  { %2216 = vmatpush1.bf16.msra.mxu0 %v6326_v24 }
 0x1af   :  { %2217 = vmatprep.subr.bf16.mxu0 %v6331_v28  ;;  %v6354_v28 = vld [vmem:[%s9042_s10 + $0x30] sm:$0xff]  }
 0x1b0   :  { %v1709_v37 = vpop.f32.mrb[16].mxu0  ;;  %5875 = vmatpush3.bf16.msra.mxu1 %v6354_v28  ;;  %v6401_v28 = vld [vmem:[%s9050_s18 + $0x48] ss:$16 sps:$4 sm:$0xff]  }
 0x1b1   :  { %v1668_v18 = vpop.f32.mrb[16].mxu1  ;;  %v1711_v61 = vpop.f32.mrb[17].mxu0  ;;  %5876 = vmatprep.subr.bf16.mxu1 %v6873_v5 }
 0x1b2   :  { %v1669_v38 = vadd.f32 %v1668_v18, %v1628_v20  ;;  %v1670_v39 = vpop.f32.mrb[17].mxu1  ;;  %v1713_v25 = vpop.f32.mrb[18].mxu0  ;;  %2218 = vmatpush1.bf16.msra.mxu0 %v6329_v34  ;;  %v6355_v34 = vld [vmem:[%s9042_s10 + $0x38] sm:$0xff]  }
 0x1b3   :  { %v1671_v40 = vadd.f32 %v1670_v39, %v1630_v22  ;;  %v1672_v42 = vpop.f32.mrb[18].mxu1  ;;  %v1714_v45 = vpop.f32.mrb[19].mxu0  ;;  %5779 = vmatprep.subr.bf16.mxu0 %v6332_v36 }
 0x1b4   :  { %v1710_v44 = vadd.f32 %v1709_v37, %v1669_v38  ;;  %v1673_v46 = vpop.f32.mrb[19].mxu1  ;;  %5877 = vmatpush3.bf16.msra.mxu1 %v6355_v34  ;;  %v5439_v37 = vld [vmem:[%s9041_s9] ss:$0 sm:$0xff]  ;;  %v6409_v34 = vld [vmem:[%s9050_s18 + $0x6c] ss:$16 sps:$4 sm:$0xff]  }
 0x1b5   :  { %v1712_v47 = vadd.f32 %v1711_v61, %v1671_v40  ;;  %5882 = vmatprep.subr.bf16.mxu1 %v6873_v5  ;;  %v6356_v42 = vld [vmem:[%s9044_s12] sm:$0xff]  }
 0x1b6   :  { %v1740_v48 = vadd.f32 %v1729_v27, %v1710_v44  ;;  %v5456_v45 = vld [vmem:[%s9043_s11] ss:$0 sm:$0xff] }
 0x1b7   :  { %v1741_v49 = vadd.f32 %v1733_v16, %v1712_v47  ;;  %v6357_v16 = vld [vmem:[%s9044_s12 + $0x8] sm:$0xff]   ;;  %s9079_s12 = sld [smem:[#allocation11_spill]] }
 0x1b8   :  { %v1744_v50 = vmax.f32 %v1740_v48, 0.0 }
 0x1b9   :  { %v1745_v51 = vmax.f32 %v1741_v49, 0.0 }
 0x1ba   :  { %v1748_v54 = vpack.c.bf16 %v1744_v50, %v1744_v50 }
 0x1bb   :  { %v1749_v52 = vpack.c.bf16 %v1745_v51, %v1745_v51 }
 0x1bd   :  { %2219 = vmatprep.mubr.bf16.mxu0 %v1749_v52  ;;  %v2528_v51 = vld [vmem:[%s9079_s12] sm:$0xf] }
 0x1be   :  { %2220 = vmatmul.mubr.bf16.vlgmr.msra.gmra.mrb[20].mxu0 %v1748_v54 }
 0x1bf   :  { %5780 = vmatpush3.bf16.msra.mxu0 %v6333_v53 }
 0x1c0   :  { %5781 = vmatprep.subr.bf16.mxu0 %v6334_v41  ;;  %v6358_v41 = vld [vmem:[%s9046_s14] sm:$0xff]  }
 0x1c3   :  { %5782 = vmatpush3.bf16.msra.mxu0 %v6335_v32 }
 0x1c4   :  { %5783 = vmatprep.subr.bf16.mxu0 %v6336_v55  ;;  %v6359_v55 = vld [vmem:[%s9046_s14 + $0x8] sm:$0xff]  }
 0x1c7   :  { %5784 = vmatpush3.bf16.msra.mxu0 %v6337_v43  ;;  %v6360_v43 = vld [vmem:[%s9046_s14 + $0x10] sm:$0xff]  }
 0x1c8   :  { %5785 = vmatprep.subr.bf16.mxu0 %v6338_v56  ;;  %v6361_v56 = vld [vmem:[%s9046_s14 + $0x18] sm:$0xff]  }
 0x1cb   :  { %5786 = vmatpush3.bf16.msra.mxu0 %v6339_v57  ;;  %v6364_v57 = vld [vmem:[%s9048_s16 + $0x4] ss:$8 sps:$4 sm:$0xff]  }
 0x1cc   :  { %5787 = vmatprep.subr.bf16.mxu0 %v6340_v58  ;;  %v5465_v58 = vld [vmem:[%s9045_s13] ss:$0 sm:$0xff] }
 0x1cf   :  { %5788 = vmatpush3.bf16.msra.mxu0 %v6341_v59 }
 0x1d0   :  { %5789 = vmatprep.subr.bf16.mxu0 %v6342_v60 }
 0x1d3   :  { %5790 = vmatpush3.bf16.msra.mxu0 %v6343_v62 }
 0x1d4   :  { %5791 = vmatprep.subr.bf16.mxu0 %v6344_v63 }
 0x1d7   :  { %5792 = vmatpush3.bf16.msra.mxu0 %v6345_v0 }
 0x1d8   :  { %5793 = vmatprep.subr.bf16.mxu0 %v6346_v1 }
 0x1db   :  { %5794 = vmatpush3.bf16.msra.mxu0 %v6347_v3  ;;  %v6362_v3 = vld [vmem:[%s9048_s16] ss:$8 sps:$4 sm:$0xff]  }
 0x291   :  { %v2221_v14 = vpop.f32.mrb[20].mxu0 }
 0x292   :  { %v5902_v15 = vadd.f32 %v2221_v14, %v1819_v12  ;;  %v2223_v17 = vpop.f32.mrb[21].mxu0  ;;  %v6379_v12 = vld [vmem:[%s9048_s16 + $0x54] ss:$8 sps:$4 sm:$0xff]   ;;  %v6382_v14 = vld [vmem:[%s9048_s16 + $0x64] ss:$8 sps:$4 sm:$0xff]  }
 0x293   :  { %v5903_v19 = vadd.f32 %v2223_v17, %v1823_v13  ;;  %v2225_v20 = vpop.f32.mrb[22].mxu0  ;;  %v6377_v13 = vld [vmem:[%s9048_s16 + $0x50] ss:$8 sps:$4 sm:$0xff]   ;;  %v6385_v17 = vld [vmem:[%s9048_s16 + $0x74] ss:$8 sps:$4 sm:$0xff]  }
 0x294   :  { %v2228_v21 = vmax.f32 %v5902_v15, 0.0  ;;  %v2226_v22 = vpop.f32.mrb[23].mxu0  ;;  %v6380_v15 = vld [vmem:[%s9048_s16 + $0x60] ss:$8 sps:$4 sm:$0xff]   ;;  %v6388_v20 = vld [vmem:[%s9050_s18 + $0x4] ss:$16 sps:$4 sm:$0xff]  }
 0x295   :  { %v2229_v23 = vmax.f32 %v5903_v19, 0.0  ;;  %v6383_v19 = vld [vmem:[%s9048_s16 + $0x70] ss:$8 sps:$4 sm:$0xff]   ;;  %v6391_v22 = vld [vmem:[%s9050_s18 + $0xc] ss:$16 sps:$4 sm:$0xff]  }
 0x296   :  { %v2230_v26 = vpack.c.bf16 %v2228_v21, %v2228_v21  ;;  %v6389_v21 = vld [vmem:[%s9050_s18 + $0x8] ss:$16 sps:$4 sm:$0xff]   ;;  %3286 = vmatprep.subr.bf16.mxu0 %v6391_v22  ;;  %v6458_v22 = vld [vmem:[%s9050_s18 + $0x180] ss:$16 sps:$4 sm:$0xff]  }
 0x297   :  { %v2231_v24 = vpack.c.bf16 %v2229_v23, %v2229_v23  ;;  %v6397_v23 = vld [vmem:[%s9050_s18 + $0x2c] ss:$16 sps:$4 sm:$0xff]  }
 0x299   :  { %2399 = vmatprep.mubr.bf16.mxu0 %v2231_v24  ;;  %v6395_v24 = vld [vmem:[%s9050_s18 + $0x28] ss:$16 sps:$4 sm:$0xff]  }
 0x29a   :  { %2400 = vmatmul.mubr.bf16.vlgmr.msra.gmra.mrb[24].mxu0 %v2230_v26  ;;  %v6403_v26 = vld [vmem:[%s9050_s18 + $0x4c] ss:$16 sps:$4 sm:$0xff]  }
 0x29b   :  { %3287 = vmatpush1.bf16.msra.mxu0 %v6389_v21  ;;  %v6460_v21 = vld [vmem:[%s9050_s18 + $0x184] ss:$16 sps:$4 sm:$0xff]  }
 0x29c   :  { %3288 = vmatprep.subr.bf16.mxu0 %v6397_v23  ;;  %v6466_v23 = vld [vmem:[%s9050_s18 + $0x1a4] ss:$16 sps:$4 sm:$0xff]  }
 0x29f   :  { %3289 = vmatpush1.bf16.msra.mxu0 %v6395_v24  ;;  %v6464_v24 = vld [vmem:[%s9050_s18 + $0x1a0] ss:$16 sps:$4 sm:$0xff]  }
 0x2a0   :  { %3290 = vmatprep.subr.bf16.mxu0 %v6403_v26  ;;  %v6472_v26 = vld [vmem:[%s9050_s18 + $0x1c4] ss:$16 sps:$4 sm:$0xff]  }
 0x2a3   :  { %3291 = vmatpush1.bf16.msra.mxu0 %v6401_v28  ;;  %v6475_v28 = vld [vmem:[%s9050_s18 + $0x1cc] ss:$16 sps:$4 sm:$0xff]  }
 0x2a4   :  { %3292 = vmatprep.subr.bf16.mxu0 %v6409_v34  ;;  %v6470_v34 = vld [vmem:[%s9050_s18 + $0x1c0] ss:$16 sps:$4 sm:$0xff]  }
 0x36d   :  { %v5795_v36 = vpop.f32.mrb[24].mxu0 }
 0x36e   :  { %v5796_v18 = vpop.f32.mrb[25].mxu0 }
 0x36f   :  { %v5797_v61 = vadd.f32 %v5796_v18, %v5795_v36  ;;  %v5798_v38 = vpop.f32.mrb[26].mxu0  ;;  %v6407_v36 = vld [vmem:[%s9050_s18 + $0x68] ss:$16 sps:$4 sm:$0xff]  }
 0x370   :  { %v5799_v39 = vpop.f32.mrb[27].mxu0  ;;  %3293 = vmatpush1.bf16.msra.mxu0 %v6407_v36  ;;  %v6413_v18 = vld [vmem:[%s9050_s18 + $0x88] ss:$16 sps:$4 sm:$0xff]  }
 0x371   :  { %v2402_v27 = vadd.f32 %v5797_v61, %v5439_v37  ;;  %v6415_v37 = vld [vmem:[%s9050_s18 + $0x8c] ss:$16 sps:$4 sm:$0xff]   ;;  %v6419_v38 = vld [vmem:[%s9050_s18 + $0xa8] ss:$16 sps:$4 sm:$0xff]  }
 0x372   :  { %3294 = vmatprep.subr.bf16.mxu0 %v6415_v37  ;;  %v6421_v61 = vld [vmem:[%s9050_s18 + $0xac] ss:$16 sps:$4 sm:$0xff]   ;;  %v6473_v36 = vld [vmem:[%s9050_s18 + $0x1c8] ss:$16 sps:$4 sm:$0xff]   ;;  %v6478_v37 = vld [vmem:[%s9050_s18 + $0x1e4] ss:$16 sps:$4 sm:$0xff]  }
 0x373   :  { %v2407_v25 = vmax.f32 %v2402_v27, 0.0  ;;  %v6427_v39 = vld [vmem:[%s9050_s18 + $0xcc] ss:$16 sps:$4 sm:$0xff]   ;;  %v6425_v27 = vld [vmem:[%s9050_s18 + $0xc8] ss:$16 sps:$4 sm:$0xff]  }
 0x374   :  { %3295 = vmatpush1.bf16.msra.mxu0 %v6413_v18  ;;  %v6481_v18 = vld [vmem:[%s9050_s18 + $0x1ec] ss:$16 sps:$4 sm:$0xff]  }
 0x375   :  { %v2408_v40 = vpack.c.bf16 %v2407_v25, %v2407_v25  ;;  %3296 = vmatprep.subr.bf16.mxu0 %v6421_v61  ;;  %v6433_v25 = vld [vmem:[%s9050_s18 + $0xec] ss:$16 sps:$4 sm:$0xff]   ;;  %v6476_v61 = vld [vmem:[%s9050_s18 + $0x1e0] ss:$16 sps:$4 sm:$0xff]  }
 0x377   :  { %5879 = vmatmul.mubr.bf16.vlgmr.msra.gmra.mrb[20].mxu1 %v2408_v40  ;;  %v6431_v40 = vld [vmem:[%s9050_s18 + $0xe8] ss:$16 sps:$4 sm:$0xff]  }
 0x378   :  { %5886 = vmatprep.mubr.msk.bf16.mxu1 %vm6874_vm1, %v6873_v5  ;;  %5883 = vmatpush3.bf16.msra.mxu1 %v6356_v42  ;;  %v6439_v42 = vld [vmem:[%s9050_s18 + $0x10c] ss:$16 sps:$4 sm:$0xff]  }
 0x379   :  { %5884 = vmatprep.subr.bf16.mxu1 %v6873_v5  ;;  %3297 = vmatpush1.bf16.msra.mxu0 %v6419_v38  ;;  %v6479_v38 = vld [vmem:[%s9050_s18 + $0x1e8] ss:$16 sps:$4 sm:$0xff]  }
 0x37a   :  { %3298 = vmatprep.subr.bf16.mxu0 %v6427_v39  ;;  %v6484_v39 = vld [vmem:[%s9052_s20 + $0x4] ss:$28 sps:$4 sm:$0xff]  }
 0x37c   :  { %5885 = vmatpush3.bf16.msra.mxu1 %v6357_v16  ;;  %v6437_v16 = vld [vmem:[%s9050_s18 + $0x108] ss:$16 sps:$4 sm:$0xff]  }
 0x37d   :  { %5890 = vmatprep.subr.bf16.mxu1 %v6873_v5  ;;  %3299 = vmatpush1.bf16.msra.mxu0 %v6425_v27  ;;  %v6487_v27 = vld [vmem:[%s9052_s20 + $0xc] ss:$28 sps:$4 sm:$0xff]  }
 0x37e   :  { %3300 = vmatprep.subr.bf16.mxu0 %v6433_v25  ;;  %v2702_v25 = vld [vmem:[%s9049_s17] sm:$0x3] }
 0x381   :  { %3301 = vmatpush1.bf16.msra.mxu0 %v6431_v40  ;;  %v2707_v40 = vrot.slane %v2702_v25, %v7767_v31 }
 0x382   :  { %3302 = vmatprep.subr.bf16.mxu0 %v6439_v42  ;;  %v2711_v42 = vrot.slane %v2702_v25, %v7775_v33  ;;  %v6556_v25 = vld [vmem:[%s9052_s20 + $0x2a4] ss:$28 sps:$4 sm:$0xff]  }
 0x385   :  { %3303 = vmatpush1.bf16.msra.mxu0 %v6437_v16 }
 0x44a   :  { %v2514_v44 = vpop.f32.mrb[20].mxu1 }
 0x44b   :  { %v2515_v46 = vadd.f32 %v5456_v45, %v2514_v44  ;;  %v5880_v47 = vpop.f32.mrb[21].mxu1  ;;  %v6445_v45 = vld [vmem:[%s9050_s18 + $0x12c] ss:$16 sps:$4 sm:$0xff]   ;;  %v6443_v44 = vld [vmem:[%s9050_s18 + $0x128] ss:$16 sps:$4 sm:$0xff]  }
 0x44c   :  { %v2517_v48 = vpop.f32.mrb[22].mxu1  ;;  %3304 = vmatprep.subr.bf16.mxu0 %v6445_v45  ;;  %v6449_v47 = vld [vmem:[%s9050_s18 + $0x148] ss:$16 sps:$4 sm:$0xff]  }
 0x44d   :  { %v2520_v49 = vmax.f32 %v2515_v46, 0.0  ;;  %v5881_v50 = vpop.f32.mrb[23].mxu1  ;;  %v6451_v46 = vld [vmem:[%s9050_s18 + $0x14c] ss:$16 sps:$4 sm:$0xff]   ;;  %3305 = vmatpush1.bf16.msra.mxu0 %v6443_v44 }
 0x44e   :  { %3306 = vmatprep.subr.bf16.mxu0 %v6451_v46  ;;  %v6457_v48 = vld [vmem:[%s9050_s18 + $0x16c] ss:$16 sps:$4 sm:$0xff]  }
 0x44f   :  { %2524 = vrot.lane.b32.xlu0 %v2520_v49, %s6875_s27  ;;  %2522 = vst.msk [vmem:[#allocation4] sm:$0xf] %vm2521_vm2, %v2520_v49  ;;  %v6463_v50 = vld [vmem:[%s9050_s18 + $0x18c] ss:$16 sps:$4 sm:$0xff]  }
 0x451   :  { %3307 = vmatpush1.bf16.msra.mxu0 %v6449_v47 }
 0x452   :  { %3308 = vmatprep.subr.bf16.mxu0 %v6457_v48 }
 0x4c1   :  { %v2525_v52 = vpop.permute.xlu0 %2524 }
 0x4c2   :  { %2527 = vst.msk [vmem:[#allocation6] sm:$0xf] %vm2521_vm2, %v2525_v52  ;;  %v2529_v53 = vmul.f32 %v2528_v51, %v2525_v52  ;;  %v6461_v51 = vld [vmem:[%s9050_s18 + $0x188] ss:$16 sps:$4 sm:$0xff]   ;;  %v6469_v52 = vld [vmem:[%s9050_s18 + $0x1ac] ss:$16 sps:$4 sm:$0xff]  }
 0x4c4   :  { %v2530_v54 = vadd.f32 %v2529_v53, %v2520_v49  ;;  %v6455_v49 = vld [vmem:[%s9050_s18 + $0x168] ss:$16 sps:$4 sm:$0xff]  }
 0x4c5   :  { %3309 = vmatpush1.bf16.msra.mxu0 %v6455_v49  ;;  %v6467_v53 = vld [vmem:[%s9050_s18 + $0x1a8] ss:$16 sps:$4 sm:$0xff]  }
 0x4c6   :  { %v2531_v32 = vpack.c.bf16 %v2530_v54, %v2530_v54  ;;  %3310 = vmatprep.subr.bf16.mxu0 %v6463_v50  ;;  %v5469_v54 = vld [vmem:[%s9047_s15] ss:$0 sm:$0xff] }
 0x4c8   :  { %5887 = vmatmul.mubr.msk.bf16.vlgmr.msra.gmra.mrb[24].mxu1 %vm2555_vm3, %v2531_v32 }
 0x4c9   :  { %5891 = vmatpush3.bf16.msra.mxu1 %v6358_v41  ;;  %5898 = vmatprep.mubr.msk.bf16.mxu1 %vm6874_vm1, %v6873_v5 }
 0x4ca   :  { %5892 = vmatprep.subr.bf16.mxu1 %v6873_v5  ;;  %3311 = vmatpush1.bf16.msra.mxu0 %v6461_v51 }
 0x4cb   :  { %3312 = vmatprep.subr.bf16.mxu0 %v6469_v52  ;;  %v6482_v52 = vld [vmem:[%s9052_s20] ss:$28 sps:$4 sm:$0xff]  }
 0x4cd   :  { %5893 = vmatpush3.bf16.msra.mxu1 %v6359_v55 }
 0x4ce   :  { %5894 = vmatprep.subr.bf16.mxu1 %v6873_v5  ;;  %3313 = vmatpush1.bf16.msra.mxu0 %v6467_v53  ;;  %v6485_v53 = vld [vmem:[%s9052_s20 + $0x8] ss:$28 sps:$4 sm:$0xff]  }
 0x4cf   :  { %3314 = vmatprep.subr.bf16.mxu0 %v6475_v28  ;;  %v6539_v28 = vld [vmem:[%s9052_s20 + $0x200] ss:$28 sps:$4 sm:$0xff]  }
 0x4d1   :  { %5895 = vmatpush3.bf16.msra.mxu1 %v6360_v43 }
 0x4d2   :  { %5896 = vmatprep.subr.bf16.mxu1 %v6873_v5  ;;  %v6367_v5 = vld [vmem:[%s9048_s16 + $0x14] ss:$8 sps:$4 sm:$0xff]   ;;  %3315 = vmatpush1.bf16.msra.mxu0 %v6473_v36 }
 0x4d3   :  { %3316 = vmatprep.subr.bf16.mxu0 %v6481_v18  ;;  %v6547_v36 = vld [vmem:[%s9052_s20 + $0x23c] ss:$28 sps:$4 sm:$0xff]  }
 0x4d4   :  { %v6545_v18 = vld [vmem:[%s9052_s20 + $0x238] ss:$28 sps:$4 sm:$0xff]  }
 0x4d5   :  { %5897 = vmatpush3.bf16.msra.mxu1 %v6361_v56 }
 0x4d6   :  { %2794 = vmatprep.subr.bf16.mxu1 %v6364_v57  ;;  %3317 = vmatpush1.bf16.msra.mxu0 %v6479_v38  ;;  %v6553_v38 = vld [vmem:[%s9052_s20 + $0x274] ss:$28 sps:$4 sm:$0xff]  }
 0x4d7   :  { %4862 = vmatprep.subr.bf16.mxu0 %v6487_v27  ;;  %v6551_v27 = vld [vmem:[%s9052_s20 + $0x270] ss:$28 sps:$4 sm:$0xff]  }
 0x59b   :  { %v2593_v59 = vpop.f32.mrb[24].mxu1 }
 0x59c   :  { %v2594_v60 = vadd.f32 %v5465_v58, %v2593_v59  ;;  %v5888_v62 = vpop.f32.mrb[25].mxu1  ;;  %v6386_v58 = vld [vmem:[%s9050_s18] ss:$16 sps:$4 sm:$0xff]  }
 0x59d   :  { %v2596_v63 = vpop.f32.mrb[26].mxu1  ;;  %v6392_v62 = vld [vmem:[%s9050_s18 + $0x20] ss:$16 sps:$4 sm:$0xff]  }
 0x59e   :  { %v2599_v0 = vmax.f32 %v2594_v60, 0.0  ;;  %v5889_v1 = vpop.f32.mrb[27].mxu1  ;;  %v6394_v60 = vld [vmem:[%s9050_s18 + $0x24] ss:$16 sps:$4 sm:$0xff]  }
 0x59f   :  { %v6400_v63 = vld [vmem:[%s9050_s18 + $0x44] ss:$16 sps:$4 sm:$0xff]  }
 0x5a0   :  { %v2600_v4 = vpack.c.bf16 %v2599_v0, %v2599_v0  ;;  %v6398_v0 = vld [vmem:[%s9050_s18 + $0x40] ss:$16 sps:$4 sm:$0xff]   ;;  %v6406_v1 = vld [vmem:[%s9050_s18 + $0x64] ss:$16 sps:$4 sm:$0xff]  }
 0x5a2   :  { %5899 = vmatmul.mubr.msk.bf16.vlgmr.msra.gmra.mrb[28].mxu1 %vm2640_vm4, %v2600_v4  ;;  %v6412_v4 = vld [vmem:[%s9050_s18 + $0x84] ss:$16 sps:$4 sm:$0xff]  }
 0x5a3   :  { %2795 = vmatpush1.bf16.msra.mxu1 %v6362_v3  ;;  %2826 = vmatprep.mubr.bf16.mxu1 %v6872_v2  ;;  %v6371_v2 = vld [vmem:[%s9048_s16 + $0x30] ss:$8 sps:$4 sm:$0xff]  }
 0x5a4   :  { %2796 = vmatprep.subr.bf16.mxu1 %v6367_v5  ;;  %v6404_v3 = vld [vmem:[%s9050_s18 + $0x60] ss:$16 sps:$4 sm:$0xff]  }
 0x5a5   :  { %v6410_v5 = vld [vmem:[%s9050_s18 + $0x80] ss:$16 sps:$4 sm:$0xff]  }
 0x5a7   :  { %2797 = vmatpush1.bf16.msra.mxu1 %v6365_v6  ;;  %v6418_v6 = vld [vmem:[%s9050_s18 + $0xa4] ss:$16 sps:$4 sm:$0xff]  }
 0x5a8   :  { %2798 = vmatprep.subr.bf16.mxu1 %v6370_v7  ;;  %v6416_v7 = vld [vmem:[%s9050_s18 + $0xa0] ss:$16 sps:$4 sm:$0xff]  }
 0x5ab   :  { %2799 = vmatpush1.bf16.msra.mxu1 %v6368_v8  ;;  %v6424_v8 = vld [vmem:[%s9050_s18 + $0xc4] ss:$16 sps:$4 sm:$0xff]  }
 0x5ac   :  { %2800 = vmatprep.subr.bf16.mxu1 %v6373_v9  ;;  %v6422_v9 = vld [vmem:[%s9050_s18 + $0xc0] ss:$16 sps:$4 sm:$0xff]  }
 0x5af   :  { %2801 = vmatpush1.bf16.msra.mxu1 %v6371_v2  ;;  %v6430_v2 = vld [vmem:[%s9050_s18 + $0xe4] ss:$16 sps:$4 sm:$0xff]  }
 0x5b0   :  { %2802 = vmatprep.subr.bf16.mxu1 %v6376_v10  ;;  %v6428_v10 = vld [vmem:[%s9050_s18 + $0xe0] ss:$16 sps:$4 sm:$0xff]  }
 0x5b3   :  { %2803 = vmatpush1.bf16.msra.mxu1 %v6374_v11  ;;  %v6436_v11 = vld [vmem:[%s9050_s18 + $0x104] ss:$16 sps:$4 sm:$0xff]  }
 0x5b4   :  { %2804 = vmatprep.subr.bf16.mxu1 %v6379_v12  ;;  %v6434_v12 = vld [vmem:[%s9050_s18 + $0x100] ss:$16 sps:$4 sm:$0xff]  }
 0x5b7   :  { %2805 = vmatpush1.bf16.msra.mxu1 %v6377_v13  ;;  %v6442_v13 = vld [vmem:[%s9050_s18 + $0x124] ss:$16 sps:$4 sm:$0xff]  }
 0x5b8   :  { %2806 = vmatprep.subr.bf16.mxu1 %v6382_v14  ;;  %v6440_v14 = vld [vmem:[%s9050_s18 + $0x120] ss:$16 sps:$4 sm:$0xff]  }
 0x5bb   :  { %2807 = vmatpush1.bf16.msra.mxu1 %v6380_v15  ;;  %v6448_v15 = vld [vmem:[%s9050_s18 + $0x144] ss:$16 sps:$4 sm:$0xff]  }
 0x5bc   :  { %2808 = vmatprep.subr.bf16.mxu1 %v6385_v17  ;;  %v6446_v17 = vld [vmem:[%s9050_s18 + $0x140] ss:$16 sps:$4 sm:$0xff]  }
 0x5bf   :  { %2809 = vmatpush1.bf16.msra.mxu1 %v6383_v19  ;;  %v6454_v19 = vld [vmem:[%s9050_s18 + $0x164] ss:$16 sps:$4 sm:$0xff]  }
 0x5c0   :  { %3245 = vmatprep.subr.bf16.mxu1 %v6388_v20  ;;  %v6452_v20 = vld [vmem:[%s9050_s18 + $0x160] ss:$16 sps:$4 sm:$0xff]  }
 0x675   :  { %v2678_v41 = vpop.f32.mrb[28].mxu1 }
 0x676   :  { %v2679_v32 = vadd.f32 %v5469_v54, %v2678_v41  ;;  %v5900_v55 = vpop.f32.mrb[29].mxu1  ;;  %v6490_v41 = vld [vmem:[%s9052_s20 + $0x3c] ss:$28 sps:$4 sm:$0xff]  }
 0x677   :  { %v2681_v43 = vpop.f32.mrb[30].mxu1  ;;  %v6488_v55 = vld [vmem:[%s9052_s20 + $0x38] ss:$28 sps:$4 sm:$0xff]  }
 0x678   :  { %v2684_v56 = vmax.f32 %v2679_v32, 0.0  ;;  %v5901_v57 = vpop.f32.mrb[31].mxu1  ;;  %v6493_v32 = vld [vmem:[%s9052_s20 + $0x44] ss:$28 sps:$4 sm:$0xff]  }
 0x679   :  { %v6491_v43 = vld [vmem:[%s9052_s20 + $0x40] ss:$28 sps:$4 sm:$0xff]  }
 0x67a   :  { %v2685_v59 = vpack.c.bf16 %v2684_v56, %v2684_v56  ;;  %v6496_v56 = vld [vmem:[%s9052_s20 + $0x74] ss:$28 sps:$4 sm:$0xff]   ;;  %v6499_v57 = vld [vmem:[%s9052_s20 + $0x7c] ss:$28 sps:$4 sm:$0xff]  }
 0x67c   :  { %2827 = vmatmul.mubr.bf16.vlgmr.msra.gmra.mrb[32].mxu1 %v2685_v59  ;;  %v6497_v59 = vld [vmem:[%s9052_s20 + $0x78] ss:$28 sps:$4 sm:$0xff]  }
 0x67d   :  { %3246 = vmatpush1.bf16.msra.mxu1 %v6386_v58  ;;  %v6494_v58 = vld [vmem:[%s9052_s20 + $0x70] ss:$28 sps:$4 sm:$0xff]  }
 0x67e   :  { %3247 = vmatprep.subr.bf16.mxu1 %v6394_v60  ;;  %v6502_v60 = vld [vmem:[%s9052_s20 + $0xac] ss:$28 sps:$4 sm:$0xff]  }
 0x681   :  { %3248 = vmatpush1.bf16.msra.mxu1 %v6392_v62  ;;  %v6505_v62 = vld [vmem:[%s9052_s20 + $0xb4] ss:$28 sps:$4 sm:$0xff]  }
 0x682   :  { %3249 = vmatprep.subr.bf16.mxu1 %v6400_v63  ;;  %v6500_v63 = vld [vmem:[%s9052_s20 + $0xa8] ss:$28 sps:$4 sm:$0xff]  }
 0x685   :  { %3250 = vmatpush1.bf16.msra.mxu1 %v6398_v0  ;;  %v6503_v0 = vld [vmem:[%s9052_s20 + $0xb0] ss:$28 sps:$4 sm:$0xff]  }
 0x686   :  { %3251 = vmatprep.subr.bf16.mxu1 %v6406_v1  ;;  %v6508_v1 = vld [vmem:[%s9052_s20 + $0xe4] ss:$28 sps:$4 sm:$0xff]  }
 0x689   :  { %3252 = vmatpush1.bf16.msra.mxu1 %v6404_v3  ;;  %v6511_v3 = vld [vmem:[%s9052_s20 + $0xec] ss:$28 sps:$4 sm:$0xff]  }
 0x68a   :  { %3253 = vmatprep.subr.bf16.mxu1 %v6412_v4  ;;  %v6506_v4 = vld [vmem:[%s9052_s20 + $0xe0] ss:$28 sps:$4 sm:$0xff]  }
 0x68d   :  { %3254 = vmatpush1.bf16.msra.mxu1 %v6410_v5  ;;  %v6509_v5 = vld [vmem:[%s9052_s20 + $0xe8] ss:$28 sps:$4 sm:$0xff]  }
 0x68e   :  { %3255 = vmatprep.subr.bf16.mxu1 %v6418_v6  ;;  %v6514_v6 = vld [vmem:[%s9052_s20 + $0x11c] ss:$28 sps:$4 sm:$0xff]  }
 0x691   :  { %3256 = vmatpush1.bf16.msra.mxu1 %v6416_v7  ;;  %v6517_v7 = vld [vmem:[%s9052_s20 + $0x124] ss:$28 sps:$4 sm:$0xff]  }
 0x692   :  { %3257 = vmatprep.subr.bf16.mxu1 %v6424_v8  ;;  %v6512_v8 = vld [vmem:[%s9052_s20 + $0x118] ss:$28 sps:$4 sm:$0xff]  }
 0x695   :  { %3258 = vmatpush1.bf16.msra.mxu1 %v6422_v9  ;;  %v6515_v9 = vld [vmem:[%s9052_s20 + $0x120] ss:$28 sps:$4 sm:$0xff]  }
 0x696   :  { %3259 = vmatprep.subr.bf16.mxu1 %v6430_v2  ;;  %v6520_v2 = vld [vmem:[%s9052_s20 + $0x154] ss:$28 sps:$4 sm:$0xff]  }
 0x699   :  { %3260 = vmatpush1.bf16.msra.mxu1 %v6428_v10  ;;  %v6523_v10 = vld [vmem:[%s9052_s20 + $0x15c] ss:$28 sps:$4 sm:$0xff]  }
 0x69a   :  { %3261 = vmatprep.subr.bf16.mxu1 %v6436_v11  ;;  %v6518_v11 = vld [vmem:[%s9052_s20 + $0x150] ss:$28 sps:$4 sm:$0xff]  }
 0x69d   :  { %3262 = vmatpush1.bf16.msra.mxu1 %v6434_v12  ;;  %v6521_v12 = vld [vmem:[%s9052_s20 + $0x158] ss:$28 sps:$4 sm:$0xff]  }
 0x69e   :  { %3263 = vmatprep.subr.bf16.mxu1 %v6442_v13  ;;  %v6526_v13 = vld [vmem:[%s9052_s20 + $0x18c] ss:$28 sps:$4 sm:$0xff]  }
 0x6a1   :  { %3264 = vmatpush1.bf16.msra.mxu1 %v6440_v14  ;;  %v6529_v14 = vld [vmem:[%s9052_s20 + $0x194] ss:$28 sps:$4 sm:$0xff]  }
 0x6a2   :  { %3265 = vmatprep.subr.bf16.mxu1 %v6448_v15  ;;  %v6524_v15 = vld [vmem:[%s9052_s20 + $0x188] ss:$28 sps:$4 sm:$0xff]  }
 0x6a5   :  { %3266 = vmatpush1.bf16.msra.mxu1 %v6446_v17  ;;  %v6527_v17 = vld [vmem:[%s9052_s20 + $0x190] ss:$28 sps:$4 sm:$0xff]  }
 0x6a6   :  { %3267 = vmatprep.subr.bf16.mxu1 %v6454_v19  ;;  %v6532_v19 = vld [vmem:[%s9052_s20 + $0x1c4] ss:$28 sps:$4 sm:$0xff]  }
 0x6a9   :  { %3268 = vmatpush1.bf16.msra.mxu1 %v6452_v20  ;;  %v6535_v20 = vld [vmem:[%s9052_s20 + $0x1cc] ss:$28 sps:$4 sm:$0xff]  }
 0x6aa   :  { %3269 = vmatprep.subr.bf16.mxu1 %v6460_v21  ;;  %v6530_v21 = vld [vmem:[%s9052_s20 + $0x1c0] ss:$28 sps:$4 sm:$0xff]  }
 0x6ad   :  { %3270 = vmatpush1.bf16.msra.mxu1 %v6458_v22  ;;  %v6533_v22 = vld [vmem:[%s9052_s20 + $0x1c8] ss:$28 sps:$4 sm:$0xff]  }
 0x6ae   :  { %3271 = vmatprep.subr.bf16.mxu1 %v6466_v23  ;;  %v6538_v23 = vld [vmem:[%s9052_s20 + $0x1fc] ss:$28 sps:$4 sm:$0xff]  }
 0x6b1   :  { %3272 = vmatpush1.bf16.msra.mxu1 %v6464_v24  ;;  %v6541_v24 = vld [vmem:[%s9052_s20 + $0x204] ss:$28 sps:$4 sm:$0xff]  }
 0x6b2   :  { %3273 = vmatprep.subr.bf16.mxu1 %v6472_v26  ;;  %v6536_v26 = vld [vmem:[%s9052_s20 + $0x1f8] ss:$28 sps:$4 sm:$0xff]  }
 0x6b5   :  { %3274 = vmatpush1.bf16.msra.mxu1 %v6470_v34  ;;  %v6544_v34 = vld [vmem:[%s9052_s20 + $0x234] ss:$28 sps:$4 sm:$0xff]  }
 0x6b6   :  { %3275 = vmatprep.subr.bf16.mxu1 %v6478_v37  ;;  %v6542_v37 = vld [vmem:[%s9052_s20 + $0x230] ss:$28 sps:$4 sm:$0xff]  }
 0x6b9   :  { %3276 = vmatpush1.bf16.msra.mxu1 %v6476_v61  ;;  %v6550_v61 = vld [vmem:[%s9052_s20 + $0x26c] ss:$28 sps:$4 sm:$0xff]  }
 0x6ba   :  { %4780 = vmatprep.subr.bf16.mxu1 %v6484_v39  ;;  %v6548_v39 = vld [vmem:[%s9052_s20 + $0x268] ss:$28 sps:$4 sm:$0xff]  }
 0x74f   :  { %v2828_v16 = vpop.f32.mrb[32].mxu1 }
 0x750   :  { %v2829_v45 = vadd.f32 %v2828_v16, %v2707_v40  ;;  %v2830_v44 = vpop.f32.mrb[33].mxu1  ;;  %v6559_v40 = vld [vmem:[%s9052_s20 + $0x2ac] ss:$28 sps:$4 sm:$0xff]  }
 0x751   :  { %v2831_v46 = vadd.f32 %v2830_v44, %v2711_v42  ;;  %v2832_v47 = vpop.f32.mrb[34].mxu1  ;;  %v6554_v42 = vld [vmem:[%s9052_s20 + $0x2a0] ss:$28 sps:$4 sm:$0xff]   ;;  %v6557_v16 = vld [vmem:[%s9052_s20 + $0x2a8] ss:$28 sps:$4 sm:$0xff]  }
 0x752   :  { %v2835_v48 = vmax.f32 %v2829_v45, 0.0  ;;  %v2833_v49 = vpop.f32.mrb[35].mxu1  ;;  %v6562_v45 = vld [vmem:[%s9052_s20 + $0x2dc] ss:$28 sps:$4 sm:$0xff]   ;;  %v6565_v44 = vld [vmem:[%s9052_s20 + $0x2e4] ss:$28 sps:$4 sm:$0xff]  }
 0x753   :  { %v2836_v50 = vmax.f32 %v2831_v46, 0.0  ;;  %v6560_v46 = vld [vmem:[%s9052_s20 + $0x2d8] ss:$28 sps:$4 sm:$0xff]   ;;  %v6563_v47 = vld [vmem:[%s9052_s20 + $0x2e0] ss:$28 sps:$4 sm:$0xff]  }
 0x754   :  { %v2837_v54 = vpack.c.bf16 %v2835_v48, %v2835_v48  ;;  %v6568_v48 = vld [vmem:[%s9052_s20 + $0x314] ss:$28 sps:$4 sm:$0xff]   ;;  %v6571_v49 = vld [vmem:[%s9052_s20 + $0x31c] ss:$28 sps:$4 sm:$0xff]  }
 0x755   :  { %v2838_v51 = vpack.c.bf16 %v2836_v50, %v2836_v50  ;;  %v6566_v50 = vld [vmem:[%s9052_s20 + $0x310] ss:$28 sps:$4 sm:$0xff]  }
 0x757   :  { %3277 = vmatprep.mubr.bf16.mxu1 %v2838_v51  ;;  %3318 = vmatprep.mubr.bf16.mxu0 %v2838_v51  ;;  %v6569_v51 = vld [vmem:[%s9052_s20 + $0x318] ss:$28 sps:$4 sm:$0xff]  }
 0x758   :  { %3278 = vmatmul.mubr.bf16.vlgmr.msra.gmra.mrb[36].mxu1 %v2837_v54  ;;  %3319 = vmatmul.mubr.bf16.vlgmr.msra.gmra.mrb[28].mxu0 %v2837_v54  ;;  %v6572_v54 = vld [vmem:[%s9052_s20 + $0x348] ss:$28 sps:$4 sm:$0xff]  }
 0x759   :  { %4781 = vmatpush1.bf16.msra.mxu1 %v6482_v52  ;;  %4863 = vmatpush1.bf16.msra.mxu0 %v6485_v53  ;;  %v6574_v52 = vld [vmem:[%s9052_s20 + $0x34c] ss:$28 sps:$4 sm:$0xff]   ;;  %v6577_v53 = vld [vmem:[%s9052_s20 + $0x354] ss:$28 sps:$4 sm:$0xff]  }
 0x75a   :  { %4782 = vmatprep.subr.bf16.mxu1 %v6490_v41  ;;  %4864 = vmatprep.subr.bf16.mxu0 %v6493_v32  ;;  %v6575_v41 = vld [vmem:[%s9052_s20 + $0x350] ss:$28 sps:$4 sm:$0xff]   ;;  %v6580_v32 = vld [vmem:[%s9052_s20 + $0x384] ss:$28 sps:$4 sm:$0xff]  }
 0x75d   :  { %4783 = vmatpush1.bf16.msra.mxu1 %v6488_v55  ;;  %4865 = vmatpush1.bf16.msra.mxu0 %v6491_v43  ;;  %v6583_v55 = vld [vmem:[%s9052_s20 + $0x38c] ss:$28 sps:$4 sm:$0xff]   ;;  %v8466_v43 = vld [vmem:[%s9051_s19] sm:$0xf] }
 0x75e   :  { %4784 = vmatprep.subr.bf16.mxu1 %v6496_v56  ;;  %4866 = vmatprep.subr.bf16.mxu0 %v6499_v57  ;;  %v2908_v56 = vrot.slane %v8466_v43, %v7767_v31  ;;  %v2912_v57 = vrot.slane %v8466_v43, %v7775_v33 }
 0x761   :  { %4785 = vmatpush1.bf16.msra.mxu1 %v6494_v58  ;;  %4867 = vmatpush1.bf16.msra.mxu0 %v6497_v59  ;;  %v2920_v58 = vrot.slane %v8466_v43, %v7883_v35 }
 0x762   :  { %4786 = vmatprep.subr.bf16.mxu1 %v6502_v60  ;;  %4868 = vmatprep.subr.bf16.mxu0 %v6505_v62 }
 0x765   :  { %4787 = vmatpush1.bf16.msra.mxu1 %v6500_v63  ;;  %4869 = vmatpush1.bf16.msra.mxu0 %v6503_v0 }
 0x766   :  { %4788 = vmatprep.subr.bf16.mxu1 %v6508_v1  ;;  %4870 = vmatprep.subr.bf16.mxu0 %v6511_v3 }
 0x769   :  { %4789 = vmatpush1.bf16.msra.mxu1 %v6506_v4  ;;  %4871 = vmatpush1.bf16.msra.mxu0 %v6509_v5 }
 0x76a   :  { %4790 = vmatprep.subr.bf16.mxu1 %v6514_v6  ;;  %4872 = vmatprep.subr.bf16.mxu0 %v6517_v7 }
 0x76d   :  { %4791 = vmatpush1.bf16.msra.mxu1 %v6512_v8  ;;  %4873 = vmatpush1.bf16.msra.mxu0 %v6515_v9 }
 0x76e   :  { %4792 = vmatprep.subr.bf16.mxu1 %v6520_v2  ;;  %4874 = vmatprep.subr.bf16.mxu0 %v6523_v10 }
 0x771   :  { %4793 = vmatpush1.bf16.msra.mxu1 %v6518_v11  ;;  %4875 = vmatpush1.bf16.msra.mxu0 %v6521_v12  ;;  %v6578_v11 = vld [vmem:[%s9052_s20 + $0x380] ss:$28 sps:$4 sm:$0xff]   ;;  %v6581_v12 = vld [vmem:[%s9052_s20 + $0x388] ss:$28 sps:$4 sm:$0xff]  }
 0x772   :  { %4794 = vmatprep.subr.bf16.mxu1 %v6526_v13  ;;  %4876 = vmatprep.subr.bf16.mxu0 %v6529_v14  ;;  %v6586_v14 = vld [vmem:[%s9052_s20 + $0x3bc] ss:$28 sps:$4 sm:$0xff]  }
 0x775   :  { %4795 = vmatpush1.bf16.msra.mxu1 %v6524_v15  ;;  %4877 = vmatpush1.bf16.msra.mxu0 %v6527_v17  ;;  %v6589_v15 = vld [vmem:[%s9052_s20 + $0x3c4] ss:$28 sps:$4 sm:$0xff]  }
 0x776   :  { %4796 = vmatprep.subr.bf16.mxu1 %v6532_v19  ;;  %4878 = vmatprep.subr.bf16.mxu0 %v6535_v20  ;;  %v6584_v19 = vld [vmem:[%s9052_s20 + $0x3b8] ss:$28 sps:$4 sm:$0xff]   ;;  %v6587_v20 = vld [vmem:[%s9052_s20 + $0x3c0] ss:$28 sps:$4 sm:$0xff]  }
 0x779   :  { %4797 = vmatpush1.bf16.msra.mxu1 %v6530_v21  ;;  %4879 = vmatpush1.bf16.msra.mxu0 %v6533_v22  ;;  %v6592_v21 = vld [vmem:[%s9052_s20 + $0x3f4] ss:$28 sps:$4 sm:$0xff]   ;;  %v6595_v22 = vld [vmem:[%s9052_s20 + $0x3fc] ss:$28 sps:$4 sm:$0xff]  }
 0x77a   :  { %4798 = vmatprep.subr.bf16.mxu1 %v6538_v23  ;;  %4880 = vmatprep.subr.bf16.mxu0 %v6541_v24  ;;  %v6590_v23 = vld [vmem:[%s9052_s20 + $0x3f0] ss:$28 sps:$4 sm:$0xff]   ;;  %v6593_v24 = vld [vmem:[%s9052_s20 + $0x3f8] ss:$28 sps:$4 sm:$0xff]  }
 0x77d   :  { %4799 = vmatpush1.bf16.msra.mxu1 %v6536_v26  ;;  %4881 = vmatpush1.bf16.msra.mxu0 %v6539_v28  ;;  %v6598_v26 = vld [vmem:[%s9052_s20 + $0x42c] ss:$28 sps:$4 sm:$0xff]   ;;  %v6601_v28 = vld [vmem:[%s9052_s20 + $0x434] ss:$28 sps:$4 sm:$0xff]  }
 0x77e   :  { %4800 = vmatprep.subr.bf16.mxu1 %v6544_v34  ;;  %4882 = vmatprep.subr.bf16.mxu0 %v6547_v36  ;;  %v6596_v34 = vld [vmem:[%s9052_s20 + $0x428] ss:$28 sps:$4 sm:$0xff]   ;;  %v6599_v36 = vld [vmem:[%s9052_s20 + $0x430] ss:$28 sps:$4 sm:$0xff]  }
 0x781   :  { %4801 = vmatpush1.bf16.msra.mxu1 %v6542_v37  ;;  %4883 = vmatpush1.bf16.msra.mxu0 %v6545_v18  ;;  %v6604_v37 = vld [vmem:[%s9052_s20 + $0x464] ss:$28 sps:$4 sm:$0xff]   ;;  %v6607_v18 = vld [vmem:[%s9052_s20 + $0x46c] ss:$28 sps:$4 sm:$0xff]  }
 0x782   :  { %4802 = vmatprep.subr.bf16.mxu1 %v6550_v61  ;;  %4884 = vmatprep.subr.bf16.mxu0 %v6553_v38  ;;  %v6602_v61 = vld [vmem:[%s9052_s20 + $0x460] ss:$28 sps:$4 sm:$0xff]   ;;  %v6605_v38 = vld [vmem:[%s9052_s20 + $0x468] ss:$28 sps:$4 sm:$0xff]  }
 0x785   :  { %4803 = vmatpush1.bf16.msra.mxu1 %v6548_v39  ;;  %4885 = vmatpush1.bf16.msra.mxu0 %v6551_v27  ;;  %v6610_v39 = vld [vmem:[%s9052_s20 + $0x49c] ss:$28 sps:$4 sm:$0xff]   ;;  %v6613_v27 = vld [vmem:[%s9052_s20 + $0x4a4] ss:$28 sps:$4 sm:$0xff]  }
 0x786   :  { %4804 = vmatprep.subr.bf16.mxu1 %v6556_v25  ;;  %4886 = vmatprep.subr.bf16.mxu0 %v6559_v40  ;;  %v6608_v25 = vld [vmem:[%s9052_s20 + $0x498] ss:$28 sps:$4 sm:$0xff]   ;;  %v6611_v40 = vld [vmem:[%s9052_s20 + $0x4a0] ss:$28 sps:$4 sm:$0xff]  }
 0x789   :  { %4805 = vmatpush1.bf16.msra.mxu1 %v6554_v42  ;;  %4887 = vmatpush1.bf16.msra.mxu0 %v6557_v16  ;;  %v6616_v42 = vld [vmem:[%s9052_s20 + $0x4d4] ss:$28 sps:$4 sm:$0xff]   ;;  %v6619_v16 = vld [vmem:[%s9052_s20 + $0x4dc] ss:$28 sps:$4 sm:$0xff]  }
 0x78a   :  { %4806 = vmatprep.subr.bf16.mxu1 %v6562_v45  ;;  %4888 = vmatprep.subr.bf16.mxu0 %v6565_v44  ;;  %v6614_v45 = vld [vmem:[%s9052_s20 + $0x4d0] ss:$28 sps:$4 sm:$0xff]   ;;  %v6617_v44 = vld [vmem:[%s9052_s20 + $0x4d8] ss:$28 sps:$4 sm:$0xff]  }
 0x78d   :  { %4807 = vmatpush1.bf16.msra.mxu1 %v6560_v46  ;;  %4889 = vmatpush1.bf16.msra.mxu0 %v6563_v47  ;;  %v6622_v46 = vld [vmem:[%s9052_s20 + $0x50c] ss:$28 sps:$4 sm:$0xff]   ;;  %v6625_v47 = vld [vmem:[%s9052_s20 + $0x514] ss:$28 sps:$4 sm:$0xff]  }
 0x78e   :  { %4808 = vmatprep.subr.bf16.mxu1 %v6568_v48  ;;  %4890 = vmatprep.subr.bf16.mxu0 %v6571_v49  ;;  %v6620_v48 = vld [vmem:[%s9052_s20 + $0x508] ss:$28 sps:$4 sm:$0xff]   ;;  %v6623_v49 = vld [vmem:[%s9052_s20 + $0x510] ss:$28 sps:$4 sm:$0xff]  }
 0x791   :  { %4809 = vmatpush1.bf16.msra.mxu1 %v6566_v50  ;;  %4891 = vmatpush1.bf16.msra.mxu0 %v6569_v51  ;;  %v6628_v50 = vld [vmem:[%s9052_s20 + $0x544] ss:$28 sps:$4 sm:$0xff]   ;;  %v6631_v51 = vld [vmem:[%s9052_s20 + $0x54c] ss:$28 sps:$4 sm:$0xff]  }
 0x792   :  { %4810 = vmatprep.subr.bf16.mxu1 %v6574_v52  ;;  %4892 = vmatprep.subr.bf16.mxu0 %v6577_v53  ;;  %v6626_v52 = vld [vmem:[%s9052_s20 + $0x540] ss:$28 sps:$4 sm:$0xff]   ;;  %v6629_v53 = vld [vmem:[%s9052_s20 + $0x548] ss:$28 sps:$4 sm:$0xff]  }
 0x795   :  { %4811 = vmatpush1.bf16.msra.mxu1 %v6572_v54  ;;  %4893 = vmatpush1.bf16.msra.mxu0 %v6575_v41  ;;  %v6634_v54 = vld [vmem:[%s9052_s20 + $0x57c] ss:$28 sps:$4 sm:$0xff]   ;;  %v6637_v41 = vld [vmem:[%s9052_s20 + $0x584] ss:$28 sps:$4 sm:$0xff]  }
 0x796   :  { %4821 = vmatprep.subr.bf16.mxu1 %v6580_v32  ;;  %4903 = vmatprep.subr.bf16.mxu0 %v6583_v55  ;;  %v6632_v32 = vld [vmem:[%s9052_s20 + $0x578] ss:$28 sps:$4 sm:$0xff]   ;;  %v6635_v55 = vld [vmem:[%s9052_s20 + $0x580] ss:$28 sps:$4 sm:$0xff]  }
 0x82b   :  { %v3279_v59 = vpop.f32.mrb[36].mxu1  ;;  %v8474_v60 = vpop.f32.mrb[28].mxu0 }
 0x82c   :  { %v3280_v62 = vadd.f32 %v3279_v59, %v2908_v56  ;;  %v3281_v63 = vpop.f32.mrb[37].mxu1  ;;  %v3322_v0 = vpop.f32.mrb[29].mxu0  ;;  %v6640_v56 = vld [vmem:[%s9052_s20 + $0x5b4] ss:$28 sps:$4 sm:$0xff]  }
 0x82d   :  { %v3282_v1 = vadd.f32 %v3281_v63, %v2912_v57  ;;  %v3323_v3 = vadd.f32 %v3322_v0, %v2920_v58  ;;  %v3283_v4 = vpop.f32.mrb[38].mxu1  ;;  %v3324_v5 = vpop.f32.mrb[30].mxu0  ;;  %v6643_v57 = vld [vmem:[%s9052_s20 + $0x5bc] ss:$28 sps:$4 sm:$0xff]   ;;  %v6638_v58 = vld [vmem:[%s9052_s20 + $0x5b0] ss:$28 sps:$4 sm:$0xff]  }
 0x82e   :  { %v3327_v6 = vmax.f32 %v3280_v62, 0.0  ;;  %v3284_v7 = vpop.f32.mrb[39].mxu1  ;;  %v3325_v8 = vpop.f32.mrb[31].mxu0  ;;  %v6641_v59 = vld [vmem:[%s9052_s20 + $0x5b8] ss:$28 sps:$4 sm:$0xff]  }
 0x82f   :  { %v3328_v9 = vmax.f32 %v3282_v1, 0.0  ;;  %v3330_v2 = vmax.f32 %v3323_v3, 0.0  ;;  %v6646_v62 = vld [vmem:[%s9052_s20 + $0x5ec] ss:$28 sps:$4 sm:$0xff]   ;;  %v6649_v63 = vld [vmem:[%s9052_s20 + $0x5f4] ss:$28 sps:$4 sm:$0xff]  }
 0x830   :  { %v8484_v13 = vpack.c.bf16 %v3327_v6, %v3327_v6  ;;  %v6644_v0 = vld [vmem:[%s9052_s20 + $0x5e8] ss:$28 sps:$4 sm:$0xff]   ;;  %v6647_v1 = vld [vmem:[%s9052_s20 + $0x5f0] ss:$28 sps:$4 sm:$0xff]   ;;  %v6650_v5 = vld [vmem:[%s9052_s20 + $0x620] ss:$28 sps:$4 sm:$0xff]  }
 0x831   :  { %v8476_v10 = vpack.c.bf16 %v3328_v9, %v3328_v9  ;;  %v8494_v17 = vpack.c.bf16 %v3330_v2, %v3330_v2  ;;  %v6652_v3 = vld [vmem:[%s9052_s20 + $0x624] ss:$28 sps:$4 sm:$0xff]   ;;  %v6655_v4 = vld [vmem:[%s9052_s20 + $0x62c] ss:$28 sps:$4 sm:$0xff]   ;;  %v6658_v7 = vld [vmem:[%s9052_s20 + $0x65c] ss:$28 sps:$4 sm:$0xff]  }
 0x832   :  { %v6653_v6 = vld [vmem:[%s9052_s20 + $0x628] ss:$28 sps:$4 sm:$0xff]   ;;  %v6656_v9 = vld [vmem:[%s9052_s20 + $0x658] ss:$28 sps:$4 sm:$0xff]   ;;  %v6659_v2 = vld [vmem:[%s9052_s20 + $0x660] ss:$28 sps:$4 sm:$0xff]  }
 0x833   :  { %4812 = vmatprep.mubr.bf16.mxu1 %v8476_v10  ;;  %4894 = vmatprep.mubr.bf16.mxu0 %v8476_v10  ;;  %v6661_v8 = vld [vmem:[%s9052_s20 + $0x664] ss:$28 sps:$4 sm:$0xff]  }
 0x834   :  { %4813 = vmatmul.mubr.bf16.vlgmr.msra.gmra.mrb[40].mxu1 %v8484_v13  ;;  %4895 = vmatmul.mubr.bf16.vlgmr.msra.gmra.mrb[32].mxu0 %v8484_v13 }
 0x835   :  { %4822 = vmatpush1.bf16.msra.mxu1 %v6578_v11  ;;  %4904 = vmatpush1.bf16.msra.mxu0 %v6581_v12  ;;  %v2916_v11 = vrot.slane %v8466_v43, %v7877_v29  ;;  %v6664_v12 = vld [vmem:[%s9052_s20 + $0x694] ss:$28 sps:$4 sm:$0xff]  }
 0x836   :  { %4853 = vmatprep.mubr.bf16.mxu1 %v8494_v17  ;;  %4935 = vmatprep.mubr.bf16.mxu0 %v8494_v17  ;;  %v6665_v43 = vld [vmem:[%s9052_s20 + $0x698] ss:$28 sps:$4 sm:$0xff]  }
 0x837   :  { %4823 = vmatprep.subr.bf16.mxu1 %v6586_v14  ;;  %4905 = vmatprep.subr.bf16.mxu0 %v6589_v15  ;;  %v6667_v14 = vld [vmem:[%s9052_s20 + $0x69c] ss:$28 sps:$4 sm:$0xff]   ;;  %v6662_v15 = vld [vmem:[%s9052_s20 + $0x690] ss:$28 sps:$4 sm:$0xff]  }
 0x839   :  { %4824 = vmatpush1.bf16.msra.mxu1 %v6584_v19  ;;  %4906 = vmatpush1.bf16.msra.mxu0 %v6587_v20  ;;  %v3321_v19 = vadd.f32 %v8474_v60, %v2916_v11  ;;  %v6670_v20 = vld [vmem:[%s9052_s20 + $0x6cc] ss:$28 sps:$4 sm:$0xff]   ;;  %v6732_v11 = vld [vmem:[%s9052_s20 + $0x600] ss:$28 sps:$4 sm:$0xff]  }
 0x83a   :  { %4825 = vmatprep.subr.bf16.mxu1 %v6592_v21  ;;  %4907 = vmatprep.subr.bf16.mxu0 %v6595_v22  ;;  %v6673_v21 = vld [vmem:[%s9052_s20 + $0x6d4] ss:$28 sps:$4 sm:$0xff]   ;;  %v6668_v22 = vld [vmem:[%s9052_s20 + $0x6c8] ss:$28 sps:$4 sm:$0xff]  }
 0x83b   :  { %v6671_v60 = vld [vmem:[%s9052_s20 + $0x6d0] ss:$28 sps:$4 sm:$0xff]  }
 0x83d   :  { %4826 = vmatpush1.bf16.msra.mxu1 %v6590_v23  ;;  %4908 = vmatpush1.bf16.msra.mxu0 %v6593_v24  ;;  %v3329_v23 = vmax.f32 %v3321_v19, 0.0  ;;  %v6676_v24 = vld [vmem:[%s9052_s20 + $0x14] ss:$28 sps:$4 sm:$0xff]  }
 0x83e   :  { %4827 = vmatprep.subr.bf16.mxu1 %v6598_v26  ;;  %4909 = vmatprep.subr.bf16.mxu0 %v6601_v28  ;;  %v6677_v26 = vld [vmem:[%s9052_s20 + $0x1d8] ss:$28 sps:$4 sm:$0xff]   ;;  %v6674_v28 = vld [vmem:[%s9052_s20 + $0x10] ss:$28 sps:$4 sm:$0xff]  }
 0x83f   :  { %v6734_v19 = vld [vmem:[%s9052_s20 + $0x2b0] ss:$28 sps:$4 sm:$0xff]  }
 0x841   :  { %4828 = vmatpush1.bf16.msra.mxu1 %v6596_v34  ;;  %4910 = vmatpush1.bf16.msra.mxu0 %v6599_v36  ;;  %v8686_v34 = vpack.c.bf16 %v3329_v23, %v3329_v23  ;;  %v6678_v36 = vld [vmem:[%s9052_s20 + $0x18] ss:$28 sps:$4 sm:$0xff]   ;;  %v6743_v23 = vld [vmem:[%s9052_s20 + $0x4b0] ss:$28 sps:$4 sm:$0xff]  }
 0x842   :  { %4829 = vmatprep.subr.bf16.mxu1 %v6604_v37  ;;  %4911 = vmatprep.subr.bf16.mxu0 %v6607_v18  ;;  %v6681_v37 = vld [vmem:[%s9052_s20 + $0x4c] ss:$28 sps:$4 sm:$0xff]  }
 0x843   :  { %v6682_v18 = vld [vmem:[%s9052_s20 + $0x210] ss:$28 sps:$4 sm:$0xff]  }
 0x845   :  { %4830 = vmatpush1.bf16.msra.mxu1 %v6602_v61  ;;  %4912 = vmatpush1.bf16.msra.mxu0 %v6605_v38  ;;  %v6679_v61 = vld [vmem:[%s9052_s20 + $0x48] ss:$28 sps:$4 sm:$0xff]   ;;  %v6683_v38 = vld [vmem:[%s9052_s20 + $0x50] ss:$28 sps:$4 sm:$0xff]  }
 0x846   :  { %4831 = vmatprep.subr.bf16.mxu1 %v6610_v39  ;;  %4913 = vmatprep.subr.bf16.mxu0 %v6613_v27  ;;  %v6686_v39 = vld [vmem:[%s9052_s20 + $0x84] ss:$28 sps:$4 sm:$0xff]  }
 0x847   :  { %v6687_v27 = vld [vmem:[%s9052_s20 + $0x248] ss:$28 sps:$4 sm:$0xff]  }
 0x849   :  { %4832 = vmatpush1.bf16.msra.mxu1 %v6608_v25  ;;  %4914 = vmatpush1.bf16.msra.mxu0 %v6611_v40  ;;  %v6684_v25 = vld [vmem:[%s9052_s20 + $0x80] ss:$28 sps:$4 sm:$0xff]  }
 0x84a   :  { %4833 = vmatprep.subr.bf16.mxu1 %v6616_v42  ;;  %4915 = vmatprep.subr.bf16.mxu0 %v6619_v16  ;;  %v6691_v40 = vld [vmem:[%s9052_s20 + $0xbc] ss:$28 sps:$4 sm:$0xff]  }
 0x84b   :  { %v6692_v42 = vld [vmem:[%s9052_s20 + $0x280] ss:$28 sps:$4 sm:$0xff]   ;;  %v6689_v16 = vld [vmem:[%s9052_s20 + $0xb8] ss:$28 sps:$4 sm:$0xff]  }
 0x84d   :  { %4834 = vmatpush1.bf16.msra.mxu1 %v6614_v45  ;;  %4916 = vmatpush1.bf16.msra.mxu0 %v6617_v44  ;;  %v6693_v45 = vld [vmem:[%s9052_s20 + $0xc0] ss:$28 sps:$4 sm:$0xff]   ;;  %v6696_v44 = vld [vmem:[%s9052_s20 + $0xf4] ss:$28 sps:$4 sm:$0xff]  }
 0x84e   :  { %4835 = vmatprep.subr.bf16.mxu1 %v6622_v46  ;;  %4917 = vmatprep.subr.bf16.mxu0 %v6625_v47  ;;  %v6697_v46 = vld [vmem:[%s9052_s20 + $0x2b8] ss:$28 sps:$4 sm:$0xff]   ;;  %v6694_v47 = vld [vmem:[%s9052_s20 + $0xf0] ss:$28 sps:$4 sm:$0xff]  }
 0x851   :  { %4836 = vmatpush1.bf16.msra.mxu1 %v6620_v48  ;;  %4918 = vmatpush1.bf16.msra.mxu0 %v6623_v49  ;;  %v6698_v48 = vld [vmem:[%s9052_s20 + $0xf8] ss:$28 sps:$4 sm:$0xff]   ;;  %v6701_v49 = vld [vmem:[%s9052_s20 + $0x12c] ss:$28 sps:$4 sm:$0xff]  }
 0x852   :  { %4837 = vmatprep.subr.bf16.mxu1 %v6628_v50  ;;  %4919 = vmatprep.subr.bf16.mxu0 %v6631_v51  ;;  %v6702_v50 = vld [vmem:[%s9052_s20 + $0x2f0] ss:$28 sps:$4 sm:$0xff]   ;;  %v6699_v51 = vld [vmem:[%s9052_s20 + $0x128] ss:$28 sps:$4 sm:$0xff]  }
 0x855   :  { %4838 = vmatpush1.bf16.msra.mxu1 %v6626_v52  ;;  %4920 = vmatpush1.bf16.msra.mxu0 %v6629_v53  ;;  %v6703_v52 = vld [vmem:[%s9052_s20 + $0x130] ss:$28 sps:$4 sm:$0xff]   ;;  %v6706_v53 = vld [vmem:[%s9052_s20 + $0x164] ss:$28 sps:$4 sm:$0xff]  }
 0x856   :  { %4839 = vmatprep.subr.bf16.mxu1 %v6634_v54  ;;  %4921 = vmatprep.subr.bf16.mxu0 %v6637_v41  ;;  %v6707_v54 = vld [vmem:[%s9052_s20 + $0x328] ss:$28 sps:$4 sm:$0xff]   ;;  %v6704_v41 = vld [vmem:[%s9052_s20 + $0x160] ss:$28 sps:$4 sm:$0xff]  }
 0x859   :  { %4840 = vmatpush1.bf16.msra.mxu1 %v6632_v32  ;;  %4922 = vmatpush1.bf16.msra.mxu0 %v6635_v55  ;;  %v6708_v32 = vld [vmem:[%s9052_s20 + $0x168] ss:$28 sps:$4 sm:$0xff]   ;;  %v6711_v55 = vld [vmem:[%s9052_s20 + $0x19c] ss:$28 sps:$4 sm:$0xff]  }
 0x85a   :  { %4841 = vmatprep.subr.bf16.mxu1 %v6640_v56  ;;  %4923 = vmatprep.subr.bf16.mxu0 %v6643_v57  ;;  %v6712_v56 = vld [vmem:[%s9052_s20 + $0x360] ss:$28 sps:$4 sm:$0xff]   ;;  %v6709_v57 = vld [vmem:[%s9052_s20 + $0x198] ss:$28 sps:$4 sm:$0xff]  }
 0x85d   :  { %4842 = vmatpush1.bf16.msra.mxu1 %v6638_v58  ;;  %4924 = vmatpush1.bf16.msra.mxu0 %v6641_v59  ;;  %v6713_v58 = vld [vmem:[%s9052_s20 + $0x1a0] ss:$28 sps:$4 sm:$0xff]   ;;  %v6716_v59 = vld [vmem:[%s9052_s20 + $0x1d4] ss:$28 sps:$4 sm:$0xff]  }
 0x85e   :  { %4843 = vmatprep.subr.bf16.mxu1 %v6646_v62  ;;  %4925 = vmatprep.subr.bf16.mxu0 %v6649_v63  ;;  %v6717_v62 = vld [vmem:[%s9052_s20 + $0x558] ss:$28 sps:$4 sm:$0xff]   ;;  %v6714_v63 = vld [vmem:[%s9052_s20 + $0x1d0] ss:$28 sps:$4 sm:$0xff]  }
 0x861   :  { %4844 = vmatpush1.bf16.msra.mxu1 %v6644_v0  ;;  %4926 = vmatpush1.bf16.msra.mxu0 %v6647_v1  ;;  %v6718_v0 = vld [vmem:[%s9052_s20 + $0x398] ss:$28 sps:$4 sm:$0xff]   ;;  %v6721_v1 = vld [vmem:[%s9052_s20 + $0x20c] ss:$28 sps:$4 sm:$0xff]  }
 0x862   :  { %4845 = vmatprep.subr.bf16.mxu1 %v6652_v3  ;;  %4927 = vmatprep.subr.bf16.mxu0 %v6655_v4  ;;  %v6722_v3 = vld [vmem:[%s9052_s20 + $0x590] ss:$28 sps:$4 sm:$0xff]   ;;  %v6719_v4 = vld [vmem:[%s9052_s20 + $0x208] ss:$28 sps:$4 sm:$0xff]  }
 0x865   :  { %4846 = vmatpush1.bf16.msra.mxu1 %v6650_v5  ;;  %4928 = vmatpush1.bf16.msra.mxu0 %v6653_v6  ;;  %v6723_v5 = vld [vmem:[%s9052_s20 + $0x3d0] ss:$28 sps:$4 sm:$0xff]   ;;  %v6726_v6 = vld [vmem:[%s9052_s20 + $0x244] ss:$28 sps:$4 sm:$0xff]  }
 0x866   :  { %4847 = vmatprep.subr.bf16.mxu1 %v6658_v7  ;;  %4929 = vmatprep.subr.bf16.mxu0 %v6661_v8  ;;  %v6727_v7 = vld [vmem:[%s9052_s20 + $0x5c8] ss:$28 sps:$4 sm:$0xff]   ;;  %v6724_v8 = vld [vmem:[%s9052_s20 + $0x240] ss:$28 sps:$4 sm:$0xff]  }
 0x869   :  { %4848 = vmatpush1.bf16.msra.mxu1 %v6656_v9  ;;  %4930 = vmatpush1.bf16.msra.mxu0 %v6659_v2  ;;  %v6728_v9 = vld [vmem:[%s9052_s20 + $0x408] ss:$28 sps:$4 sm:$0xff]   ;;  %v6731_v2 = vld [vmem:[%s9052_s20 + $0x27c] ss:$28 sps:$4 sm:$0xff]  }
 0x86a   :  { %4849 = vmatprep.subr.bf16.mxu1 %v6664_v12  ;;  %4931 = vmatprep.subr.bf16.mxu0 %v6667_v14  ;;  %v6729_v12 = vld [vmem:[%s9052_s20 + $0x278] ss:$28 sps:$4 sm:$0xff]   ;;  %v6733_v14 = vld [vmem:[%s9052_s20 + $0x440] ss:$28 sps:$4 sm:$0xff]  }
 0x86d   :  { %4850 = vmatpush1.bf16.msra.mxu1 %v6662_v15  ;;  %4932 = vmatpush1.bf16.msra.mxu0 %v6665_v43  ;;  %v6736_v15 = vld [vmem:[%s9052_s20 + $0x2b4] ss:$28 sps:$4 sm:$0xff]  }
 0x86e   :  { %4851 = vmatprep.subr.bf16.mxu1 %v6670_v20  ;;  %4933 = vmatprep.subr.bf16.mxu0 %v6673_v21  ;;  %v6737_v43 = vld [vmem:[%s9052_s20 + $0x638] ss:$28 sps:$4 sm:$0xff]   ;;  %v6741_v21 = vld [vmem:[%s9052_s20 + $0x2ec] ss:$28 sps:$4 sm:$0xff]  }
 0x86f   :  { %v6738_v20 = vld [vmem:[%s9052_s20 + $0x478] ss:$28 sps:$4 sm:$0xff]  }
 0x871   :  { %4852 = vmatpush1.bf16.msra.mxu1 %v6668_v22  ;;  %4934 = vmatpush1.bf16.msra.mxu0 %v6671_v60  ;;  %v6742_v22 = vld [vmem:[%s9052_s20 + $0x670] ss:$28 sps:$4 sm:$0xff]   ;;  %v6739_v60 = vld [vmem:[%s9052_s20 + $0x2e8] ss:$28 sps:$4 sm:$0xff]  }
 0x872   :  { %4944 = vmatprep.subr.bf16.mxu1 %v6676_v24  ;;  %5818 = vmatprep.subr.bf16.mxu0 %v6677_v26  ;;  %v6746_v24 = vld [vmem:[%s9052_s20 + $0x324] ss:$28 sps:$4 sm:$0xff]  }
 0x873   :  { %v6747_v26 = vld [vmem:[%s9052_s20 + $0x6a8] ss:$28 sps:$4 sm:$0xff]  }
 0x874   :  { %4854 = vmatmul.mubr.bf16.vlgmr.msra.gmra.mrb[40].mxu1 %v8686_v34  ;;  %4936 = vmatmul.mubr.bf16.vlgmr.msra.gmra.mrb[32].mxu0 %v8686_v34 }
 0x875   :  { %4945 = vmatpush1.bf16.msra.mxu1 %v6674_v28  ;;  %4976 = vmatprep.mubr.bf16.mxu1 %v8476_v10  ;;  %v6744_v28 = vld [vmem:[%s9052_s20 + $0x320] ss:$28 sps:$4 sm:$0xff]  }
 0x876   :  { %5819 = vmatpush3.bf16.msra.mxu0 %v6678_v36  ;;  %5058 = vmatprep.mubr.bf16.mxu0 %v8476_v10  ;;  %v6688_v10 = vld [vmem:[%s9052_s20 + $0x88] ss:$28 sps:$4 sm:$0xff]  }
 0x877   :  { %4946 = vmatprep.subr.bf16.mxu1 %v6681_v37  ;;  %5820 = vmatprep.subr.bf16.mxu0 %v6682_v18  ;;  %v6748_v36 = vld [vmem:[%s9052_s20 + $0x4e8] ss:$28 sps:$4 sm:$0xff]   ;;  %v6751_v37 = vld [vmem:[%s9052_s20 + $0x35c] ss:$28 sps:$4 sm:$0xff]  }
 0x878   :  { %v6752_v18 = vld [vmem:[%s9052_s20 + $0x6e0] ss:$28 sps:$4 sm:$0xff]  }
 0x879   :  { %4947 = vmatpush1.bf16.msra.mxu1 %v6679_v61  ;;  %v6749_v61 = vld [vmem:[%s9052_s20 + $0x358] ss:$28 sps:$4 sm:$0xff]  }
 0x87a   :  { %5821 = vmatpush3.bf16.msra.mxu0 %v6683_v38  ;;  %4948 = vmatprep.subr.bf16.mxu1 %v6686_v39  ;;  %v6753_v38 = vld [vmem:[%s9052_s20 + $0x520] ss:$28 sps:$4 sm:$0xff]   ;;  %v6756_v39 = vld [vmem:[%s9052_s20 + $0x394] ss:$28 sps:$4 sm:$0xff]  }
 0x87b   :  { %5822 = vmatprep.subr.bf16.mxu0 %v6687_v27  ;;  %v6754_v27 = vld [vmem:[%s9052_s20 + $0x390] ss:$28 sps:$4 sm:$0xff]  }
 0x87d   :  { %4949 = vmatpush1.bf16.msra.mxu1 %v6684_v25  ;;  %v6759_v25 = vld [vmem:[%s9052_s20 + $0x3cc] ss:$28 sps:$4 sm:$0xff]  }
 0x87e   :  { %5823 = vmatpush3.bf16.msra.mxu0 %v6688_v10  ;;  %4950 = vmatprep.subr.bf16.mxu1 %v6691_v40  ;;  %v6757_v10 = vld [vmem:[%s9052_s20 + $0x3c8] ss:$28 sps:$4 sm:$0xff]  }
 0x87f   :  { %5824 = vmatprep.subr.bf16.mxu0 %v6692_v42  ;;  %v6762_v40 = vld [vmem:[%s9052_s20 + $0x404] ss:$28 sps:$4 sm:$0xff]  }
 0x880   :  { %v6760_v42 = vld [vmem:[%s9052_s20 + $0x400] ss:$28 sps:$4 sm:$0xff]  }
 0x881   :  { %4951 = vmatpush1.bf16.msra.mxu1 %v6689_v16  ;;  %v6768_v16 = vld [vmem:[%s9052_s20 + $0x474] ss:$28 sps:$4 sm:$0xff]  }
 0x882   :  { %5825 = vmatpush3.bf16.msra.mxu0 %v6693_v45  ;;  %4952 = vmatprep.subr.bf16.mxu1 %v6696_v44  ;;  %v6766_v45 = vld [vmem:[%s9052_s20 + $0x470] ss:$28 sps:$4 sm:$0xff]  }
 0x883   :  { %5826 = vmatprep.subr.bf16.mxu0 %v6697_v46  ;;  %v6771_v44 = vld [vmem:[%s9052_s20 + $0x4ac] ss:$28 sps:$4 sm:$0xff]  }
 0x884   :  { %v6769_v46 = vld [vmem:[%s9052_s20 + $0x4a8] ss:$28 sps:$4 sm:$0xff]  }
 0x885   :  { %4953 = vmatpush1.bf16.msra.mxu1 %v6694_v47  ;;  %v6774_v47 = vld [vmem:[%s9052_s20 + $0x4e4] ss:$28 sps:$4 sm:$0xff]  }
 0x886   :  { %5827 = vmatpush3.bf16.msra.mxu0 %v6698_v48  ;;  %4954 = vmatprep.subr.bf16.mxu1 %v6701_v49  ;;  %v6772_v48 = vld [vmem:[%s9052_s20 + $0x4e0] ss:$28 sps:$4 sm:$0xff]  }
 0x887   :  { %5828 = vmatprep.subr.bf16.mxu0 %v6702_v50  ;;  %v6777_v49 = vld [vmem:[%s9052_s20 + $0x51c] ss:$28 sps:$4 sm:$0xff]  }
 0x888   :  { %v6775_v50 = vld [vmem:[%s9052_s20 + $0x518] ss:$28 sps:$4 sm:$0xff]  }
 0x889   :  { %4955 = vmatpush1.bf16.msra.mxu1 %v6699_v51  ;;  %v6780_v51 = vld [vmem:[%s9052_s20 + $0x554] ss:$28 sps:$4 sm:$0xff]  }
 0x88a   :  { %5829 = vmatpush3.bf16.msra.mxu0 %v6703_v52  ;;  %4956 = vmatprep.subr.bf16.mxu1 %v6706_v53  ;;  %v6778_v52 = vld [vmem:[%s9052_s20 + $0x550] ss:$28 sps:$4 sm:$0xff]  }
 0x88b   :  { %5830 = vmatprep.subr.bf16.mxu0 %v6707_v54  ;;  %v6783_v53 = vld [vmem:[%s9052_s20 + $0x58c] ss:$28 sps:$4 sm:$0xff]  }
 0x88c   :  { %v6781_v54 = vld [vmem:[%s9052_s20 + $0x588] ss:$28 sps:$4 sm:$0xff]  }
 0x88d   :  { %4957 = vmatpush1.bf16.msra.mxu1 %v6704_v41  ;;  %v6786_v41 = vld [vmem:[%s9052_s20 + $0x5c4] ss:$28 sps:$4 sm:$0xff]  }
 0x88e   :  { %5831 = vmatpush3.bf16.msra.mxu0 %v6708_v32  ;;  %4958 = vmatprep.subr.bf16.mxu1 %v6711_v55  ;;  %v6784_v32 = vld [vmem:[%s9052_s20 + $0x5c0] ss:$28 sps:$4 sm:$0xff]  }
 0x88f   :  { %5832 = vmatprep.subr.bf16.mxu0 %v6712_v56  ;;  %v6789_v55 = vld [vmem:[%s9052_s20 + $0x5fc] ss:$28 sps:$4 sm:$0xff]  }
 0x890   :  { %v6787_v56 = vld [vmem:[%s9052_s20 + $0x5f8] ss:$28 sps:$4 sm:$0xff]  }
 0x891   :  { %4959 = vmatpush1.bf16.msra.mxu1 %v6709_v57  ;;  %v6792_v57 = vld [vmem:[%s9052_s20 + $0x634] ss:$28 sps:$4 sm:$0xff]  }
 0x892   :  { %5833 = vmatpush3.bf16.msra.mxu0 %v6713_v58  ;;  %4960 = vmatprep.subr.bf16.mxu1 %v6716_v59  ;;  %v6790_v58 = vld [vmem:[%s9052_s20 + $0x630] ss:$28 sps:$4 sm:$0xff]  }
 0x893   :  { %5840 = vmatprep.subr.bf16.mxu0 %v6717_v62  ;;  %v6795_v59 = vld [vmem:[%s9052_s20 + $0x66c] ss:$28 sps:$4 sm:$0xff]  }
 0x894   :  { %v6793_v62 = vld [vmem:[%s9052_s20 + $0x668] ss:$28 sps:$4 sm:$0xff]  }
 0x895   :  { %5059 = vmatmul.mubr.bf16.vlgmr.msra.gmra.mrb[36].mxu0 %v8484_v13  ;;  %4961 = vmatpush1.bf16.msra.mxu1 %v6714_v63  ;;  %v6798_v63 = vld [vmem:[%s9052_s20 + $0x6a4] ss:$28 sps:$4 sm:$0xff]  }
 0x896   :  { %5841 = vmatpush3.bf16.msra.mxu0 %v6718_v0  ;;  %5098 = vmatprep.mubr.bf16.mxu0 %v8494_v17  ;;  %v6796_v0 = vld [vmem:[%s9052_s20 + $0x6a0] ss:$28 sps:$4 sm:$0xff]  }
 0x897   :  { %4962 = vmatprep.subr.bf16.mxu1 %v6721_v1  ;;  %5842 = vmatprep.subr.bf16.mxu0 %v6722_v3  ;;  %v6801_v1 = vld [vmem:[%s9052_s20 + $0x6dc] ss:$28 sps:$4 sm:$0xff]  }
 0x898   :  { %v6799_v3 = vld [vmem:[%s9052_s20 + $0x6d8] ss:$28 sps:$4 sm:$0xff]  }
 0x899   :  { %4963 = vmatpush1.bf16.msra.mxu1 %v6719_v4  ;;  %v8980_v4 = vld [vmem:[%s9053_s21] sm:$0x7f] }
 0x89a   :  { %5843 = vmatpush3.bf16.msra.mxu0 %v6723_v5  ;;  %4964 = vmatprep.subr.bf16.mxu1 %v6726_v6  ;;  %v3596_v5 = vrot.slane %v8980_v4, %v7767_v31  ;;  %v3604_v6 = vrot.slane %v8980_v4, %v7877_v29 }
 0x89b   :  { %5844 = vmatprep.subr.bf16.mxu0 %v6727_v7  ;;  %v3600_v7 = vrot.slane %v8980_v4, %v7775_v33 }
 0x89d   :  { %4965 = vmatpush1.bf16.msra.mxu1 %v6724_v8  ;;  %v3608_v8 = vrot.slane %v8980_v4, %v7883_v35 }
 0x89e   :  { %5845 = vmatpush3.bf16.msra.mxu0 %v6728_v9  ;;  %4966 = vmatprep.subr.bf16.mxu1 %v6731_v2 }
 0x89f   :  { %5846 = vmatprep.subr.bf16.mxu0 %v6732_v11 }
 0x8a1   :  { %4967 = vmatpush1.bf16.msra.mxu1 %v6729_v12 }
 0x8a2   :  { %5847 = vmatpush3.bf16.msra.mxu0 %v6733_v14  ;;  %4968 = vmatprep.subr.bf16.mxu1 %v6736_v15 }
 0x8a3   :  { %5848 = vmatprep.subr.bf16.mxu0 %v6737_v43 }
 0x8a5   :  { %4969 = vmatpush1.bf16.msra.mxu1 %v6734_v19 }
 0x8a6   :  { %5849 = vmatpush3.bf16.msra.mxu0 %v6738_v20  ;;  %4970 = vmatprep.subr.bf16.mxu1 %v6741_v21 }
 0x8a7   :  { %5850 = vmatprep.subr.bf16.mxu0 %v6742_v22 }
 0x8a9   :  { %4971 = vmatpush1.bf16.msra.mxu1 %v6739_v60 }
 0x8aa   :  { %5851 = vmatpush3.bf16.msra.mxu0 %v6743_v23  ;;  %4972 = vmatprep.subr.bf16.mxu1 %v6746_v24 }
 0x8ab   :  { %5852 = vmatprep.subr.bf16.mxu0 %v6747_v26 }
 0x8ad   :  { %4973 = vmatpush1.bf16.msra.mxu1 %v6744_v28 }
 0x8ae   :  { %5853 = vmatpush3.bf16.msra.mxu0 %v6748_v36  ;;  %4974 = vmatprep.subr.bf16.mxu1 %v6751_v37 }
 0x8af   :  { %5854 = vmatprep.subr.bf16.mxu0 %v6752_v18 }
 0x8b1   :  { %4975 = vmatpush1.bf16.msra.mxu1 %v6749_v61 }
 0x8b2   :  { %5855 = vmatpush3.bf16.msra.mxu0 %v6753_v38  ;;  %4985 = vmatprep.subr.bf16.mxu1 %v6756_v39 }
 0x8b4   :  { %4977 = vmatmul.mubr.bf16.vlgmr.msra.gmra.mrb[44].mxu1 %v8484_v13  ;;  %v6765_v13 = vld [vmem:[%s9052_s20 + $0x43c] ss:$28 sps:$4 sm:$0xff]  }
 0x8b5   :  { %5099 = vmatmul.mubr.bf16.vlgmr.msra.gmra.mrb[40].mxu0 %v8686_v34  ;;  %4986 = vmatpush1.bf16.msra.mxu1 %v6754_v27 }
 0x8b6   :  { %5017 = vmatprep.mubr.bf16.mxu1 %v8494_v17  ;;  %4987 = vmatprep.subr.bf16.mxu1 %v6759_v25  ;;  %v6763_v17 = vld [vmem:[%s9052_s20 + $0x438] ss:$28 sps:$4 sm:$0xff]   ;;  %s6876_s20 = smov [#allocation4]  }
 0x8b7   :  { %s5146_s21 = sshll.u32 %s6876_s20, 4  ;;  %s5147_s21 = int_to_ptr.vmem [resolvable:$true] %s5146_s21 }
 0x8b8   :  { %s6802_s16 = scalar_lea.vmem %s5147_s21, 64  ;;  %p6807_p1 = scmp.lt.s32.totalorder %s5147_s21, %s5147_s21 }
 0x8b9   :  { %4988 = vmatpush1.bf16.msra.mxu1 %v6757_v10  ;;  %p6803_p0 = scmp.ne.s32.totalorder %s5147_s21, %s6802_s16  ;;  %p6808_p2 = scmp.lt.s32.totalorder %s6802_s16, %s6802_s16 }
 0x8ba   :  { %4989 = vmatprep.subr.bf16.mxu1 %v6762_v40 }
 0x8bb   :  { %p6809_p3 = por %p6808_p2, %p6807_p1 }
 0x8bd   :  { %4990 = vmatpush1.bf16.msra.mxu1 %v6760_v42  ;;  %p6810_p4 = pnand %p6809_p3, %p6803_p0 }
 0x8be   :  { %4991 = vmatprep.subr.bf16.mxu1 %v6765_v13 }
 0x8c1   :  { %4992 = vmatpush1.bf16.msra.mxu1 %v6763_v17 }
 0x8c2   :  { %4993 = vmatprep.subr.bf16.mxu1 %v6768_v16 }
 0x8c5   :  { %4994 = vmatpush1.bf16.msra.mxu1 %v6766_v45 }
 0x8c6   :  { %4995 = vmatprep.subr.bf16.mxu1 %v6771_v44 }
 0x8c9   :  { %4996 = vmatpush1.bf16.msra.mxu1 %v6769_v46 }
 0x8ca   :  { %4997 = vmatprep.subr.bf16.mxu1 %v6774_v47 }
 0x8cd   :  { %4998 = vmatpush1.bf16.msra.mxu1 %v6772_v48 }
 0x8ce   :  { %4999 = vmatprep.subr.bf16.mxu1 %v6777_v49 }
 0x8d1   :  { %5000 = vmatpush1.bf16.msra.mxu1 %v6775_v50 }
 0x8d2   :  { %5001 = vmatprep.subr.bf16.mxu1 %v6780_v51 }
 0x8d5   :  { %5002 = vmatpush1.bf16.msra.mxu1 %v6778_v52 }
 0x8d6   :  { %5003 = vmatprep.subr.bf16.mxu1 %v6783_v53 }
 0x8d9   :  { %5004 = vmatpush1.bf16.msra.mxu1 %v6781_v54 }
 0x8da   :  { %5005 = vmatprep.subr.bf16.mxu1 %v6786_v41 }
 0x8dd   :  { %5006 = vmatpush1.bf16.msra.mxu1 %v6784_v32 }
 0x8de   :  { %5007 = vmatprep.subr.bf16.mxu1 %v6789_v55 }
 0x8e1   :  { %5008 = vmatpush1.bf16.msra.mxu1 %v6787_v56 }
 0x8e2   :  { %5009 = vmatprep.subr.bf16.mxu1 %v6792_v57 }
 0x8e5   :  { %5010 = vmatpush1.bf16.msra.mxu1 %v6790_v58 }
 0x8e6   :  { %5011 = vmatprep.subr.bf16.mxu1 %v6795_v59 }
 0x8e9   :  { %5012 = vmatpush1.bf16.msra.mxu1 %v6793_v62 }
 0x8ea   :  { %5013 = vmatprep.subr.bf16.mxu1 %v6798_v63 }
 0x8ed   :  { %5014 = vmatpush1.bf16.msra.mxu1 %v6796_v0 }
 0x8ee   :  { %5015 = vmatprep.subr.bf16.mxu1 %v6801_v1 }
 0x8f1   :  { %5016 = vmatpush1.bf16.msra.mxu1 %v6799_v3 }
 0x8f4   :  { %5018 = vmatmul.mubr.bf16.vlgmr.msra.gmra.mrb[44].mxu1 %v8686_v34 }
 0x947   :  { %v4855_v9 = vpop.f32.mrb[40].mxu1  ;;  %v4937_v2 = vpop.f32.mrb[32].mxu0 }
 0x948   :  { %v5904_v34 = vadd.f32 %v4855_v9, %v3596_v5  ;;  %v5906_v11 = vadd.f32 %v4937_v2, %v3604_v6  ;;  %v4857_v12 = vpop.f32.mrb[41].mxu1  ;;  %v4939_v14 = vpop.f32.mrb[33].mxu0 }
 0x949   :  { %v5905_v15 = vadd.f32 %v4857_v12, %v3600_v7  ;;  %v5907_v43 = vadd.f32 %v4939_v14, %v3608_v8  ;;  %v4859_v19 = vpop.f32.mrb[42].mxu1  ;;  %v4941_v20 = vpop.f32.mrb[34].mxu0 }
 0x94a   :  { %v5106_v31 = vmax.f32 %v5904_v34, 0.0  ;;  %v5108_v21 = vmax.f32 %v5906_v11, 0.0  ;;  %v4860_v22 = vpop.f32.mrb[43].mxu1  ;;  %v4942_v29 = vpop.f32.mrb[35].mxu0 }
 0x94b   :  { %v5107_v60 = vmax.f32 %v5905_v15, 0.0  ;;  %v5109_v23 = vmax.f32 %v5907_v43, 0.0 }
 0x94d   :  { %v5119_v33 = vcombine.low %v5106_v31, %v5107_v60  ;;  %v5120_v24 = vcombine.low %v5108_v21, %v5109_v23 }
 0x94f   :  { %5125 = vst [vmem:[#allocation2] sm:$0xff] %v5119_v33  ;;  %5126 = vst [vmem:[#allocation2 + $0x8] sm:$0xff] %v5120_v24 }
 0x950   :  { %6813 = shalt.err (!%p6810_p4)
}
 0x951   :  { %s6814_s7 = scalar_lea.hbm %s9055_s23, 64 }
 0x952   :  { %p6815_p5 = scmp.ne.s32.totalorder %s9055_s23, %s6814_s7  ;;  %p6818_p6 = scmp.lt.u32.totalorder %s6814_s7, %s9055_s23 }
 0x954   :  { %p6820_p7 = pnand %p6818_p6, %p6815_p5 }
 0x956   :  { %6823 = shalt.err (!%p6820_p7)
}
 0x957   :  { %5149 = dma.vmem_to_hbm [thread:$0]  %s5147_s21, 64, %s9055_s23, [#allocation5]  }
 0x958   :  { %s6877_s13 = smov [#allocation6]  }
 0x959   :  { %s5156_s2 = sshll.u32 %s6877_s13, 4  ;;  %s5157_s2 = int_to_ptr.vmem [resolvable:$true] %s5156_s2 }
 0x95a   :  { %s6824_s29 = scalar_lea.vmem %s5157_s2, 64  ;;  %p6829_p9 = scmp.lt.s32.totalorder %s5157_s2, %s5157_s2 }
 0x95b   :  { %p6825_p8 = scmp.ne.s32.totalorder %s5157_s2, %s6824_s29  ;;  %p6830_p10 = scmp.lt.s32.totalorder %s6824_s29, %s6824_s29 }
 0x95d   :  { %p6831_p11 = por %p6830_p10, %p6829_p9 }
 0x95f   :  { %p6832_p12 = pnand %p6831_p11, %p6825_p8 }
 0x961   :  { %6835 = shalt.err (!%p6832_p12)
}
 0x962   :  { %s6836_s18 = scalar_lea.hbm %s9056_s24, 64 }
 0x963   :  { %p6837_p13 = scmp.ne.s32.totalorder %s9056_s24, %s6836_s18  ;;  %p6840_p0 = scmp.lt.u32.totalorder %s6836_s18, %s9056_s24 }
 0x965   :  { %p6842_p1 = pnand %p6840_p0, %p6837_p13 }
 0x967   :  { %6845 = shalt.err (!%p6842_p1)
}
 0x968   :  { %5159 = dma.vmem_to_hbm [thread:$0]  %s5157_s2, 64, %s9056_s24, [#allocation5]   ;;  %v5834_v35 = vpop.f32.mrb[36].mxu0  ;;  %v3619_v18 = vsub.s32 6, %v7764_v30  ;;  %vm5128_vm5 = vcmask 125952   ;;  %v3611_v17 = vsub.s32 4, %v7764_v30 }
 0x969   :  { %v5835_v26 = vpop.f32.mrb[37].mxu0  ;;  %v3615_v16 = vsub.s32 5, %v7764_v30  ;;  %s6878_s24 = smov [#allocation2]  }
 0x96a   :  { %v5836_v28 = vadd.f32 %v5835_v26, %v5834_v35  ;;  %v5837_v36 = vpop.f32.mrb[38].mxu0  ;;  %v3620_v61 = vrot.slane %v8980_v4, %v3619_v18  ;;  %v3612_v45 = vrot.slane %v8980_v4, %v3611_v17  ;;  %s5136_s0 = sshll.u32 %s6878_s24, 4  ;;  %s5137_s0 = int_to_ptr.vmem [resolvable:$true] %s5136_s0 }
 0x96b   :  { %v5838_v37 = vpop.f32.mrb[39].mxu0  ;;  %v3616_v44 = vrot.slane %v8980_v4, %v3615_v16  ;;  %s6846_s30 = scalar_lea.vmem %s5137_s0, 448  ;;  %p6851_p3 = scmp.lt.s32.totalorder %s5137_s0, %s5137_s0 }
 0x96c   :  { %v5061_v27 = vadd.f32 %v5836_v28, %v3620_v61  ;;  %p6847_p2 = scmp.ne.s32.totalorder %s5137_s0, %s6846_s30  ;;  %p6852_p4 = scmp.lt.s32.totalorder %s6846_s30, %s6846_s30 }
 0x96e   :  { %p6853_p5 = por %p6852_p4, %p6851_p3 }
 0x970   :  { %p6854_p6 = pnand %p6853_p5, %p6847_p2 }
 0x988   :  { %v5856_v38 = vpop.f32.mrb[40].mxu0 }
 0x989   :  { %v5857_v39 = vpop.f32.mrb[41].mxu0 }
 0x98a   :  { %v5858_v25 = vadd.f32 %v5857_v39, %v5856_v38  ;;  %v5859_v10 = vpop.f32.mrb[42].mxu0 }
 0x98b   :  { %v5860_v40 = vpop.f32.mrb[43].mxu0 }
 0x98c   :  { %v5101_v42 = vadd.f32 %v5858_v25, %v5061_v27 }
 0x98e   :  { %v5112_v13 = vmax.f32 %v5101_v42, 0.0 }
 0x990   :  { %5129 = vst.msk [vmem:[#allocation2 + $0x18] sm:$0xf] %vm5128_vm5, %v5112_v13 }
 0x9c7   :  { %v5019_v46 = vpop.f32.mrb[44].mxu1 }
 0x9c8   :  { %v5908_v47 = vadd.f32 %v5019_v46, %v3612_v45  ;;  %v5021_v48 = vpop.f32.mrb[45].mxu1 }
 0x9c9   :  { %v5909_v49 = vadd.f32 %v5021_v48, %v3616_v44  ;;  %v5023_v50 = vpop.f32.mrb[46].mxu1 }
 0x9ca   :  { %v5110_v51 = vmax.f32 %v5908_v47, 0.0  ;;  %v5024_v52 = vpop.f32.mrb[47].mxu1 }
 0x9cb   :  { %v5111_v53 = vmax.f32 %v5909_v49, 0.0 }
 0x9cd   :  { %v5121_v54 = vcombine.low %v5110_v51, %v5111_v53 }
 0x9cf   :  { %5127 = vst [vmem:[#allocation2 + $0x10] sm:$0xff] %v5121_v54 }
 0x9d0   :  { %6857 = shalt.err (!%p6854_p6)
}
 0x9d1   :  { %s6858_s4 = scalar_lea.hbm %s9054_s22, 448 }
 0x9d2   :  { %p6859_p7 = scmp.ne.s32.totalorder %s9054_s22, %s6858_s4  ;;  %p6862_p8 = scmp.lt.u32.totalorder %s6858_s4, %s9054_s22 }
 0x9d4   :  { %p6864_p9 = pnand %p6862_p8, %p6859_p7 }
 0x9d6   :  { %6867 = shalt.err (!%p6864_p9)
}
 0x9d7   :  { %5139 = dma.vmem_to_hbm [thread:$0]  %s5137_s0, 448, %s9054_s22, [#allocation3]  }
 0x9d8   :  { %6868 = dma.done.wait [#allocation3], 448  }
 0x9d9   :  { %6869 = vsyncadd [#allocation3], 4294966848 }
 0x9da   :  { %6870 = dma.done.wait [#allocation5], 128  }
 0x9db   :  { %6871 = vsyncadd [#allocation5], 4294967168 }
 0x9dc   :  { %5169 = vsyncpa [#allocation3], 1 }
 0x9dd   :  { %5170 = vsyncpa [#allocation5], 1 }

</bundles_post_ra>
